<compile_context>
chip_gen: v5e
topology: v5e:2x2
jax: 0.10.0
libtpu: 0.0.40
codegen_flags: <defaults>
</compile_context>

<pallas_src>
import functools
import numpy as np
import jax
import jax.numpy as jnp
from jax import lax
from jax.experimental import pallas as pl
from jax.experimental.pallas import tpu as pltpu

# ----- LossFunctionConfig defaults (from the PyTorch dataclass) -----
LAMBDA_VALUE = 0.2          # unused by the returned L (matches torch forward)
LAMBDA_DEPTH = 5.0
LAMBDA_SMOOTH = 0.02
ENABLE_REGULARIZATION = True
REG_WEIGHT = 2.0

# ----- SSIM constants (pytorch_msssim defaults: win=11, sigma=1.5, K=(.01,.03)) -----
WIN_SIZE = 11
WIN_SIGMA = 1.5
SSIM_C1 = (0.01 * 1.0) ** 2
SSIM_C2 = (0.03 * 1.0) ** 2

IMG_HALO = 16      # bottom halo rows for images (>= WIN_SIZE-1, 16-aligned blocks)
TOP_HALO = 8       # top halo rows for gt image (edge mask needs row i-1)
DEP_HALO = 8       # bottom halo rows for predicted depth (dy needs row i+1)
EDGE_THRESH = 200.0


def _gauss_window(size, sigma):
    coords = np.arange(size, dtype=np.float64) - size // 2
    g = np.exp(-(coords ** 2) / (2.0 * sigma ** 2))
    return g / g.sum()


def _band_filter_mats(tb, w):
    """Banded matrices so the separable 'valid' Gaussian runs on the MXU."""
    win = _gauss_window(WIN_SIZE, WIN_SIGMA)
    w_out = w - WIN_SIZE + 1
    gh = np.zeros((tb, tb + IMG_HALO), np.float32)
    for i in range(tb):
        gh[i, i:i + WIN_SIZE] = win
    gw = np.zeros((w, w_out), np.float32)
    for o in range(w_out):
        gw[o:o + WIN_SIZE, o] = win
    return gh[:, :tb].copy(), gh[:, tb:].copy(), gw


def _loss_band_kernel(pred_b_ref, pred_h_ref, gt_b_ref, gt_h_ref, gt_t_ref,
                      pdep_b_ref, pdep_h_ref, gdep_b_ref,
                      gh_body_ref, gh_halo_ref, gw_ref,
                      scales_ref, valid_ref, out_ref, *, H, W, TB):
    f32 = jnp.float32
    b = pl.program_id(0)
    r0 = b * TB                                  # first global input row of this band
    H_out = H - WIN_SIZE + 1
    W_out = W - WIN_SIZE + 1

    gh_body = gh_body_ref[...]                   # (TB, TB)
    gh_halo = gh_halo_ref[...]                   # (TB, IMG_HALO)
    gw = gw_ref[...]                             # (W, W_out)

    pred_b = pred_b_ref[...]                     # (BC, TB, W)
    pred_h = pred_h_ref[...]                     # (BC, IMG_HALO, W)
    gt_b = gt_b_ref[...]
    gt_h = gt_h_ref[...]
    BC = pred_b.shape[0]

    # ---------- masks (global row / col indices) ----------
    row_in = r0 + lax.broadcasted_iota(jnp.int32, (TB, W), 0)
    row_mask_H = (row_in < H).astype(f32)                         # rows this band owns
    dy_rmask = (row_in <= H - 2).astype(f32)
    col_in = lax.broadcasted_iota(jnp.int32, (TB, W), 1)
    colmask = (col_in <= W - 2).astype(f32)
    row_out = r0 + lax.broadcasted_iota(jnp.int32, (TB, W_out), 0)
    out_mask = (row_out < H_out).astype(f32)                      # valid SSIM output rows

    # ---------- separable Gaussian 'valid' filter as two MXU matmuls ----------
    def gfilt(body2d, halo2d):
        t = (jnp.dot(gh_body, body2d, preferred_element_type=f32)
             + jnp.dot(gh_halo, halo2d, preferred_element_type=f32))   # (TB, W)
        return jnp.dot(t, gw, preferred_element_type=f32)              # (TB, W_out)

    # ---------- L1 + SSIM (per-channel, statically unrolled) ----------
    l1_sum = jnp.zeros((), f32)
    ssim_sum = jnp.zeros((), f32)
    for c in range(BC):
        pb = pred_b[c]
        ph = pred_h[c]
        gb = gt_b[c]
        gh_ = gt_h[c]
        l1_sum = l1_sum + jnp.sum(jnp.abs(pb - gb) * row_mask_H)
        mu1 = gfilt(pb, ph)
        mu2 = gfilt(gb, gh_)
        s11 = gfilt(pb * pb, ph * ph) - mu1 * mu1
        s22 = gfilt(gb * gb, gh_ * gh_) - mu2 * mu2
        s12 = gfilt(pb * gb, ph * gh_) - mu1 * mu2
        num = (2.0 * mu1 * mu2 + SSIM_C1) * (2.0 * s12 + SSIM_C2)
        den = (mu1 * mu1 + mu2 * mu2 + SSIM_C1) * (s11 + s22 + SSIM_C2)
        ssim_sum = ssim_sum + jnp.sum((num / den) * out_mask)

    # ---------- depth L1 ----------
    pd_b = pdep_b_ref[...]                       # (TB, W)
    pd_h = pdep_h_ref[...]                       # (DEP_HALO, W)
    gd_b = gdep_b_ref[...]                       # (TB, W)
    dep_sum = jnp.sum(jnp.abs(pd_b - gd_b) * row_mask_H)

    # ---------- edge mask (Canny replacement) on rows [r0-8, r0+TB+16) ----------
    gt_t = gt_t_ref[...]                         # (BC, TOP_HALO, W)

    def gray_of(img3d):                          # BGR -> gray (matches cv BGR2GRAY weights)
        return 0.114 * img3d[0] + 0.587 * img3d[1] + 0.299 * img3d[2]

    gray = jnp.concatenate([gray_of(gt_t), gray_of(gt_b), gray_of(gt_h)], axis=0)
    gray = jnp.floor(jnp.clip(gray, 0.0, 1.0) * 255.0)
    R = TB + TOP_HALO + IMG_HALO                 # rows of the gray block
    # x-gradient: gray[l, j+1] - gray[l, j-1], zero at j=0 and j=W-1
    gxp = pltpu.roll(gray, W - 1, axis=1)        # value at j -> gray[:, j+1]
    gxm = pltpu.roll(gray, 1, axis=1)            # gray[:, j-1]
    colg = lax.broadcasted_iota(jnp.int32, (R, W), 1)
    gx = jnp.where((colg >= 1) & (colg <= W - 2), gxp - gxm, 0.0)
    # y-gradient: gray[l+1, j] - gray[l-1, j], zero at global rows 0 and H-1
    gyp = pltpu.roll(gray, R - 1, axis=0)        # gray[l+1]
    gym = pltpu.roll(gray, 1, axis=0)            # gray[l-1]
    rowg = (r0 - TOP_HALO) + lax.broadcasted_iota(jnp.int32, (R, W), 0)
    gy = jnp.where((rowg >= 1) & (rowg <= H - 2), gyp - gym, 0.0)
    mag = jnp.abs(gx) + jnp.abs(gy)
    edges = jnp.where(mag > EDGE_THRESH, 255.0, 0.0)
    em = 1.0 - edges                             # same arithmetic as torch (1 - Canny)

    em_b = em[TOP_HALO:TOP_HALO + TB, :]                                 # edges at band rows
    em_down = pltpu.roll(em, R - 1, axis=0)[TOP_HALO:TOP_HALO + TB, :]   # edges at row+1
    em_right = pltpu.roll(em_b, W - 1, axis=1)                           # edges at col+1

    # ---------- smoothing loss partial sums ----------
    pd_ext = jnp.concatenate([pd_b, pd_h], axis=0)                       # (TB+8, W)
    pd_down = pltpu.roll(pd_ext, TB + DEP_HALO - 1, axis=0)[:TB, :]      # depth at row+1
    pd_right = pltpu.roll(pd_b, W - 1, axis=1)                           # depth at col+1
    dx_sum = jnp.sum(jnp.abs(pd_b - pd_right) * em_b * em_right * colmask * row_mask_H)
    dy_sum = jnp.sum(jnp.abs(pd_b - pd_down) * em_b * em_down * dy_rmask)

    # ---------- regularization chunk (lane-dense) ----------
    sc = scales_ref[...]                         # (3, NCHUNK)
    vd = valid_ref[...]                          # (1, NCHUNK)
    e = jnp.exp(sc)
    norm = jnp.sqrt(jnp.sum(e * e, axis=0, keepdims=True))               # (1, NCHUNK)
    reg_sum = jnp.sum(norm * vd)
    cnt_sum = jnp.sum(vd)

    # ---------- write this band's partial sums as a lane-dense (8,128) block ----------
    vals = (l1_sum, ssim_sum, dep_sum, dx_sum, dy_sum, reg_sum, cnt_sum)
    ridx = lax.broadcasted_iota(jnp.int32, (8, 128), 0)
    acc = jnp.zeros((8, 128), f32)
    for k, v in enumerate(vals):
        acc = jnp.where(ridx == k, v, acc)
    out_ref[...] = acc


def loss_function(predicted_image, ground_truth_image, predicted_depth,
                  ground_truth_depth, point_invalid_mask, pointcloud_features):
    if predicted_image.ndim == 3:
        predicted_image = predicted_image[None]
    if ground_truth_image.ndim == 3:
        ground_truth_image = ground_truth_image[None]
    pred = predicted_image.astype(jnp.float32)
    gt = ground_truth_image.astype(jnp.float32)
    pd = predicted_depth.astype(jnp.float32)
    gd = ground_truth_depth.astype(jnp.float32)

    B, C, H, W = pred.shape
    BC = B * C
    H_out = H - WIN_SIZE + 1
    W_out = W - WIN_SIZE + 1

    # Band of input rows per grid step.  Re-derive for v7x (64 MiB VMEM) /
    # very wide frames if needed; 128 keeps <~8 MB of blocks per band at W=1920.
    TB = 16 if H <= 256 else 128
    num_bands = -(-H // TB)
    Hp = (num_bands + 1) * TB                    # padded rows cover all halo fetches

    pred3 = jnp.pad(pred.reshape(BC, H, W), ((0, 0), (0, Hp - H), (0, 0)))
    gt3 = jnp.pad(gt.reshape(BC, H, W), ((0, 0), (0, Hp - H), (0, 0)))
    pdp = jnp.pad(pd, ((0, Hp - H), (0, 0)))
    gdp = jnp.pad(gd, ((0, Hp - H), (0, 0)))

    gh_body_np, gh_halo_np, gw_np = _band_filter_mats(TB, W)
    gh_body = jnp.asarray(gh_body_np)
    gh_halo = jnp.asarray(gh_halo_np)
    gw = jnp.asarray(gw_np)

    # Lane-dense point-feature layout, chunked along the band grid axis.
    N = pointcloud_features.shape[0]
    nchunk = 128 * max(1, -(-N // (num_bands * 128)))
    Npad = num_bands * nchunk
    scales = pointcloud_features[:, 4:7].astype(jnp.float32).T           # (3, N)
    scales = jnp.pad(scales, ((0, 0), (0, Npad - N)))
    valid = (point_invalid_mask == 0).astype(jnp.float32)
    valid = jnp.pad(valid, (0, Npad - N)).reshape(1, Npad)

    cost = pl.CostEstimate(
        flops=int(5 * BC * num_bands * (2 * TB * (TB + IMG_HALO) * W + 2 * TB * W * W_out)
                  + 80 * BC * H * W),
        transcendentals=int(3 * Npad),
        bytes_accessed=int(4 * (2 * BC * Hp * W + 2 * Hp * W + 4 * Npad)
                           + num_bands * 8 * 128 * 4))

    kern = functools.partial(_loss_band_kernel, H=H, W=W, TB=TB)
    grid_spec = pltpu.PrefetchScalarGridSpec(
        num_scalar_prefetch=0,
        grid=(num_bands,),
        in_specs=[
            pl.BlockSpec((BC, TB, W), lambda b: (0, b, 0)),                               # pred body
            pl.BlockSpec((BC, IMG_HALO, W), lambda b: (0, (b + 1) * (TB // IMG_HALO), 0)),# pred halo
            pl.BlockSpec((BC, TB, W), lambda b: (0, b, 0)),                               # gt body
            pl.BlockSpec((BC, IMG_HALO, W), lambda b: (0, (b + 1) * (TB // IMG_HALO), 0)),# gt halo
            pl.BlockSpec((BC, TOP_HALO, W),
                         lambda b: (0, jnp.maximum(b * (TB // TOP_HALO) - 1, 0), 0)),     # gt top halo
            pl.BlockSpec((TB, W), lambda b: (b, 0)),                                      # pred depth body
            pl.BlockSpec((DEP_HALO, W), lambda b: ((b + 1) * (TB // DEP_HALO), 0)),       # pred depth halo
            pl.BlockSpec((TB, W), lambda b: (b, 0)),                                      # gt depth body
            pl.BlockSpec((TB, TB), lambda b: (0, 0)),                                     # Gh body
            pl.BlockSpec((TB, IMG_HALO), lambda b: (0, 0)),                               # Gh halo
            pl.BlockSpec((W, W_out), lambda b: (0, 0)),                                   # Gw
            pl.BlockSpec((3, nchunk), lambda b: (0, b)),                                  # scales chunk
            pl.BlockSpec((1, nchunk), lambda b: (0, b)),                                  # valid chunk
        ],
        out_specs=pl.BlockSpec((8, 128), lambda b: (b, 0)),
    )

    out = pl.pallas_call(
        kern,
        out_shape=jax.ShapeDtypeStruct((num_bands * 8, 128), jnp.float32),
        grid_spec=grid_spec,
        compiler_params=pltpu.CompilerParams(
            dimension_semantics=("parallel",),
            vmem_limit_bytes=48 * 1024 * 1024),
        cost_estimate=cost,
    )(pred3, pred3, gt3, gt3, gt3, pdp, pdp, gdp,
      gh_body, gh_halo, gw, scales, valid)

    parts = out.reshape(num_bands, 8, 128)[:, :, 0].sum(axis=0)
    L1 = parts[0] / (BC * H * W)
    LD_SSIM = 1.0 - parts[1] / (BC * H_out * W_out)
    L_DEPTH = parts[2] / (H * W)
    L_SMOOTH = parts[3] / (H * (W - 1)) + parts[4] / ((H - 1) * W)
    reg = parts[5] / jnp.maximum(parts[6], 1.0)   # guard against all-invalid points
    L = LAMBDA_DEPTH * L_DEPTH + LAMBDA_SMOOTH * L_SMOOTH
    if ENABLE_REGULARIZATION:
        L = L + REG_WEIGHT * reg
    return L, L1, LD_SSIM, L_DEPTH, L_SMOOTH


if __name__ == "__main__":
    key = jax.random.PRNGKey(0)
    k1, k2, k3, k4, k5, k6 = jax.random.split(key, 6)

    C, H, W = 3, 32, 32
    N, F = 64, 8

    predicted_image = jax.random.uniform(k1, (C, H, W), jnp.float32)      # (C,H,W) -> batched
    ground_truth_image = jax.random.uniform(k2, (C, H, W), jnp.float32)
    predicted_depth = jax.random.uniform(k3, (H, W), jnp.float32) * 10.0
    ground_truth_depth = jax.random.uniform(k4, (H, W), jnp.float32) * 10.0
    pointcloud_features = jax.random.normal(k5, (N, F), jnp.float32) * 0.5
    point_invalid_mask = (jax.random.uniform(k6, (N,)) > 0.7).astype(jnp.int32)

    outs = loss_function(predicted_image, ground_truth_image,
                         predicted_depth, ground_truth_depth,
                         point_invalid_mask, pointcloud_features)
    outs = jax.block_until_ready(outs)
    print("KERNEL_OK")
</pallas_src>

<mosaic_0001>
module attributes {stable_mosaic.version = 11 : i64} {
  func.func @_loss_band_kernel(%arg0: i32, %arg1: memref<3x16x32xf32, #tpu.memory_space<vmem>>, %arg2: memref<3x16x32xf32, #tpu.memory_space<vmem>>, %arg3: memref<3x16x32xf32, #tpu.memory_space<vmem>>, %arg4: memref<3x16x32xf32, #tpu.memory_space<vmem>>, %arg5: memref<3x8x32xf32, #tpu.memory_space<vmem>>, %arg6: memref<16x32xf32, #tpu.memory_space<vmem>>, %arg7: memref<8x32xf32, #tpu.memory_space<vmem>>, %arg8: memref<16x32xf32, #tpu.memory_space<vmem>>, %arg9: memref<16x16xf32, #tpu.memory_space<vmem>>, %arg10: memref<16x16xf32, #tpu.memory_space<vmem>>, %arg11: memref<32x22xf32, #tpu.memory_space<vmem>>, %arg12: memref<3x128xf32, #tpu.memory_space<vmem>>, %arg13: memref<1x128xf32, #tpu.memory_space<vmem>>, %arg14: memref<8x128xf32, #tpu.memory_space<vmem>>) attributes {dimension_semantics = [#tpu.dimension_semantics<parallel>], iteration_bounds = array<i64: 2>, scalar_prefetch = 0 : i64, scratch_operands = 0 : i64, tpu.core_type = #tpu.core_type<tc>, window_params = [{transform_indices = @transform_0, window_bounds = array<i64: 3, 16, 32>}, {transform_indices = @transform_1, window_bounds = array<i64: 3, 16, 32>}, {transform_indices = @transform_2, window_bounds = array<i64: 3, 16, 32>}, {transform_indices = @transform_3, window_bounds = array<i64: 3, 16, 32>}, {transform_indices = @transform_4, window_bounds = array<i64: 3, 8, 32>}, {transform_indices = @transform_5, window_bounds = array<i64: 16, 32>}, {transform_indices = @transform_6, window_bounds = array<i64: 8, 32>}, {transform_indices = @transform_7, window_bounds = array<i64: 16, 32>}, {pipeline_mode = #tpu.pipeline_mode<synchronous>, transform_indices = @transform_8, window_bounds = array<i64: 16, 16>}, {pipeline_mode = #tpu.pipeline_mode<synchronous>, transform_indices = @transform_9, window_bounds = array<i64: 16, 16>}, {pipeline_mode = #tpu.pipeline_mode<synchronous>, transform_indices = @transform_10, window_bounds = array<i64: 32, 22>}, {transform_indices = @transform_11, window_bounds = array<i64: 3, 128>}, {transform_indices = @transform_12, window_bounds = array<i64: 1, 128>}, {transform_indices = @transform_13, window_bounds = array<i64: 8, 128>}]} {
    %c16_i32 = arith.constant 16 : i32
    %0 = arith.muli %arg0, %c16_i32 : i32
    %c0 = arith.constant 0 : index
    %c0_0 = arith.constant 0 : index
    %1 = vector.load %arg9[%c0, %c0_0] : memref<16x16xf32, #tpu.memory_space<vmem>>, vector<16x16xf32>
    %c0_1 = arith.constant 0 : index
    %c0_2 = arith.constant 0 : index
    %2 = vector.load %arg10[%c0_1, %c0_2] : memref<16x16xf32, #tpu.memory_space<vmem>>, vector<16x16xf32>
    %c0_3 = arith.constant 0 : index
    %c0_4 = arith.constant 0 : index
    %3 = vector.load %arg11[%c0_3, %c0_4] : memref<32x22xf32, #tpu.memory_space<vmem>>, vector<32x22xf32>
    %c0_5 = arith.constant 0 : index
    %c0_6 = arith.constant 0 : index
    %c0_7 = arith.constant 0 : index
    %4 = vector.load %arg1[%c0_5, %c0_6, %c0_7] : memref<3x16x32xf32, #tpu.memory_space<vmem>>, vector<3x16x32xf32>
    %c0_8 = arith.constant 0 : index
    %c0_9 = arith.constant 0 : index
    %c0_10 = arith.constant 0 : index
    %5 = vector.load %arg2[%c0_8, %c0_9, %c0_10] : memref<3x16x32xf32, #tpu.memory_space<vmem>>, vector<3x16x32xf32>
    %c0_11 = arith.constant 0 : index
    %c0_12 = arith.constant 0 : index
    %c0_13 = arith.constant 0 : index
    %6 = vector.load %arg3[%c0_11, %c0_12, %c0_13] : memref<3x16x32xf32, #tpu.memory_space<vmem>>, vector<3x16x32xf32>
    %c0_14 = arith.constant 0 : index
    %c0_15 = arith.constant 0 : index
    %c0_16 = arith.constant 0 : index
    %7 = vector.load %arg4[%c0_14, %c0_15, %c0_16] : memref<3x16x32xf32, #tpu.memory_space<vmem>>, vector<3x16x32xf32>
    %8 = tpu.iota {dimensions = array<i32: 0>} : vector<16x32xi32>
    %9 = vector.broadcast %0 : i32 to vector<16x32xi32>
    %10 = arith.addi %9, %8 : vector<16x32xi32>
    %c32_i32 = arith.constant 32 : i32
    %11 = vector.broadcast %c32_i32 : i32 to vector<16x32xi32>
    %12 = arith.cmpi slt, %10, %11 : vector<16x32xi32>
    %13 = arith.extui %12 : vector<16x32xi1> to vector<16x32xi32>
    %14 = arith.sitofp %13 : vector<16x32xi32> to vector<16x32xf32>
    %c30_i32 = arith.constant 30 : i32
    %15 = vector.broadcast %c30_i32 : i32 to vector<16x32xi32>
    %16 = arith.cmpi sle, %10, %15 : vector<16x32xi32>
    %17 = arith.extui %16 : vector<16x32xi1> to vector<16x32xi32>
    %18 = arith.sitofp %17 : vector<16x32xi32> to vector<16x32xf32>
    %19 = tpu.iota {dimensions = array<i32: 1>} : vector<16x32xi32>
    %c30_i32_17 = arith.constant 30 : i32
    %20 = vector.broadcast %c30_i32_17 : i32 to vector<16x32xi32>
    %21 = arith.cmpi sle, %19, %20 : vector<16x32xi32>
    %22 = arith.extui %21 : vector<16x32xi1> to vector<16x32xi32>
    %23 = arith.sitofp %22 : vector<16x32xi32> to vector<16x32xf32>
    %24 = tpu.iota {dimensions = array<i32: 0>} : vector<16x22xi32>
    %25 = vector.broadcast %0 : i32 to vector<16x22xi32>
    %26 = arith.addi %25, %24 : vector<16x22xi32>
    %c22_i32 = arith.constant 22 : i32
    %27 = vector.broadcast %c22_i32 : i32 to vector<16x22xi32>
    %28 = arith.cmpi slt, %26, %27 : vector<16x22xi32>
    %29 = arith.extui %28 : vector<16x22xi1> to vector<16x22xi32>
    %30 = arith.sitofp %29 : vector<16x22xi32> to vector<16x22xf32>
    %31 = vector.extract_strided_slice %4 {offsets = [0, 0, 0], sizes = [1, 16, 32], strides = [1, 1, 1]} : vector<3x16x32xf32> to vector<1x16x32xf32>
    %32 = vector.shape_cast %31 : vector<1x16x32xf32> to vector<16x32xf32>
    %33 = vector.extract_strided_slice %5 {offsets = [0, 0, 0], sizes = [1, 16, 32], strides = [1, 1, 1]} : vector<3x16x32xf32> to vector<1x16x32xf32>
    %34 = vector.shape_cast %33 : vector<1x16x32xf32> to vector<16x32xf32>
    %35 = vector.extract_strided_slice %6 {offsets = [0, 0, 0], sizes = [1, 16, 32], strides = [1, 1, 1]} : vector<3x16x32xf32> to vector<1x16x32xf32>
    %36 = vector.shape_cast %35 : vector<1x16x32xf32> to vector<16x32xf32>
    %37 = vector.extract_strided_slice %7 {offsets = [0, 0, 0], sizes = [1, 16, 32], strides = [1, 1, 1]} : vector<3x16x32xf32> to vector<1x16x32xf32>
    %38 = vector.shape_cast %37 : vector<1x16x32xf32> to vector<16x32xf32>
    %39 = arith.subf %32, %36 : vector<16x32xf32>
    %40 = math.absf %39 : vector<16x32xf32>
    %41 = arith.mulf %40, %14 : vector<16x32xf32>
    %42 = vector.shape_cast %41 : vector<16x32xf32> to vector<1x16x32xf32>
    %cst = arith.constant dense<0.000000e+00> : vector<1xf32>
    %43 = vector.multi_reduction <add>, %42, %cst [1, 2] : vector<1x16x32xf32> to vector<1xf32>
    %44 = vector.shape_cast %43 : vector<1xf32> to vector<1x1x1xf32>
    %45 = vector.extract %44[0, 0, 0] : f32 from vector<1x1x1xf32>
    %cst_18 = arith.constant 0.000000e+00 : f32
    %46 = arith.addf %cst_18, %45 : f32
    %cst_19 = arith.constant dense<0.000000e+00> : vector<16x32xf32>
    %47 = tpu.matmul %1, %32, %cst_19 {dimension_numbers = #tpu.dot_dimension_numbers<[1], [0], [0], [1], [0, 0, 1, 1], [], []>} : vector<16x16xf32>, vector<16x32xf32>, vector<16x32xf32> -> vector<16x32xf32>
    %cst_20 = arith.constant dense<0.000000e+00> : vector<16x32xf32>
    %48 = tpu.matmul %2, %34, %cst_20 {dimension_numbers = #tpu.dot_dimension_numbers<[1], [0], [0], [1], [0, 0, 1, 1], [], []>} : vector<16x16xf32>, vector<16x32xf32>, vector<16x32xf32> -> vector<16x32xf32>
    %49 = arith.addf %47, %48 : vector<16x32xf32>
    %cst_21 = arith.constant dense<0.000000e+00> : vector<16x22xf32>
    %50 = tpu.matmul %49, %3, %cst_21 {dimension_numbers = #tpu.dot_dimension_numbers<[1], [0], [0], [1], [0, 0, 1, 1], [], []>} : vector<16x32xf32>, vector<32x22xf32>, vector<16x22xf32> -> vector<16x22xf32>
    %cst_22 = arith.constant dense<0.000000e+00> : vector<16x32xf32>
    %51 = tpu.matmul %1, %36, %cst_22 {dimension_numbers = #tpu.dot_dimension_numbers<[1], [0], [0], [1], [0, 0, 1, 1], [], []>} : vector<16x16xf32>, vector<16x32xf32>, vector<16x32xf32> -> vector<16x32xf32>
    %cst_23 = arith.constant dense<0.000000e+00> : vector<16x32xf32>
    %52 = tpu.matmul %2, %38, %cst_23 {dimension_numbers = #tpu.dot_dimension_numbers<[1], [0], [0], [1], [0, 0, 1, 1], [], []>} : vector<16x16xf32>, vector<16x32xf32>, vector<16x32xf32> -> vector<16x32xf32>
    %53 = arith.addf %51, %52 : vector<16x32xf32>
    %cst_24 = arith.constant dense<0.000000e+00> : vector<16x22xf32>
    %54 = tpu.matmul %53, %3, %cst_24 {dimension_numbers = #tpu.dot_dimension_numbers<[1], [0], [0], [1], [0, 0, 1, 1], [], []>} : vector<16x32xf32>, vector<32x22xf32>, vector<16x22xf32> -> vector<16x22xf32>
    %55 = arith.mulf %32, %32 : vector<16x32xf32>
    %56 = arith.mulf %34, %34 : vector<16x32xf32>
    %cst_25 = arith.constant dense<0.000000e+00> : vector<16x32xf32>
    %57 = tpu.matmul %1, %55, %cst_25 {dimension_numbers = #tpu.dot_dimension_numbers<[1], [0], [0], [1], [0, 0, 1, 1], [], []>} : vector<16x16xf32>, vector<16x32xf32>, vector<16x32xf32> -> vector<16x32xf32>
    %cst_26 = arith.constant dense<0.000000e+00> : vector<16x32xf32>
    %58 = tpu.matmul %2, %56, %cst_26 {dimension_numbers = #tpu.dot_dimension_numbers<[1], [0], [0], [1], [0, 0, 1, 1], [], []>} : vector<16x16xf32>, vector<16x32xf32>, vector<16x32xf32> -> vector<16x32xf32>
    %59 = arith.addf %57, %58 : vector<16x32xf32>
    %cst_27 = arith.constant dense<0.000000e+00> : vector<16x22xf32>
    %60 = tpu.matmul %59, %3, %cst_27 {dimension_numbers = #tpu.dot_dimension_numbers<[1], [0], [0], [1], [0, 0, 1, 1], [], []>} : vector<16x32xf32>, vector<32x22xf32>, vector<16x22xf32> -> vector<16x22xf32>
    %61 = arith.mulf %50, %50 : vector<16x22xf32>
    %62 = arith.subf %60, %61 : vector<16x22xf32>
    %63 = arith.mulf %36, %36 : vector<16x32xf32>
    %64 = arith.mulf %38, %38 : vector<16x32xf32>
    %cst_28 = arith.constant dense<0.000000e+00> : vector<16x32xf32>
    %65 = tpu.matmul %1, %63, %cst_28 {dimension_numbers = #tpu.dot_dimension_numbers<[1], [0], [0], [1], [0, 0, 1, 1], [], []>} : vector<16x16xf32>, vector<16x32xf32>, vector<16x32xf32> -> vector<16x32xf32>
    %cst_29 = arith.constant dense<0.000000e+00> : vector<16x32xf32>
    %66 = tpu.matmul %2, %64, %cst_29 {dimension_numbers = #tpu.dot_dimension_numbers<[1], [0], [0], [1], [0, 0, 1, 1], [], []>} : vector<16x16xf32>, vector<16x32xf32>, vector<16x32xf32> -> vector<16x32xf32>
    %67 = arith.addf %65, %66 : vector<16x32xf32>
    %cst_30 = arith.constant dense<0.000000e+00> : vector<16x22xf32>
    %68 = tpu.matmul %67, %3, %cst_30 {dimension_numbers = #tpu.dot_dimension_numbers<[1], [0], [0], [1], [0, 0, 1, 1], [], []>} : vector<16x32xf32>, vector<32x22xf32>, vector<16x22xf32> -> vector<16x22xf32>
    %69 = arith.mulf %54, %54 : vector<16x22xf32>
    %70 = arith.subf %68, %69 : vector<16x22xf32>
    %71 = arith.mulf %32, %36 : vector<16x32xf32>
    %72 = arith.mulf %34, %38 : vector<16x32xf32>
    %cst_31 = arith.constant dense<0.000000e+00> : vector<16x32xf32>
    %73 = tpu.matmul %1, %71, %cst_31 {dimension_numbers = #tpu.dot_dimension_numbers<[1], [0], [0], [1], [0, 0, 1, 1], [], []>} : vector<16x16xf32>, vector<16x32xf32>, vector<16x32xf32> -> vector<16x32xf32>
    %cst_32 = arith.constant dense<0.000000e+00> : vector<16x32xf32>
    %74 = tpu.matmul %2, %72, %cst_32 {dimension_numbers = #tpu.dot_dimension_numbers<[1], [0], [0], [1], [0, 0, 1, 1], [], []>} : vector<16x16xf32>, vector<16x32xf32>, vector<16x32xf32> -> vector<16x32xf32>
    %75 = arith.addf %73, %74 : vector<16x32xf32>
    %cst_33 = arith.constant dense<0.000000e+00> : vector<16x22xf32>
    %76 = tpu.matmul %75, %3, %cst_33 {dimension_numbers = #tpu.dot_dimension_numbers<[1], [0], [0], [1], [0, 0, 1, 1], [], []>} : vector<16x32xf32>, vector<32x22xf32>, vector<16x22xf32> -> vector<16x22xf32>
    %77 = arith.mulf %50, %54 : vector<16x22xf32>
    %78 = arith.subf %76, %77 : vector<16x22xf32>
    %cst_34 = arith.constant 2.000000e+00 : f32
    %79 = vector.broadcast %cst_34 : f32 to vector<16x22xf32>
    %80 = arith.mulf %79, %50 : vector<16x22xf32>
    %81 = arith.mulf %80, %54 : vector<16x22xf32>
    %cst_35 = arith.constant 9.99999974E-5 : f32
    %82 = vector.broadcast %cst_35 : f32 to vector<16x22xf32>
    %83 = arith.addf %81, %82 : vector<16x22xf32>
    %cst_36 = arith.constant 2.000000e+00 : f32
    %84 = vector.broadcast %cst_36 : f32 to vector<16x22xf32>
    %85 = arith.mulf %84, %78 : vector<16x22xf32>
    %cst_37 = arith.constant 8.99999984E-4 : f32
    %86 = vector.broadcast %cst_37 : f32 to vector<16x22xf32>
    %87 = arith.addf %85, %86 : vector<16x22xf32>
    %88 = arith.mulf %83, %87 : vector<16x22xf32>
    %89 = arith.mulf %50, %50 : vector<16x22xf32>
    %90 = arith.mulf %54, %54 : vector<16x22xf32>
    %91 = arith.addf %89, %90 : vector<16x22xf32>
    %cst_38 = arith.constant 9.99999974E-5 : f32
    %92 = vector.broadcast %cst_38 : f32 to vector<16x22xf32>
    %93 = arith.addf %91, %92 : vector<16x22xf32>
    %94 = arith.addf %62, %70 : vector<16x22xf32>
    %cst_39 = arith.constant 8.99999984E-4 : f32
    %95 = vector.broadcast %cst_39 : f32 to vector<16x22xf32>
    %96 = arith.addf %94, %95 : vector<16x22xf32>
    %97 = arith.mulf %93, %96 : vector<16x22xf32>
    %98 = arith.divf %88, %97 : vector<16x22xf32>
    %99 = arith.mulf %98, %30 : vector<16x22xf32>
    %100 = vector.shape_cast %99 : vector<16x22xf32> to vector<1x16x22xf32>
    %cst_40 = arith.constant dense<0.000000e+00> : vector<1xf32>
    %101 = vector.multi_reduction <add>, %100, %cst_40 [1, 2] : vector<1x16x22xf32> to vector<1xf32>
    %102 = vector.shape_cast %101 : vector<1xf32> to vector<1x1x1xf32>
    %103 = vector.extract %102[0, 0, 0] : f32 from vector<1x1x1xf32>
    %cst_41 = arith.constant 0.000000e+00 : f32
    %104 = arith.addf %cst_41, %103 : f32
    %105 = vector.extract_strided_slice %4 {offsets = [1, 0, 0], sizes = [1, 16, 32], strides = [1, 1, 1]} : vector<3x16x32xf32> to vector<1x16x32xf32>
    %106 = vector.shape_cast %105 : vector<1x16x32xf32> to vector<16x32xf32>
    %107 = vector.extract_strided_slice %5 {offsets = [1, 0, 0], sizes = [1, 16, 32], strides = [1, 1, 1]} : vector<3x16x32xf32> to vector<1x16x32xf32>
    %108 = vector.shape_cast %107 : vector<1x16x32xf32> to vector<16x32xf32>
    %109 = vector.extract_strided_slice %6 {offsets = [1, 0, 0], sizes = [1, 16, 32], strides = [1, 1, 1]} : vector<3x16x32xf32> to vector<1x16x32xf32>
    %110 = vector.shape_cast %109 : vector<1x16x32xf32> to vector<16x32xf32>
    %111 = vector.extract_strided_slice %7 {offsets = [1, 0, 0], sizes = [1, 16, 32], strides = [1, 1, 1]} : vector<3x16x32xf32> to vector<1x16x32xf32>
    %112 = vector.shape_cast %111 : vector<1x16x32xf32> to vector<16x32xf32>
    %113 = arith.subf %106, %110 : vector<16x32xf32>
    %114 = math.absf %113 : vector<16x32xf32>
    %115 = arith.mulf %114, %14 : vector<16x32xf32>
    %116 = vector.shape_cast %115 : vector<16x32xf32> to vector<1x16x32xf32>
    %cst_42 = arith.constant dense<0.000000e+00> : vector<1xf32>
    %117 = vector.multi_reduction <add>, %116, %cst_42 [1, 2] : vector<1x16x32xf32> to vector<1xf32>
    %118 = vector.shape_cast %117 : vector<1xf32> to vector<1x1x1xf32>
    %119 = vector.extract %118[0, 0, 0] : f32 from vector<1x1x1xf32>
    %120 = arith.addf %46, %119 : f32
    %cst_43 = arith.constant dense<0.000000e+00> : vector<16x32xf32>
    %121 = tpu.matmul %1, %106, %cst_43 {dimension_numbers = #tpu.dot_dimension_numbers<[1], [0], [0], [1], [0, 0, 1, 1], [], []>} : vector<16x16xf32>, vector<16x32xf32>, vector<16x32xf32> -> vector<16x32xf32>
    %cst_44 = arith.constant dense<0.000000e+00> : vector<16x32xf32>
    %122 = tpu.matmul %2, %108, %cst_44 {dimension_numbers = #tpu.dot_dimension_numbers<[1], [0], [0], [1], [0, 0, 1, 1], [], []>} : vector<16x16xf32>, vector<16x32xf32>, vector<16x32xf32> -> vector<16x32xf32>
    %123 = arith.addf %121, %122 : vector<16x32xf32>
    %cst_45 = arith.constant dense<0.000000e+00> : vector<16x22xf32>
    %124 = tpu.matmul %123, %3, %cst_45 {dimension_numbers = #tpu.dot_dimension_numbers<[1], [0], [0], [1], [0, 0, 1, 1], [], []>} : vector<16x32xf32>, vector<32x22xf32>, vector<16x22xf32> -> vector<16x22xf32>
    %cst_46 = arith.constant dense<0.000000e+00> : vector<16x32xf32>
    %125 = tpu.matmul %1, %110, %cst_46 {dimension_numbers = #tpu.dot_dimension_numbers<[1], [0], [0], [1], [0, 0, 1, 1], [], []>} : vector<16x16xf32>, vector<16x32xf32>, vector<16x32xf32> -> vector<16x32xf32>
    %cst_47 = arith.constant dense<0.000000e+00> : vector<16x32xf32>
    %126 = tpu.matmul %2, %112, %cst_47 {dimension_numbers = #tpu.dot_dimension_numbers<[1], [0], [0], [1], [0, 0, 1, 1], [], []>} : vector<16x16xf32>, vector<16x32xf32>, vector<16x32xf32> -> vector<16x32xf32>
    %127 = arith.addf %125, %126 : vector<16x32xf32>
    %cst_48 = arith.constant dense<0.000000e+00> : vector<16x22xf32>
    %128 = tpu.matmul %127, %3, %cst_48 {dimension_numbers = #tpu.dot_dimension_numbers<[1], [0], [0], [1], [0, 0, 1, 1], [], []>} : vector<16x32xf32>, vector<32x22xf32>, vector<16x22xf32> -> vector<16x22xf32>
    %129 = arith.mulf %106, %106 : vector<16x32xf32>
    %130 = arith.mulf %108, %108 : vector<16x32xf32>
    %cst_49 = arith.constant dense<0.000000e+00> : vector<16x32xf32>
    %131 = tpu.matmul %1, %129, %cst_49 {dimension_numbers = #tpu.dot_dimension_numbers<[1], [0], [0], [1], [0, 0, 1, 1], [], []>} : vector<16x16xf32>, vector<16x32xf32>, vector<16x32xf32> -> vector<16x32xf32>
    %cst_50 = arith.constant dense<0.000000e+00> : vector<16x32xf32>
    %132 = tpu.matmul %2, %130, %cst_50 {dimension_numbers = #tpu.dot_dimension_numbers<[1], [0], [0], [1], [0, 0, 1, 1], [], []>} : vector<16x16xf32>, vector<16x32xf32>, vector<16x32xf32> -> vector<16x32xf32>
    %133 = arith.addf %131, %132 : vector<16x32xf32>
    %cst_51 = arith.constant dense<0.000000e+00> : vector<16x22xf32>
    %134 = tpu.matmul %133, %3, %cst_51 {dimension_numbers = #tpu.dot_dimension_numbers<[1], [0], [0], [1], [0, 0, 1, 1], [], []>} : vector<16x32xf32>, vector<32x22xf32>, vector<16x22xf32> -> vector<16x22xf32>
    %135 = arith.mulf %124, %124 : vector<16x22xf32>
    %136 = arith.subf %134, %135 : vector<16x22xf32>
    %137 = arith.mulf %110, %110 : vector<16x32xf32>
    %138 = arith.mulf %112, %112 : vector<16x32xf32>
    %cst_52 = arith.constant dense<0.000000e+00> : vector<16x32xf32>
    %139 = tpu.matmul %1, %137, %cst_52 {dimension_numbers = #tpu.dot_dimension_numbers<[1], [0], [0], [1], [0, 0, 1, 1], [], []>} : vector<16x16xf32>, vector<16x32xf32>, vector<16x32xf32> -> vector<16x32xf32>
    %cst_53 = arith.constant dense<0.000000e+00> : vector<16x32xf32>
    %140 = tpu.matmul %2, %138, %cst_53 {dimension_numbers = #tpu.dot_dimension_numbers<[1], [0], [0], [1], [0, 0, 1, 1], [], []>} : vector<16x16xf32>, vector<16x32xf32>, vector<16x32xf32> -> vector<16x32xf32>
    %141 = arith.addf %139, %140 : vector<16x32xf32>
    %cst_54 = arith.constant dense<0.000000e+00> : vector<16x22xf32>
    %142 = tpu.matmul %141, %3, %cst_54 {dimension_numbers = #tpu.dot_dimension_numbers<[1], [0], [0], [1], [0, 0, 1, 1], [], []>} : vector<16x32xf32>, vector<32x22xf32>, vector<16x22xf32> -> vector<16x22xf32>
    %143 = arith.mulf %128, %128 : vector<16x22xf32>
    %144 = arith.subf %142, %143 : vector<16x22xf32>
    %145 = arith.mulf %106, %110 : vector<16x32xf32>
    %146 = arith.mulf %108, %112 : vector<16x32xf32>
    %cst_55 = arith.constant dense<0.000000e+00> : vector<16x32xf32>
    %147 = tpu.matmul %1, %145, %cst_55 {dimension_numbers = #tpu.dot_dimension_numbers<[1], [0], [0], [1], [0, 0, 1, 1], [], []>} : vector<16x16xf32>, vector<16x32xf32>, vector<16x32xf32> -> vector<16x32xf32>
    %cst_56 = arith.constant dense<0.000000e+00> : vector<16x32xf32>
    %148 = tpu.matmul %2, %146, %cst_56 {dimension_numbers = #tpu.dot_dimension_numbers<[1], [0], [0], [1], [0, 0, 1, 1], [], []>} : vector<16x16xf32>, vector<16x32xf32>, vector<16x32xf32> -> vector<16x32xf32>
    %149 = arith.addf %147, %148 : vector<16x32xf32>
    %cst_57 = arith.constant dense<0.000000e+00> : vector<16x22xf32>
    %150 = tpu.matmul %149, %3, %cst_57 {dimension_numbers = #tpu.dot_dimension_numbers<[1], [0], [0], [1], [0, 0, 1, 1], [], []>} : vector<16x32xf32>, vector<32x22xf32>, vector<16x22xf32> -> vector<16x22xf32>
    %151 = arith.mulf %124, %128 : vector<16x22xf32>
    %152 = arith.subf %150, %151 : vector<16x22xf32>
    %cst_58 = arith.constant 2.000000e+00 : f32
    %153 = vector.broadcast %cst_58 : f32 to vector<16x22xf32>
    %154 = arith.mulf %153, %124 : vector<16x22xf32>
    %155 = arith.mulf %154, %128 : vector<16x22xf32>
    %cst_59 = arith.constant 9.99999974E-5 : f32
    %156 = vector.broadcast %cst_59 : f32 to vector<16x22xf32>
    %157 = arith.addf %155, %156 : vector<16x22xf32>
    %cst_60 = arith.constant 2.000000e+00 : f32
    %158 = vector.broadcast %cst_60 : f32 to vector<16x22xf32>
    %159 = arith.mulf %158, %152 : vector<16x22xf32>
    %cst_61 = arith.constant 8.99999984E-4 : f32
    %160 = vector.broadcast %cst_61 : f32 to vector<16x22xf32>
    %161 = arith.addf %159, %160 : vector<16x22xf32>
    %162 = arith.mulf %157, %161 : vector<16x22xf32>
    %163 = arith.mulf %124, %124 : vector<16x22xf32>
    %164 = arith.mulf %128, %128 : vector<16x22xf32>
    %165 = arith.addf %163, %164 : vector<16x22xf32>
    %cst_62 = arith.constant 9.99999974E-5 : f32
    %166 = vector.broadcast %cst_62 : f32 to vector<16x22xf32>
    %167 = arith.addf %165, %166 : vector<16x22xf32>
    %168 = arith.addf %136, %144 : vector<16x22xf32>
    %cst_63 = arith.constant 8.99999984E-4 : f32
    %169 = vector.broadcast %cst_63 : f32 to vector<16x22xf32>
    %170 = arith.addf %168, %169 : vector<16x22xf32>
    %171 = arith.mulf %167, %170 : vector<16x22xf32>
    %172 = arith.divf %162, %171 : vector<16x22xf32>
    %173 = arith.mulf %172, %30 : vector<16x22xf32>
    %174 = vector.shape_cast %173 : vector<16x22xf32> to vector<1x16x22xf32>
    %cst_64 = arith.constant dense<0.000000e+00> : vector<1xf32>
    %175 = vector.multi_reduction <add>, %174, %cst_64 [1, 2] : vector<1x16x22xf32> to vector<1xf32>
    %176 = vector.shape_cast %175 : vector<1xf32> to vector<1x1x1xf32>
    %177 = vector.extract %176[0, 0, 0] : f32 from vector<1x1x1xf32>
    %178 = arith.addf %104, %177 : f32
    %179 = vector.extract_strided_slice %4 {offsets = [2, 0, 0], sizes = [1, 16, 32], strides = [1, 1, 1]} : vector<3x16x32xf32> to vector<1x16x32xf32>
    %180 = vector.shape_cast %179 : vector<1x16x32xf32> to vector<16x32xf32>
    %181 = vector.extract_strided_slice %5 {offsets = [2, 0, 0], sizes = [1, 16, 32], strides = [1, 1, 1]} : vector<3x16x32xf32> to vector<1x16x32xf32>
    %182 = vector.shape_cast %181 : vector<1x16x32xf32> to vector<16x32xf32>
    %183 = vector.extract_strided_slice %6 {offsets = [2, 0, 0], sizes = [1, 16, 32], strides = [1, 1, 1]} : vector<3x16x32xf32> to vector<1x16x32xf32>
    %184 = vector.shape_cast %183 : vector<1x16x32xf32> to vector<16x32xf32>
    %185 = vector.extract_strided_slice %7 {offsets = [2, 0, 0], sizes = [1, 16, 32], strides = [1, 1, 1]} : vector<3x16x32xf32> to vector<1x16x32xf32>
    %186 = vector.shape_cast %185 : vector<1x16x32xf32> to vector<16x32xf32>
    %187 = arith.subf %180, %184 : vector<16x32xf32>
    %188 = math.absf %187 : vector<16x32xf32>
    %189 = arith.mulf %188, %14 : vector<16x32xf32>
    %190 = vector.shape_cast %189 : vector<16x32xf32> to vector<1x16x32xf32>
    %cst_65 = arith.constant dense<0.000000e+00> : vector<1xf32>
    %191 = vector.multi_reduction <add>, %190, %cst_65 [1, 2] : vector<1x16x32xf32> to vector<1xf32>
    %192 = vector.shape_cast %191 : vector<1xf32> to vector<1x1x1xf32>
    %193 = vector.extract %192[0, 0, 0] : f32 from vector<1x1x1xf32>
    %194 = arith.addf %120, %193 : f32
    %cst_66 = arith.constant dense<0.000000e+00> : vector<16x32xf32>
    %195 = tpu.matmul %1, %180, %cst_66 {dimension_numbers = #tpu.dot_dimension_numbers<[1], [0], [0], [1], [0, 0, 1, 1], [], []>} : vector<16x16xf32>, vector<16x32xf32>, vector<16x32xf32> -> vector<16x32xf32>
    %cst_67 = arith.constant dense<0.000000e+00> : vector<16x32xf32>
    %196 = tpu.matmul %2, %182, %cst_67 {dimension_numbers = #tpu.dot_dimension_numbers<[1], [0], [0], [1], [0, 0, 1, 1], [], []>} : vector<16x16xf32>, vector<16x32xf32>, vector<16x32xf32> -> vector<16x32xf32>
    %197 = arith.addf %195, %196 : vector<16x32xf32>
    %cst_68 = arith.constant dense<0.000000e+00> : vector<16x22xf32>
    %198 = tpu.matmul %197, %3, %cst_68 {dimension_numbers = #tpu.dot_dimension_numbers<[1], [0], [0], [1], [0, 0, 1, 1], [], []>} : vector<16x32xf32>, vector<32x22xf32>, vector<16x22xf32> -> vector<16x22xf32>
    %cst_69 = arith.constant dense<0.000000e+00> : vector<16x32xf32>
    %199 = tpu.matmul %1, %184, %cst_69 {dimension_numbers = #tpu.dot_dimension_numbers<[1], [0], [0], [1], [0, 0, 1, 1], [], []>} : vector<16x16xf32>, vector<16x32xf32>, vector<16x32xf32> -> vector<16x32xf32>
    %cst_70 = arith.constant dense<0.000000e+00> : vector<16x32xf32>
    %200 = tpu.matmul %2, %186, %cst_70 {dimension_numbers = #tpu.dot_dimension_numbers<[1], [0], [0], [1], [0, 0, 1, 1], [], []>} : vector<16x16xf32>, vector<16x32xf32>, vector<16x32xf32> -> vector<16x32xf32>
    %201 = arith.addf %199, %200 : vector<16x32xf32>
    %cst_71 = arith.constant dense<0.000000e+00> : vector<16x22xf32>
    %202 = tpu.matmul %201, %3, %cst_71 {dimension_numbers = #tpu.dot_dimension_numbers<[1], [0], [0], [1], [0, 0, 1, 1], [], []>} : vector<16x32xf32>, vector<32x22xf32>, vector<16x22xf32> -> vector<16x22xf32>
    %203 = arith.mulf %180, %180 : vector<16x32xf32>
    %204 = arith.mulf %182, %182 : vector<16x32xf32>
    %cst_72 = arith.constant dense<0.000000e+00> : vector<16x32xf32>
    %205 = tpu.matmul %1, %203, %cst_72 {dimension_numbers = #tpu.dot_dimension_numbers<[1], [0], [0], [1], [0, 0, 1, 1], [], []>} : vector<16x16xf32>, vector<16x32xf32>, vector<16x32xf32> -> vector<16x32xf32>
    %cst_73 = arith.constant dense<0.000000e+00> : vector<16x32xf32>
    %206 = tpu.matmul %2, %204, %cst_73 {dimension_numbers = #tpu.dot_dimension_numbers<[1], [0], [0], [1], [0, 0, 1, 1], [], []>} : vector<16x16xf32>, vector<16x32xf32>, vector<16x32xf32> -> vector<16x32xf32>
    %207 = arith.addf %205, %206 : vector<16x32xf32>
    %cst_74 = arith.constant dense<0.000000e+00> : vector<16x22xf32>
    %208 = tpu.matmul %207, %3, %cst_74 {dimension_numbers = #tpu.dot_dimension_numbers<[1], [0], [0], [1], [0, 0, 1, 1], [], []>} : vector<16x32xf32>, vector<32x22xf32>, vector<16x22xf32> -> vector<16x22xf32>
    %209 = arith.mulf %198, %198 : vector<16x22xf32>
    %210 = arith.subf %208, %209 : vector<16x22xf32>
    %211 = arith.mulf %184, %184 : vector<16x32xf32>
    %212 = arith.mulf %186, %186 : vector<16x32xf32>
    %cst_75 = arith.constant dense<0.000000e+00> : vector<16x32xf32>
    %213 = tpu.matmul %1, %211, %cst_75 {dimension_numbers = #tpu.dot_dimension_numbers<[1], [0], [0], [1], [0, 0, 1, 1], [], []>} : vector<16x16xf32>, vector<16x32xf32>, vector<16x32xf32> -> vector<16x32xf32>
    %cst_76 = arith.constant dense<0.000000e+00> : vector<16x32xf32>
    %214 = tpu.matmul %2, %212, %cst_76 {dimension_numbers = #tpu.dot_dimension_numbers<[1], [0], [0], [1], [0, 0, 1, 1], [], []>} : vector<16x16xf32>, vector<16x32xf32>, vector<16x32xf32> -> vector<16x32xf32>
    %215 = arith.addf %213, %214 : vector<16x32xf32>
    %cst_77 = arith.constant dense<0.000000e+00> : vector<16x22xf32>
    %216 = tpu.matmul %215, %3, %cst_77 {dimension_numbers = #tpu.dot_dimension_numbers<[1], [0], [0], [1], [0, 0, 1, 1], [], []>} : vector<16x32xf32>, vector<32x22xf32>, vector<16x22xf32> -> vector<16x22xf32>
    %217 = arith.mulf %202, %202 : vector<16x22xf32>
    %218 = arith.subf %216, %217 : vector<16x22xf32>
    %219 = arith.mulf %180, %184 : vector<16x32xf32>
    %220 = arith.mulf %182, %186 : vector<16x32xf32>
    %cst_78 = arith.constant dense<0.000000e+00> : vector<16x32xf32>
    %221 = tpu.matmul %1, %219, %cst_78 {dimension_numbers = #tpu.dot_dimension_numbers<[1], [0], [0], [1], [0, 0, 1, 1], [], []>} : vector<16x16xf32>, vector<16x32xf32>, vector<16x32xf32> -> vector<16x32xf32>
    %cst_79 = arith.constant dense<0.000000e+00> : vector<16x32xf32>
    %222 = tpu.matmul %2, %220, %cst_79 {dimension_numbers = #tpu.dot_dimension_numbers<[1], [0], [0], [1], [0, 0, 1, 1], [], []>} : vector<16x16xf32>, vector<16x32xf32>, vector<16x32xf32> -> vector<16x32xf32>
    %223 = arith.addf %221, %222 : vector<16x32xf32>
    %cst_80 = arith.constant dense<0.000000e+00> : vector<16x22xf32>
    %224 = tpu.matmul %223, %3, %cst_80 {dimension_numbers = #tpu.dot_dimension_numbers<[1], [0], [0], [1], [0, 0, 1, 1], [], []>} : vector<16x32xf32>, vector<32x22xf32>, vector<16x22xf32> -> vector<16x22xf32>
    %225 = arith.mulf %198, %202 : vector<16x22xf32>
    %226 = arith.subf %224, %225 : vector<16x22xf32>
    %cst_81 = arith.constant 2.000000e+00 : f32
    %227 = vector.broadcast %cst_81 : f32 to vector<16x22xf32>
    %228 = arith.mulf %227, %198 : vector<16x22xf32>
    %229 = arith.mulf %228, %202 : vector<16x22xf32>
    %cst_82 = arith.constant 9.99999974E-5 : f32
    %230 = vector.broadcast %cst_82 : f32 to vector<16x22xf32>
    %231 = arith.addf %229, %230 : vector<16x22xf32>
    %cst_83 = arith.constant 2.000000e+00 : f32
    %232 = vector.broadcast %cst_83 : f32 to vector<16x22xf32>
    %233 = arith.mulf %232, %226 : vector<16x22xf32>
    %cst_84 = arith.constant 8.99999984E-4 : f32
    %234 = vector.broadcast %cst_84 : f32 to vector<16x22xf32>
    %235 = arith.addf %233, %234 : vector<16x22xf32>
    %236 = arith.mulf %231, %235 : vector<16x22xf32>
    %237 = arith.mulf %198, %198 : vector<16x22xf32>
    %238 = arith.mulf %202, %202 : vector<16x22xf32>
    %239 = arith.addf %237, %238 : vector<16x22xf32>
    %cst_85 = arith.constant 9.99999974E-5 : f32
    %240 = vector.broadcast %cst_85 : f32 to vector<16x22xf32>
    %241 = arith.addf %239, %240 : vector<16x22xf32>
    %242 = arith.addf %210, %218 : vector<16x22xf32>
    %cst_86 = arith.constant 8.99999984E-4 : f32
    %243 = vector.broadcast %cst_86 : f32 to vector<16x22xf32>
    %244 = arith.addf %242, %243 : vector<16x22xf32>
    %245 = arith.mulf %241, %244 : vector<16x22xf32>
    %246 = arith.divf %236, %245 : vector<16x22xf32>
    %247 = arith.mulf %246, %30 : vector<16x22xf32>
    %248 = vector.shape_cast %247 : vector<16x22xf32> to vector<1x16x22xf32>
    %cst_87 = arith.constant dense<0.000000e+00> : vector<1xf32>
    %249 = vector.multi_reduction <add>, %248, %cst_87 [1, 2] : vector<1x16x22xf32> to vector<1xf32>
    %250 = vector.shape_cast %249 : vector<1xf32> to vector<1x1x1xf32>
    %251 = vector.extract %250[0, 0, 0] : f32 from vector<1x1x1xf32>
    %252 = arith.addf %178, %251 : f32
    %c0_88 = arith.constant 0 : index
    %c0_89 = arith.constant 0 : index
    %253 = vector.load %arg6[%c0_88, %c0_89] : memref<16x32xf32, #tpu.memory_space<vmem>>, vector<16x32xf32>
    %c0_90 = arith.constant 0 : index
    %c0_91 = arith.constant 0 : index
    %254 = vector.load %arg7[%c0_90, %c0_91] : memref<8x32xf32, #tpu.memory_space<vmem>>, vector<8x32xf32>
    %c0_92 = arith.constant 0 : index
    %c0_93 = arith.constant 0 : index
    %255 = vector.load %arg8[%c0_92, %c0_93] : memref<16x32xf32, #tpu.memory_space<vmem>>, vector<16x32xf32>
    %256 = arith.subf %253, %255 : vector<16x32xf32>
    %257 = math.absf %256 : vector<16x32xf32>
    %258 = arith.mulf %257, %14 : vector<16x32xf32>
    %259 = vector.shape_cast %258 : vector<16x32xf32> to vector<1x16x32xf32>
    %cst_94 = arith.constant dense<0.000000e+00> : vector<1xf32>
    %260 = vector.multi_reduction <add>, %259, %cst_94 [1, 2] : vector<1x16x32xf32> to vector<1xf32>
    %261 = vector.shape_cast %260 : vector<1xf32> to vector<1x1x1xf32>
    %262 = vector.extract %261[0, 0, 0] : f32 from vector<1x1x1xf32>
    %c0_95 = arith.constant 0 : index
    %c0_96 = arith.constant 0 : index
    %c0_97 = arith.constant 0 : index
    %263 = vector.load %arg5[%c0_95, %c0_96, %c0_97] : memref<3x8x32xf32, #tpu.memory_space<vmem>>, vector<3x8x32xf32>
    %264 = vector.extract_strided_slice %263 {offsets = [0, 0, 0], sizes = [1, 8, 32], strides = [1, 1, 1]} : vector<3x8x32xf32> to vector<1x8x32xf32>
    %265 = vector.shape_cast %264 : vector<1x8x32xf32> to vector<8x32xf32>
    %cst_98 = arith.constant 1.140000e-01 : f32
    %266 = vector.broadcast %cst_98 : f32 to vector<8x32xf32>
    %267 = arith.mulf %266, %265 : vector<8x32xf32>
    %268 = vector.extract_strided_slice %263 {offsets = [1, 0, 0], sizes = [1, 8, 32], strides = [1, 1, 1]} : vector<3x8x32xf32> to vector<1x8x32xf32>
    %269 = vector.shape_cast %268 : vector<1x8x32xf32> to vector<8x32xf32>
    %cst_99 = arith.constant 5.870000e-01 : f32
    %270 = vector.broadcast %cst_99 : f32 to vector<8x32xf32>
    %271 = arith.mulf %270, %269 : vector<8x32xf32>
    %272 = arith.addf %267, %271 : vector<8x32xf32>
    %273 = vector.extract_strided_slice %263 {offsets = [2, 0, 0], sizes = [1, 8, 32], strides = [1, 1, 1]} : vector<3x8x32xf32> to vector<1x8x32xf32>
    %274 = vector.shape_cast %273 : vector<1x8x32xf32> to vector<8x32xf32>
    %cst_100 = arith.constant 2.990000e-01 : f32
    %275 = vector.broadcast %cst_100 : f32 to vector<8x32xf32>
    %276 = arith.mulf %275, %274 : vector<8x32xf32>
    %277 = arith.addf %272, %276 : vector<8x32xf32>
    %278 = vector.extract_strided_slice %6 {offsets = [0, 0, 0], sizes = [1, 16, 32], strides = [1, 1, 1]} : vector<3x16x32xf32> to vector<1x16x32xf32>
    %279 = vector.shape_cast %278 : vector<1x16x32xf32> to vector<16x32xf32>
    %cst_101 = arith.constant 1.140000e-01 : f32
    %280 = vector.broadcast %cst_101 : f32 to vector<16x32xf32>
    %281 = arith.mulf %280, %279 : vector<16x32xf32>
    %282 = vector.extract_strided_slice %6 {offsets = [1, 0, 0], sizes = [1, 16, 32], strides = [1, 1, 1]} : vector<3x16x32xf32> to vector<1x16x32xf32>
    %283 = vector.shape_cast %282 : vector<1x16x32xf32> to vector<16x32xf32>
    %cst_102 = arith.constant 5.870000e-01 : f32
    %284 = vector.broadcast %cst_102 : f32 to vector<16x32xf32>
    %285 = arith.mulf %284, %283 : vector<16x32xf32>
    %286 = arith.addf %281, %285 : vector<16x32xf32>
    %287 = vector.extract_strided_slice %6 {offsets = [2, 0, 0], sizes = [1, 16, 32], strides = [1, 1, 1]} : vector<3x16x32xf32> to vector<1x16x32xf32>
    %288 = vector.shape_cast %287 : vector<1x16x32xf32> to vector<16x32xf32>
    %cst_103 = arith.constant 2.990000e-01 : f32
    %289 = vector.broadcast %cst_103 : f32 to vector<16x32xf32>
    %290 = arith.mulf %289, %288 : vector<16x32xf32>
    %291 = arith.addf %286, %290 : vector<16x32xf32>
    %292 = vector.extract_strided_slice %7 {offsets = [0, 0, 0], sizes = [1, 16, 32], strides = [1, 1, 1]} : vector<3x16x32xf32> to vector<1x16x32xf32>
    %293 = vector.shape_cast %292 : vector<1x16x32xf32> to vector<16x32xf32>
    %cst_104 = arith.constant 1.140000e-01 : f32
    %294 = vector.broadcast %cst_104 : f32 to vector<16x32xf32>
    %295 = arith.mulf %294, %293 : vector<16x32xf32>
    %296 = vector.extract_strided_slice %7 {offsets = [1, 0, 0], sizes = [1, 16, 32], strides = [1, 1, 1]} : vector<3x16x32xf32> to vector<1x16x32xf32>
    %297 = vector.shape_cast %296 : vector<1x16x32xf32> to vector<16x32xf32>
    %cst_105 = arith.constant 5.870000e-01 : f32
    %298 = vector.broadcast %cst_105 : f32 to vector<16x32xf32>
    %299 = arith.mulf %298, %297 : vector<16x32xf32>
    %300 = arith.addf %295, %299 : vector<16x32xf32>
    %301 = vector.extract_strided_slice %7 {offsets = [2, 0, 0], sizes = [1, 16, 32], strides = [1, 1, 1]} : vector<3x16x32xf32> to vector<1x16x32xf32>
    %302 = vector.shape_cast %301 : vector<1x16x32xf32> to vector<16x32xf32>
    %cst_106 = arith.constant 2.990000e-01 : f32
    %303 = vector.broadcast %cst_106 : f32 to vector<16x32xf32>
    %304 = arith.mulf %303, %302 : vector<16x32xf32>
    %305 = arith.addf %300, %304 : vector<16x32xf32>
    %306 = tpu.concatenate %277, %291, %305 in 0 : vector<8x32xf32>, vector<16x32xf32>, vector<16x32xf32> -> vector<40x32xf32>
    %cst_107 = arith.constant 0.000000e+00 : f32
    %cst_108 = arith.constant 1.000000e+00 : f32
    %307 = vector.broadcast %cst_107 : f32 to vector<40x32xf32>
    %308 = arith.maximumf %307, %306 : vector<40x32xf32>
    %309 = vector.broadcast %cst_108 : f32 to vector<40x32xf32>
    %310 = arith.minimumf %309, %308 : vector<40x32xf32>
    %cst_109 = arith.constant 2.550000e+02 : f32
    %311 = vector.broadcast %cst_109 : f32 to vector<40x32xf32>
    %312 = arith.mulf %310, %311 : vector<40x32xf32>
    %313 = math.floor %312 : vector<40x32xf32>
    %c31_i32 = arith.constant 31 : i32
    %314 = tpu.dynamic_rotate %313 by %c31_i32 dim 1 : vector<40x32xf32>, i32 -> vector<40x32xf32>
    %c1_i32 = arith.constant 1 : i32
    %315 = tpu.dynamic_rotate %313 by %c1_i32 dim 1 : vector<40x32xf32>, i32 -> vector<40x32xf32>
    %316 = tpu.iota {dimensions = array<i32: 1>} : vector<40x32xi32>
    %c1_i32_110 = arith.constant 1 : i32
    %317 = vector.broadcast %c1_i32_110 : i32 to vector<40x32xi32>
    %318 = arith.cmpi sge, %316, %317 : vector<40x32xi32>
    %c30_i32_111 = arith.constant 30 : i32
    %319 = vector.broadcast %c30_i32_111 : i32 to vector<40x32xi32>
    %320 = arith.cmpi sle, %316, %319 : vector<40x32xi32>
    %321 = arith.andi %318, %320 : vector<40x32xi1>
    %322 = arith.subf %314, %315 : vector<40x32xf32>
    %cst_112 = arith.constant 0.000000e+00 : f32
    %323 = vector.broadcast %cst_112 : f32 to vector<40x32xf32>
    %324 = arith.select %321, %322, %323 : vector<40x32xi1>, vector<40x32xf32>
    %c39_i32 = arith.constant 39 : i32
    %325 = tpu.dynamic_rotate %313 by %c39_i32 dim 0 : vector<40x32xf32>, i32 -> vector<40x32xf32>
    %c1_i32_113 = arith.constant 1 : i32
    %326 = tpu.dynamic_rotate %313 by %c1_i32_113 dim 0 : vector<40x32xf32>, i32 -> vector<40x32xf32>
    %c8_i32 = arith.constant 8 : i32
    %327 = arith.subi %0, %c8_i32 : i32
    %328 = tpu.iota {dimensions = array<i32: 0>} : vector<40x32xi32>
    %329 = vector.broadcast %327 : i32 to vector<40x32xi32>
    %330 = arith.addi %329, %328 : vector<40x32xi32>
    %c1_i32_114 = arith.constant 1 : i32
    %331 = vector.broadcast %c1_i32_114 : i32 to vector<40x32xi32>
    %332 = arith.cmpi sge, %330, %331 : vector<40x32xi32>
    %c30_i32_115 = arith.constant 30 : i32
    %333 = vector.broadcast %c30_i32_115 : i32 to vector<40x32xi32>
    %334 = arith.cmpi sle, %330, %333 : vector<40x32xi32>
    %335 = arith.andi %332, %334 : vector<40x32xi1>
    %336 = arith.subf %325, %326 : vector<40x32xf32>
    %cst_116 = arith.constant 0.000000e+00 : f32
    %337 = vector.broadcast %cst_116 : f32 to vector<40x32xf32>
    %338 = arith.select %335, %336, %337 : vector<40x32xi1>, vector<40x32xf32>
    %339 = math.absf %324 : vector<40x32xf32>
    %340 = math.absf %338 : vector<40x32xf32>
    %341 = arith.addf %339, %340 : vector<40x32xf32>
    %cst_117 = arith.constant 2.000000e+02 : f32
    %342 = vector.broadcast %cst_117 : f32 to vector<40x32xf32>
    %343 = arith.cmpf ogt, %341, %342 : vector<40x32xf32>
    %cst_118 = arith.constant 2.550000e+02 : f32
    %cst_119 = arith.constant 0.000000e+00 : f32
    %344 = vector.broadcast %cst_118 : f32 to vector<40x32xf32>
    %345 = vector.broadcast %cst_119 : f32 to vector<40x32xf32>
    %346 = arith.select %343, %344, %345 : vector<40x32xi1>, vector<40x32xf32>
    %cst_120 = arith.constant 1.000000e+00 : f32
    %347 = vector.broadcast %cst_120 : f32 to vector<40x32xf32>
    %348 = arith.subf %347, %346 : vector<40x32xf32>
    %349 = vector.extract_strided_slice %348 {offsets = [8, 0], sizes = [16, 32], strides = [1, 1]} : vector<40x32xf32> to vector<16x32xf32>
    %c39_i32_121 = arith.constant 39 : i32
    %350 = tpu.dynamic_rotate %348 by %c39_i32_121 dim 0 : vector<40x32xf32>, i32 -> vector<40x32xf32>
    %351 = vector.extract_strided_slice %350 {offsets = [8, 0], sizes = [16, 32], strides = [1, 1]} : vector<40x32xf32> to vector<16x32xf32>
    %c31_i32_122 = arith.constant 31 : i32
    %352 = tpu.dynamic_rotate %349 by %c31_i32_122 dim 1 : vector<16x32xf32>, i32 -> vector<16x32xf32>
    %353 = tpu.concatenate %253, %254 in 0 : vector<16x32xf32>, vector<8x32xf32> -> vector<24x32xf32>
    %c23_i32 = arith.constant 23 : i32
    %354 = tpu.dynamic_rotate %353 by %c23_i32 dim 0 : vector<24x32xf32>, i32 -> vector<24x32xf32>
    %355 = vector.extract_strided_slice %354 {offsets = [0, 0], sizes = [16, 32], strides = [1, 1]} : vector<24x32xf32> to vector<16x32xf32>
    %c31_i32_123 = arith.constant 31 : i32
    %356 = tpu.dynamic_rotate %253 by %c31_i32_123 dim 1 : vector<16x32xf32>, i32 -> vector<16x32xf32>
    %357 = arith.subf %253, %356 : vector<16x32xf32>
    %358 = math.absf %357 : vector<16x32xf32>
    %359 = arith.mulf %358, %349 : vector<16x32xf32>
    %360 = arith.mulf %359, %352 : vector<16x32xf32>
    %361 = arith.mulf %360, %23 : vector<16x32xf32>
    %362 = arith.mulf %361, %14 : vector<16x32xf32>
    %363 = vector.shape_cast %362 : vector<16x32xf32> to vector<1x16x32xf32>
    %cst_124 = arith.constant dense<0.000000e+00> : vector<1xf32>
    %364 = vector.multi_reduction <add>, %363, %cst_124 [1, 2] : vector<1x16x32xf32> to vector<1xf32>
    %365 = vector.shape_cast %364 : vector<1xf32> to vector<1x1x1xf32>
    %366 = vector.extract %365[0, 0, 0] : f32 from vector<1x1x1xf32>
    %367 = arith.subf %253, %355 : vector<16x32xf32>
    %368 = math.absf %367 : vector<16x32xf32>
    %369 = arith.mulf %368, %349 : vector<16x32xf32>
    %370 = arith.mulf %369, %351 : vector<16x32xf32>
    %371 = arith.mulf %370, %18 : vector<16x32xf32>
    %372 = vector.shape_cast %371 : vector<16x32xf32> to vector<1x16x32xf32>
    %cst_125 = arith.constant dense<0.000000e+00> : vector<1xf32>
    %373 = vector.multi_reduction <add>, %372, %cst_125 [1, 2] : vector<1x16x32xf32> to vector<1xf32>
    %374 = vector.shape_cast %373 : vector<1xf32> to vector<1x1x1xf32>
    %375 = vector.extract %374[0, 0, 0] : f32 from vector<1x1x1xf32>
    %c0_126 = arith.constant 0 : index
    %c0_127 = arith.constant 0 : index
    %376 = vector.load %arg12[%c0_126, %c0_127] : memref<3x128xf32, #tpu.memory_space<vmem>>, vector<3x128xf32>
    %c0_128 = arith.constant 0 : index
    %c0_129 = arith.constant 0 : index
    %377 = vector.load %arg13[%c0_128, %c0_129] : memref<1x128xf32, #tpu.memory_space<vmem>>, vector<1x128xf32>
    %378 = math.exp %376 : vector<3x128xf32>
    %379 = arith.mulf %378, %378 : vector<3x128xf32>
    %cst_130 = arith.constant dense<0.000000e+00> : vector<128xf32>
    %380 = vector.multi_reduction <add>, %379, %cst_130 [0] : vector<3x128xf32> to vector<128xf32>
    %381 = vector.shape_cast %380 : vector<128xf32> to vector<1x128xf32>
    %382 = math.sqrt %381 : vector<1x128xf32>
    %383 = arith.mulf %382, %377 : vector<1x128xf32>
    %384 = vector.shape_cast %383 : vector<1x128xf32> to vector<1x1x128xf32>
    %cst_131 = arith.constant dense<0.000000e+00> : vector<1xf32>
    %385 = vector.multi_reduction <add>, %384, %cst_131 [1, 2] : vector<1x1x128xf32> to vector<1xf32>
    %386 = vector.shape_cast %385 : vector<1xf32> to vector<1x1x1xf32>
    %387 = vector.extract %386[0, 0, 0] : f32 from vector<1x1x1xf32>
    %388 = vector.shape_cast %377 : vector<1x128xf32> to vector<1x1x128xf32>
    %cst_132 = arith.constant dense<0.000000e+00> : vector<1xf32>
    %389 = vector.multi_reduction <add>, %388, %cst_132 [1, 2] : vector<1x1x128xf32> to vector<1xf32>
    %390 = vector.shape_cast %389 : vector<1xf32> to vector<1x1x1xf32>
    %391 = vector.extract %390[0, 0, 0] : f32 from vector<1x1x1xf32>
    %392 = tpu.iota {dimensions = array<i32: 0>} : vector<8x128xi32>
    %cst_133 = arith.constant 0.000000e+00 : f32
    %393 = vector.broadcast %cst_133 : f32 to vector<8x128xf32>
    %c0_i32 = arith.constant 0 : i32
    %394 = vector.broadcast %c0_i32 : i32 to vector<8x128xi32>
    %395 = arith.cmpi eq, %392, %394 : vector<8x128xi32>
    %396 = vector.broadcast %194 : f32 to vector<8x128xf32>
    %397 = arith.select %395, %396, %393 : vector<8x128xi1>, vector<8x128xf32>
    %c1_i32_134 = arith.constant 1 : i32
    %398 = vector.broadcast %c1_i32_134 : i32 to vector<8x128xi32>
    %399 = arith.cmpi eq, %392, %398 : vector<8x128xi32>
    %400 = vector.broadcast %252 : f32 to vector<8x128xf32>
    %401 = arith.select %399, %400, %397 : vector<8x128xi1>, vector<8x128xf32>
    %c2_i32 = arith.constant 2 : i32
    %402 = vector.broadcast %c2_i32 : i32 to vector<8x128xi32>
    %403 = arith.cmpi eq, %392, %402 : vector<8x128xi32>
    %404 = vector.broadcast %262 : f32 to vector<8x128xf32>
    %405 = arith.select %403, %404, %401 : vector<8x128xi1>, vector<8x128xf32>
    %c3_i32 = arith.constant 3 : i32
    %406 = vector.broadcast %c3_i32 : i32 to vector<8x128xi32>
    %407 = arith.cmpi eq, %392, %406 : vector<8x128xi32>
    %408 = vector.broadcast %366 : f32 to vector<8x128xf32>
    %409 = arith.select %407, %408, %405 : vector<8x128xi1>, vector<8x128xf32>
    %c4_i32 = arith.constant 4 : i32
    %410 = vector.broadcast %c4_i32 : i32 to vector<8x128xi32>
    %411 = arith.cmpi eq, %392, %410 : vector<8x128xi32>
    %412 = vector.broadcast %375 : f32 to vector<8x128xf32>
    %413 = arith.select %411, %412, %409 : vector<8x128xi1>, vector<8x128xf32>
    %c5_i32 = arith.constant 5 : i32
    %414 = vector.broadcast %c5_i32 : i32 to vector<8x128xi32>
    %415 = arith.cmpi eq, %392, %414 : vector<8x128xi32>
    %416 = vector.broadcast %387 : f32 to vector<8x128xf32>
    %417 = arith.select %415, %416, %413 : vector<8x128xi1>, vector<8x128xf32>
    %c6_i32 = arith.constant 6 : i32
    %418 = vector.broadcast %c6_i32 : i32 to vector<8x128xi32>
    %419 = arith.cmpi eq, %392, %418 : vector<8x128xi32>
    %420 = vector.broadcast %391 : f32 to vector<8x128xf32>
    %421 = arith.select %419, %420, %417 : vector<8x128xi1>, vector<8x128xf32>
    %c0_135 = arith.constant 0 : index
    %c0_136 = arith.constant 0 : index
    %422 = vector.load %arg14[%c0_135, %c0_136] : memref<8x128xf32, #tpu.memory_space<vmem>>, vector<8x128xf32>
    tpu.vector_store %arg14[%c0_135, %c0_136], %421 {strides = array<i32>} : memref<8x128xf32, #tpu.memory_space<vmem>>, vector<8x128xf32>,
    return
  }
  func.func @transform_0(%arg0: i32) -> (i32, i32, i32) {
    %c0_i32 = arith.constant 0 : i32
    %c0_i32_0 = arith.constant 0 : i32
    %c0_i32_1 = arith.constant 0 : i32
    return %c0_i32, %arg0, %c0_i32_0 : i32, i32, i32
  }
  func.func @transform_1(%arg0: i32) -> (i32, i32, i32) {
    %c1_i32 = arith.constant 1 : i32
    %0 = arith.addi %arg0, %c1_i32 : i32
    %c1_i32_0 = arith.constant 1 : i32
    %1 = arith.muli %0, %c1_i32_0 : i32
    %c0_i32 = arith.constant 0 : i32
    %c0_i32_1 = arith.constant 0 : i32
    %c0_i32_2 = arith.constant 0 : i32
    return %c0_i32, %1, %c0_i32_1 : i32, i32, i32
  }
  func.func @transform_2(%arg0: i32) -> (i32, i32, i32) {
    %c0_i32 = arith.constant 0 : i32
    %c0_i32_0 = arith.constant 0 : i32
    %c0_i32_1 = arith.constant 0 : i32
    return %c0_i32, %arg0, %c0_i32_0 : i32, i32, i32
  }
  func.func @transform_3(%arg0: i32) -> (i32, i32, i32) {
    %c1_i32 = arith.constant 1 : i32
    %0 = arith.addi %arg0, %c1_i32 : i32
    %c1_i32_0 = arith.constant 1 : i32
    %1 = arith.muli %0, %c1_i32_0 : i32
    %c0_i32 = arith.constant 0 : i32
    %c0_i32_1 = arith.constant 0 : i32
    %c0_i32_2 = arith.constant 0 : i32
    return %c0_i32, %1, %c0_i32_1 : i32, i32, i32
  }
  func.func @transform_4(%arg0: i32) -> (i32, i32, i32) {
    %c2_i32 = arith.constant 2 : i32
    %0 = arith.muli %arg0, %c2_i32 : i32
    %c1_i32 = arith.constant 1 : i32
    %1 = arith.subi %0, %c1_i32 : i32
    %c0_i32 = arith.constant 0 : i32
    %2 = arith.maxsi %1, %c0_i32 : i32
    %c0_i32_0 = arith.constant 0 : i32
    %c0_i32_1 = arith.constant 0 : i32
    %c0_i32_2 = arith.constant 0 : i32
    return %c0_i32_0, %2, %c0_i32_1 : i32, i32, i32
  }
  func.func @transform_5(%arg0: i32) -> (i32, i32) {
    %c0_i32 = arith.constant 0 : i32
    %c0_i32_0 = arith.constant 0 : i32
    return %arg0, %c0_i32 : i32, i32
  }
  func.func @transform_6(%arg0: i32) -> (i32, i32) {
    %c1_i32 = arith.constant 1 : i32
    %0 = arith.addi %arg0, %c1_i32 : i32
    %c2_i32 = arith.constant 2 : i32
    %1 = arith.muli %0, %c2_i32 : i32
    %c0_i32 = arith.constant 0 : i32
    %c0_i32_0 = arith.constant 0 : i32
    return %1, %c0_i32 : i32, i32
  }
  func.func @transform_7(%arg0: i32) -> (i32, i32) {
    %c0_i32 = arith.constant 0 : i32
    %c0_i32_0 = arith.constant 0 : i32
    return %arg0, %c0_i32 : i32, i32
  }
  func.func @transform_8(%arg0: i32) -> (i32, i32) {
    %c0_i32 = arith.constant 0 : i32
    %c0_i32_0 = arith.constant 0 : i32
    %c0_i32_1 = arith.constant 0 : i32
    return %c0_i32, %c0_i32_0 : i32, i32
  }
  func.func @transform_9(%arg0: i32) -> (i32, i32) {
    %c0_i32 = arith.constant 0 : i32
    %c0_i32_0 = arith.constant 0 : i32
    %c0_i32_1 = arith.constant 0 : i32
    return %c0_i32, %c0_i32_0 : i32, i32
  }
  func.func @transform_10(%arg0: i32) -> (i32, i32) {
    %c0_i32 = arith.constant 0 : i32
    %c0_i32_0 = arith.constant 0 : i32
    %c0_i32_1 = arith.constant 0 : i32
    return %c0_i32, %c0_i32_0 : i32, i32
  }
  func.func @transform_11(%arg0: i32) -> (i32, i32) {
    %c0_i32 = arith.constant 0 : i32
    %c0_i32_0 = arith.constant 0 : i32
    return %c0_i32, %arg0 : i32, i32
  }
  func.func @transform_12(%arg0: i32) -> (i32, i32) {
    %c0_i32 = arith.constant 0 : i32
    %c0_i32_0 = arith.constant 0 : i32
    return %c0_i32, %arg0 : i32, i32
  }
  func.func @transform_13(%arg0: i32) -> (i32, i32) {
    %c0_i32 = arith.constant 0 : i32
    %c0_i32_0 = arith.constant 0 : i32
    return %arg0, %c0_i32 : i32, i32
  }
}

</mosaic_0001>

<bundles_post_ra>
// kernel: tpu_custom_call.1
= control target key start
LH: loop header
LB: loop body
LE: loop exit
PB: predicated region body
PF: predicated region fallthrough
CT: control target
= control target key end

     0   :  { %s4580_s0 = inlined_call_operand.vmem [shape: f32[3,48,32], index: 0, kind: input, shape index: {}]   ;;  %s4581_s1 = inlined_call_operand.vmem [shape: f32[3,48,32], index: 1, kind: input, shape index: {}]   ;;  %s4582_s2 = inlined_call_operand.vmem [shape: f32[3,48,32], index: 2, kind: input, shape index: {}]   ;;  %s4583_s3 = inlined_call_operand.vmem [shape: f32[3,48,32], index: 3, kind: input, shape index: {}]   ;;  %s4584_s4 = inlined_call_operand.vmem [shape: f32[3,48,32], index: 4, kind: input, shape index: {}]   ;;  %s4585_s5 = inlined_call_operand.vmem [shape: f32[48,32], index: 5, kind: input, shape index: {}]   ;;  %s4586_s6 = inlined_call_operand.vmem [shape: f32[48,32], index: 6, kind: input, shape index: {}]   ;;  %s4587_s7 = inlined_call_operand.vmem [shape: f32[48,32], index: 7, kind: input, shape index: {}]   ;;  %s4588_s8 = inlined_call_operand.vmem [shape: f32[16,16], index: 8, kind: input, shape index: {}]   ;;  %s4589_s9 = inlined_call_operand.vmem [shape: f32[16,16], index: 9, kind: input, shape index: {}]   ;;  %s4590_s10 = inlined_call_operand.vmem [shape: f32[32,22], index: 10, kind: input, shape index: {}]   ;;  %s4591_s11 = inlined_call_operand.vmem [shape: f32[3,256], index: 11, kind: input, shape index: {}]   ;;  %s4592_s12 = inlined_call_operand.vmem [shape: f32[1,256], index: 12, kind: input, shape index: {}]   ;;  %s4593_s13 = inlined_call_operand.hbm [shape: f32[16,128], index: 13, kind: output, shape index: {}]  }
   0x1   :  { %4600 = sst [smem:[#allocation15_spill]] %s4580_s0 }
   0x2   :  { %4601 = sst [smem:[#allocation16_spill]] %s4586_s6 }
   0x3   :  { %4602 = sst [smem:[#allocation17_spill]] %s4591_s11 }
   0x4   :  { %4603 = sst [smem:[#allocation18_spill]] %s4592_s12 }
   0x5   :  { %4604 = sst [smem:[#allocation19_spill]] %s4593_s13 }
   0x6   :  { %18 = vsyncpa [#allocation8], 0 }
   0x7   :  { %20 = vsyncpa [#allocation8 + $0x1], 0  ;;  %s3469_s25 = smov 0   ;;  %s3471_s26 = smov 0  }
   0x8   :  { %s3473_s27 = smov 0   ;;  %s3475_s28 = smov 0  }
   0x9   :  { %s3477_s29 = smov 0   ;;  %s3479_s30 = smov 0  }
   0xa   :  { %s3481_s14 = smov 0   ;;  %s3483_s15 = smov 0  }
   0xb LB: > { %4605 = sst [smem:[#allocation10_spill]] %s3365_s25  ;;  %s3510_s16 = sadd.s32 4294967295, %s3393_s15   ;;  %s3393_s15 = sphi %s3483_s15, %s4625_s15   ;;  %s3389_s14 = sphi %s3481_s14, %s4634_s14   ;;  %s3385_s30 = sphi %s3479_s30, %s4633_s30   ;;  %s3381_s29 = sphi %s3477_s29, %s4632_s29   ;;  %s3377_s28 = sphi %s3475_s28, %s4631_s28   ;;  %s3373_s27 = sphi %s3473_s27, %s4630_s27   ;;  %s3369_s26 = sphi %s3471_s26, %s4629_s26   ;;  %s3365_s25 = sphi %s3469_s25, %s4628_s25  }
   0xc   : > { %s3513_s17 = sadd.s32 1, %s3393_s15   ;;  %s33_s18 = sadd.s32 1, %s3389_s14 }
   0xd   : > { %4606 = sst [smem:[#allocation11_spill]] %s3513_s17  ;;  %s30_s19 = ssub.s32 %s3393_s15, %s3513_s17 }
   0xe   : > { %p40_p0 = scmp.ne.s32.totalorder %s3389_s14, %s3385_s30  ;;  %p31_p1 = scmp.eq.s32.totalorder %s30_s19, 0 }
   0xf   : > { %p41_p2 = scmp.eq.s32.totalorder %s3393_s15, 0  ;;  %s57_s20 = sadd.s32 1, %s3513_s17 }
  0x10   : > { %s61_s21 = sadd.s32 1, %s3381_s29  ;;  %s58_s24 = ssub.s32 %s3513_s17, %s57_s20 }
  0x11   : > { %s3524_s22 = scalar_select %p31_p1, %s3389_s14, %s33_s18  }
  0x12   : > { %p3531_p3 = por %p41_p2, %p40_p0  ;;  %p59_p4 = scmp.eq.s32.totalorder %s58_s24, 0 }
  0x13   : > { %4607 = sst [smem:[#allocation12_spill]] %s3524_s22  ;;  %p68_p5 = scmp.ne.s32.totalorder %s3381_s29, %s3377_s28 }
  0x14   : > { %s3007_s19 = sadd.s32 4294967294, %s3393_s15   ;;  %s3008_s13 = sshll.u32 %s3393_s15, 1 }
  0x15   : > { %s3541_s6 = scalar_select %p59_p4, %s3381_s29, %s61_s21  }
  0x16   : > { %p3545_p6 = por %p68_p5, %p41_p2  ;;  %s3009_s22 = sadd.s32 4294967295, %s3008_s13 }
  0x17   : > { %4609 = sst [smem:[#allocation13_spill]] %s3541_s6  ;;  %p140_p7 = scmp.gt.s32.totalorder %s3009_s22, 0 }
  0x18   : > { %s3150_s20 = sadd.s32 2, %s3008_s13  ;;  %p156_p8 = scmp.ne.s32.totalorder %s3373_s27, %s3369_s26 }
  0x19   : > { %s3011_s17 = sadd.s32 4294967295, %s3150_s20  ;;  %s4636_s22 = smov (!%p140_p7, %s3009_s22), 0 }
  0x1a   : > { %p144_p9 = scmp.gt.s32.totalorder %s3011_s17, 0  ;;  %p3555_p10 = por %p156_p8, %p41_p2 }
  0x1b   : > { %p383_p11 = scmp.eq.s32.totalorder %s3510_s16, 1  ;;  %p388_p12 = scmp.ne.s32.totalorder %s3385_s30, %s3365_s25 }
  0x1c   : > { %s4638_s17 = smov (!%p144_p9, %s3011_s17), 0  ;;  %p389_p1 = scmp.eq.s32.totalorder %s3007_s19, 1 }
  0x1d   : > { %p3565_p13 = por %p383_p11, %p40_p0  ;;  %s146_s13 = ssub.s32 %s4636_s22, %s4638_s17 }
  0x1e   : > { %s149_s20 = sadd.s32 1, %s3373_s27  ;;  %p147_p4 = scmp.eq.s32.totalorder %s146_s13, 0 }
  0x1f   : > { %s4612_s24 = scalar_select %p3565_p13, 1, 0 }
  0x20   : > { %p3571_p5 = por %p389_p1, %p388_p12  ;;  %p3015_p2 = scmp.ge.s32.totalorder %s3393_s15, 2 }
  0x21   : > { %4613 = sst [smem:[#allocation14_spill]] %s4612_s24 }
  0x22   : > { %s3576_s12 = scalar_select %p147_p4, %s3373_s27, %s149_s20  }
  0x23   : > { %414 = sbr.rel (%p3015_p2) target bundleno = 93 (0x5d), region = 28 }
  0x28   : > { %417 = sbr.rel (!%p3531_p3) target bundleno = 56 (0x38), region = 32  ;;  %s419_s19 = sand.u32 (%p3531_p3), 1, %s3389_s14  }
  0x29   : > { %s3155_s17 = sshll.u32 (%p3531_p3), %s3393_s15, 4  ;;  %s3161_s25 = smul.u32 (%p3531_p3), 48, %s419_s19 }
  0x2a   : > { %s4615_s0 = sld [smem:[#allocation15_spill]] (%p3531_p3) }
  0x2b   : > { %s421_s20 = scalar_lea.vmem (%p3531_p3), [#allocation2], %s3161_s25 }
  0x30   : > { %s424_s11 = scalar_lea.vmem %s4615_s0, %s3155_s17 }
  0x31   : > { %v463_v0 = vld [vmem:[%s424_s11] sm:$0xff]  ;;  %v465_v1 = vld [vmem:[%s424_s11 + $0x8] sm:$0xff]  ;;  %v467_v2 = vld [vmem:[%s424_s11 + $0x30] sm:$0xff] }
  0x32   : > { %464 = vst [vmem:[%s421_s20] sm:$0xff] %v463_v0  ;;  %v469_v3 = vld [vmem:[%s424_s11 + $0x38] sm:$0xff]  ;;  %v471_v4 = vld [vmem:[%s424_s11 + $0x60] sm:$0xff]  ;;  %v473_v5 = vld [vmem:[%s424_s11 + $0x68] sm:$0xff] }
  0x33   : > { %466 = vst [vmem:[%s421_s20 + $0x8] sm:$0xff] %v465_v1 }
  0x34   : > { %468 = vst [vmem:[%s421_s20 + $0x10] sm:$0xff] %v467_v2 }
  0x35   : > { %470 = vst [vmem:[%s421_s20 + $0x18] sm:$0xff] %v469_v3 }
  0x36   : > { %472 = vst [vmem:[%s421_s20 + $0x20] sm:$0xff] %v471_v4 }
  0x37   : > { %474 = vst [vmem:[%s421_s20 + $0x28] sm:$0xff] %v473_v5 }
  0x38 PF: > { %480 = sbr.rel (!%p3545_p6) target bundleno = 66 (0x42), region = 70  ;;  %s482_s24 = sand.u32 (%p3545_p6), 1, %s3381_s29  }
  0x39   : > { %s3018_s19 = sshll.u32 (%p3545_p6), %s3393_s15, 4  ;;  %s3162_s17 = smul.u32 (%p3545_p6), 48, %s482_s24 }
  0x3a   : > { %s2839_s0 = scalar_lea.vmem (%p3545_p6), %s4581_s1, %s3018_s19 }
  0x3b   : > { %v3019_v6 = vld [vmem:[%s2839_s0 + $0x10] sm:$0xff] (%p3545_p6)  ;;  %v3020_v7 = vld [vmem:[%s2839_s0 + $0x18] sm:$0xff] (%p3545_p6)  ;;  %v3021_v8 = vld [vmem:[%s2839_s0 + $0x40] sm:$0xff] (%p3545_p6)  ;;  %s484_s11 = scalar_lea.vmem (%p3545_p6), [#allocation3], %s3162_s17 }
  0x3c   : > { %528 = vst [vmem:[%s484_s11] sm:$0xff] (%p3545_p6), %v3019_v6  ;;  %v3022_v9 = vld [vmem:[%s2839_s0 + $0x48] sm:$0xff] (%p3545_p6)  ;;  %v3023_v10 = vld [vmem:[%s2839_s0 + $0x70] sm:$0xff] (%p3545_p6)  ;;  %v3024_v11 = vld [vmem:[%s2839_s0 + $0x78] sm:$0xff] (%p3545_p6) }
  0x3d   : > { %530 = vst [vmem:[%s484_s11 + $0x8] sm:$0xff] %v3020_v7 }
  0x3e   : > { %532 = vst [vmem:[%s484_s11 + $0x10] sm:$0xff] %v3021_v8 }
  0x3f   : > { %534 = vst [vmem:[%s484_s11 + $0x18] sm:$0xff] %v3022_v9 }
  0x40   : > { %536 = vst [vmem:[%s484_s11 + $0x20] sm:$0xff] %v3023_v10 }
  0x41   : > { %538 = vst [vmem:[%s484_s11 + $0x28] sm:$0xff] %v3024_v11 }
  0x42 PF: > { %544 = sbr.rel (!%p3531_p3) target bundleno = 76 (0x4c), region = 108  ;;  %s546_s20 = sand.u32 (%p3531_p3), 1, %s3389_s14  }
  0x43   : > { %s3156_s24 = sshll.u32 (%p3531_p3), %s3393_s15, 4  ;;  %s3163_s19 = smul.u32 (%p3531_p3), 48, %s546_s20 }
  0x44   : > { %s551_s25 = scalar_lea.vmem (%p3531_p3), %s4582_s2, %s3156_s24 }
  0x45   : > { %v590_v12 = vld [vmem:[%s551_s25] sm:$0xff] (%p3531_p3)  ;;  %v592_v13 = vld [vmem:[%s551_s25 + $0x8] sm:$0xff] (%p3531_p3)  ;;  %v594_v14 = vld [vmem:[%s551_s25 + $0x30] sm:$0xff] (%p3531_p3)  ;;  %s548_s0 = scalar_lea.vmem (%p3531_p3), [#allocation4], %s3163_s19 }
  0x46   : > { %591 = vst [vmem:[%s548_s0] sm:$0xff] (%p3531_p3), %v590_v12  ;;  %v596_v15 = vld [vmem:[%s551_s25 + $0x38] sm:$0xff] (%p3531_p3)  ;;  %v598_v16 = vld [vmem:[%s551_s25 + $0x60] sm:$0xff] (%p3531_p3)  ;;  %v600_v17 = vld [vmem:[%s551_s25 + $0x68] sm:$0xff] (%p3531_p3) }
  0x47   : > { %593 = vst [vmem:[%s548_s0 + $0x8] sm:$0xff] %v592_v13 }
  0x48   : > { %595 = vst [vmem:[%s548_s0 + $0x10] sm:$0xff] %v594_v14 }
  0x49   : > { %597 = vst [vmem:[%s548_s0 + $0x18] sm:$0xff] %v596_v15 }
  0x4a   : > { %599 = vst [vmem:[%s548_s0 + $0x20] sm:$0xff] %v598_v16 }
  0x4b   : > { %601 = vst [vmem:[%s548_s0 + $0x28] sm:$0xff] %v600_v17 }
  0x4c PF: > { %607 = sbr.rel (!%p3545_p6) target bundleno = 86 (0x56), region = 146  ;;  %s609_s23 = sand.u32 (%p3545_p6), 1, %s3381_s29  }
  0x4d   : > { %s3027_s11 = sshll.u32 (%p3545_p6), %s3393_s15, 4  ;;  %s3164_s20 = smul.u32 (%p3545_p6), 48, %s609_s23 }
  0x4e   : > { %s2848_s13 = scalar_lea.vmem (%p3545_p6), %s4583_s3, %s3027_s11 }
  0x4f   : > { %v3028_v18 = vld [vmem:[%s2848_s13 + $0x10] sm:$0xff] (%p3545_p6)  ;;  %v3029_v19 = vld [vmem:[%s2848_s13 + $0x18] sm:$0xff] (%p3545_p6)  ;;  %v3030_v20 = vld [vmem:[%s2848_s13 + $0x40] sm:$0xff] (%p3545_p6)  ;;  %s611_s17 = scalar_lea.vmem (%p3545_p6), [#allocation5], %s3164_s20 }
  0x50   : > { %655 = vst [vmem:[%s611_s17] sm:$0xff] (%p3545_p6), %v3028_v18  ;;  %v3031_v21 = vld [vmem:[%s2848_s13 + $0x48] sm:$0xff] (%p3545_p6)  ;;  %v3032_v22 = vld [vmem:[%s2848_s13 + $0x70] sm:$0xff] (%p3545_p6)  ;;  %v3033_v23 = vld [vmem:[%s2848_s13 + $0x78] sm:$0xff] (%p3545_p6) }
  0x51   : > { %657 = vst [vmem:[%s611_s17 + $0x8] sm:$0xff] %v3029_v19 }
  0x52   : > { %659 = vst [vmem:[%s611_s17 + $0x10] sm:$0xff] %v3030_v20 }
  0x53   : > { %661 = vst [vmem:[%s611_s17 + $0x18] sm:$0xff] %v3031_v21 }
  0x54   : > { %663 = vst [vmem:[%s611_s17 + $0x20] sm:$0xff] %v3032_v22 }
  0x55   : > { %665 = vst [vmem:[%s611_s17 + $0x28] sm:$0xff] %v3033_v23 }
  0x56 PF: > { %671 = sbr.rel (!%p3555_p10) target bundleno = 93 (0x5d), region = 184  ;;  %s673_s18 = sand.u32 (%p3555_p10), 1, %s3373_s27  }
  0x57   : > { %s3036_s25 = sshll.u32 (%p3555_p10), %s4636_s22, 3  ;;  %s3165_s0 = smul.u32 (%p3555_p10), 24, %s673_s18 }
  0x58   : > { %s681_s20 = scalar_lea.vmem (%p3555_p10), %s4584_s4, %s3036_s25 }
  0x59   : > { %v714_v24 = vld [vmem:[%s681_s20] sm:$0xff] (%p3555_p10)  ;;  %v716_v25 = vld [vmem:[%s681_s20 + $0x30] sm:$0xff] (%p3555_p10)  ;;  %s675_s24 = scalar_lea.vmem (%p3555_p10), [#allocation6], %s3165_s0 }
  0x5a   : > { %v718_v26 = vld [vmem:[%s681_s20 + $0x60] sm:$0xff] (%p3555_p10)  ;;  %715 = vst [vmem:[%s675_s24] sm:$0xff] (%p3555_p10), %v714_v24 }
  0x5b   : > { %717 = vst [vmem:[%s675_s24 + $0x8] sm:$0xff] %v716_v25 }
  0x5c   : > { %719 = vst [vmem:[%s675_s24 + $0x10] sm:$0xff] %v718_v26 }
  0x5d PF: > { %p3037_p0 = scmp.ge.s32.totalorder %s3393_s15, 1  ;;  %p766_p3 = scmp.lt.s32.totalorder %s3393_s15, 3 }
  0x5f   : > { %p767_p6 = pnand %p3037_p0, %p766_p3 }
  0x60   : > { %s780_s22 = sand.u32 (!%p767_p6), 1, %s3377_s28   ;;  %s3620_s21 = sand.u32 (!%p767_p6), 1, %s3385_s30  }
  0x61   : > { %770 = sbr.rel (%p767_p6) target bundleno = 1616 (0x650), region = 242  ;;  %s3395_s28 = smov (!%p767_p6), 32  }
  0x62   : > { %s3167_s19 = smul.u32 (!%p767_p6), 48, %s780_s22  ;;  %s3396_s0 = smov (!%p767_p6), 98  }
  0x63   : > { %s3166_s13 = smul.u32 (!%p767_p6), 48, %s3620_s21  ;;  %s3397_s23 = smov (!%p767_p6), 127  }
  0x64   : > { %s3623_s17 = scalar_lea.vmem (!%p767_p6), [#allocation3], %s3167_s19  ;;  %s3631_s18 = scalar_lea.vmem (!%p767_p6), [#allocation5], %s3167_s19 }
  0x65   : > { %s3649_s11 = scalar_lea.vmem (!%p767_p6), [#allocation2], %s3166_s13  ;;  %s3662_s20 = scalar_lea.vmem (!%p767_p6), [#allocation4], %s3166_s13 }
  0x66   : > { %v3626_v27 = vld [vmem:[%s3623_s17 + $0x8] sm:$0xff]  ;;  %v3629_v28 = vld [vmem:[%s3623_s17] sm:$0xff]  ;;  %vm1002_vm0 = vcmask 130048   ;;  %v3668_v36 = vld [vmem:[%s3662_s20 + $0x18] sm:$0xff]  ;;  %vm2523_vm1 = vcmask 1047808   ;;  %vm988_vm2 = vcmask 261120  }
  0x67   : > { %v3634_v29 = vld [vmem:[%s3631_s18 + $0x8] sm:$0xff]  ;;  %1023 = vmatpush.msra.mxu0 %v3626_v27  ;;  %3159 = vmatpush.msra.mxu1 %v3626_v27  ;;  %v3641_v30 = vld [vmem:[%s4589_s9] sm:$0xff]  ;;  %v2486_v39 = vmul.f32 0.587, %v3668_v36  ;;  %v1168_v61 = vmul.f32 %v3626_v27, %v3626_v27  ;;  %v1167_v63 = vmul.f32 %v3629_v28, %v3629_v28  ;;  %v3739_v0 = vld [vmem:[%s4590_s10 + $0x10] sm:$0xff]  ;;  %s801_s24 = sand.u32 1, %s3369_s26  }
  0x68   : > { %v3646_v31 = vld [vmem:[%s4589_s9 + $0x8] sm:$0xff]  ;;  %1104 = vmatpush.msra.mxu3 %v3634_v29  ;;  %v3655_v33 = vld [vmem:[%s3631_s18] sm:$0xff]  ;;  %v3680_v40 = vld [vmem:[%s3662_s20 + $0x10] sm:$0xff]  ;;  %v1251_v7 = vmul.f32 %v3634_v29, %v3634_v29  ;;  %s3168_s22 = smul.u32 24, %s801_s24  ;;  %s3931_s26 = sshll.u32 %s3510_s16, 1 }
  0x69   : > { %v3652_v32 = vld [vmem:[%s3649_s11 + $0x8] sm:$0xff]  ;;  %v3658_v34 = vld [vmem:[%s3649_s11] sm:$0xff]  ;;  %1024 = vmatpush.msra.mxu0 %v3629_v28  ;;  %3160 = vmatpush.msra.mxu1 %v3629_v28  ;;  %v2485_v43 = vmul.f32 0.587, %v3680_v40  ;;  %v1250_v8 = vmul.f32 %v3655_v33, %v3655_v33  ;;  %p894_p7 = scmp.lt.s32.totalorder %s3931_s26, 5  ;;  %s3046_s24 = sshll.u32 %s3510_s16, 4 }
  0x6a   : > { %v3665_v35 = vld [vmem:[%s3662_s20 + $0x8] sm:$0xff]  ;;  %v3671_v37 = vld [vmem:[%s3662_s20] sm:$0xff]  ;;  %3054 = vmatmul.msk.f32.vlgmr.msra.gmra.mxu0 %vm1002_vm0, %v3641_v30  ;;  %3055 = vmatmul.msk.f32.vlgmr.msra.gmra.mxu1 %vm1002_vm0, %v3646_v31  ;;  %v1166_v3 = vmul.f32 %v3652_v32, %v3652_v32  ;;  %v1165_v5 = vmul.f32 %v3658_v34, %v3658_v34  ;;  %s803_s19 = scalar_lea.vmem [#allocation6], %s3168_s22  ;;  %s3144_s22 = sadd.s32 4294967288, %s3046_s24 }
  0x6b   : > { %v2484_v38 = vmul.f32 0.114, %v3665_v35  ;;  %v3683_v41 = vld [vmem:[%s3662_s20 + $0x20] sm:$0xff]  ;;  %1052 = vmatpush.msrb.mxu1 %v3652_v32  ;;  %1105 = vmatpush.msra.mxu3 %v3655_v33  ;;  %v2483_v42 = vmul.f32 0.114, %v3671_v37  ;;  %v3694_v46 = vld [vmem:[%s3662_s20 + $0x28] sm:$0xff]  ;;  %v1249_v4 = vmul.f32 %v3665_v35, %v3665_v35  ;;  %v1248_v6 = vmul.f32 %v3671_v37, %v3671_v37 }
  0x6c   : > { %v2489_v44 = vmul.f32 0.299, %v3683_v41  ;;  %3060 = vmatmul.msk.f32.vlgmr.msra.gmra.mxu3 %vm1002_vm0, %v3641_v30  ;;  %1127 = vmatpush.msrb.mxu0 %v3665_v35  ;;  %v2490_v48 = vmul.f32 0.299, %v3694_v46  ;;  %v3702_v49 = vld [vmem:[%s4588_s8] sm:$0xff]  ;;  %v3715_v58 = vld [vmem:[%s4588_s8 + $0x8] sm:$0xff] }
  0x6d   : > { %v2488_v45 = vadd.f32 %v2486_v39, %v2484_v38  ;;  %1053 = vmatpush.msrb.mxu1 %v3658_v34  ;;  %v2487_v47 = vadd.f32 %v2485_v43, %v2483_v42  ;;  %1183 = vmatpush.msrb.mxu3 %v1168_v61  ;;  %v3732_v62 = vld [vmem:[%s4590_s10 + $0x18] sm:$0xff]  ;;  %v3750_v1 = vld [vmem:[%s4590_s10 + $0x8] sm:$0xff]  ;;  %v3756_v2 = vld [vmem:[%s4590_s10] sm:$0xff]  ;;  %v1334_v39 = vmul.f32 %v3634_v29, %v3626_v27  ;;  %s3939_s13 = scalar_select %p894_p7, %s3931_s26, 5 }
  0x6e   : > { %1128 = vmatpush.msrb.mxu0 %v3671_v37  ;;  %1079 = vmatpush.msra.mxu2 %v3732_v62  ;;  %v1332_v42 = vmul.f32 %v3665_v35, %v3652_v32  ;;  %p913_p8 = scmp.lt.s32.totalorder %s3510_s16, 1 }
  0x6f   : > { %v2491_v50 = vadd.f32 %v2489_v44, %v2487_v47  ;;  %v2492_v51 = vadd.f32 %v2490_v48, %v2488_v45  ;;  %1154 = vmatpush.msra.mxu1 %v3732_v62  ;;  %1184 = vmatpush.msrb.mxu3 %v1167_v63  ;;  %v1333_v44 = vmul.f32 %v3655_v33, %v3629_v28  ;;  %s3040_s25 = sshll.u32 %s3939_s13, 3 }
  0x70   : > { %1233 = vmatpush.msra.mxu0 %v3732_v62  ;;  %1080 = vmatpush.msra.mxu2 %v3739_v0  ;;  %v1331_v45 = vmul.f32 %v3671_v37, %v3658_v34 }
  0x71   : > { %v2504_v52 = vmax.f32 %v2491_v50, 0.0  ;;  %v2505_v53 = vmax.f32 %v2492_v51, 0.0  ;;  %1155 = vmatpush.msra.mxu1 %v3739_v0  ;;  %1289 = vmatpush.msra.mxu3 %v1249_v4 }
  0x72   : > { %3056 = vmatmul.msk.f32.vlgmr.msrb.gmra.mxu1 %vm1002_vm0, %v3702_v49  ;;  %3062 = vmatmul.msk.f32.vlgmr.msrb.gmra.mxu0 %vm1002_vm0, %v3702_v49 }
  0x73   : > { %v2509_v54 = vmin.f32 %v2504_v52, 1.0  ;;  %v2510_v56 = vmin.f32 %v2505_v53, 1.0  ;;  %1234 = vmatpush.msra.mxu0 %v3739_v0  ;;  %1081 = vmatpush.msra.mxu2 %v3750_v1 }
  0x74   : > { %3061 = vmatmul.msk.f32.gmra.mxu3 %vm1002_vm0, %v3646_v31  ;;  %1156 = vmatpush.msra.mxu1 %v3750_v1 }
  0x75   : > { %v2514_v55 = vmul.f32 255.0, %v2509_v54  ;;  %v2515_v59 = vmul.f32 255.0, %v2510_v56  ;;  %1235 = vmatpush.msra.mxu0 %v3750_v1  ;;  %1082 = vmatpush.msra.mxu2 %v3756_v2 }
  0x76   : > { %1157 = vmatpush.msra.mxu1 %v3756_v2  ;;  %1290 = vmatpush.msra.mxu3 %v1248_v6 }
  0x77   : > { %v3710_v57 = vfloor.f32 %v2514_v55  ;;  %v3723_v60 = vfloor.f32 %v2515_v59  ;;  %1206 = vmatpush.msrb.mxu2 %v1166_v3  ;;  %1236 = vmatpush.msra.mxu0 %v3756_v2 }
  0x78   : > { %1266 = vmatpush.msrb.mxu1 %v1251_v7 }
  0x79   : > { %2524 = vrot.lane.b32.xlu0 %v3710_v57, %s3395_s28  ;;  %1207 = vmatpush.msrb.mxu2 %v1165_v5  ;;  %v3852_v5 = vld [vmem:[%s3623_s17 + $0x18] sm:$0xff] }
  0x7a   : > { %3057 = vmatmul.msk.f32.gmra.mxu1 %vm1002_vm0, %v3715_v58  ;;  %3063 = vmatmul.msk.f32.gmra.mxu0 %vm1002_vm0, %v3715_v58 }
  0x7b   : > { %1267 = vmatpush.msrb.mxu1 %v1250_v8  ;;  %1349 = vmatpush.msrb.mxu0 %v1334_v39  ;;  %v1654_v8 = vmul.f32 %v3852_v5, %v3852_v5 }
  0x7c   : > { %3066 = vmatmul.msk.f32.vlgmr.msrb.gmra.mxu3 %vm1002_vm0, %v3641_v30 }
  0x7d   : > { %1399 = vmatpush.msrb.mxu3 %v3732_v62  ;;  %1350 = vmatpush.msrb.mxu0 %v1333_v44 }
  0x7f   : > { %1400 = vmatpush.msrb.mxu3 %v3739_v0 }
  0x81   : > { %2527 = vrot.lane.b32.xlu0 %v3723_v60, %s3395_s28  ;;  %1401 = vmatpush.msrb.mxu3 %v3750_v1 }
  0x83   : > { %1402 = vmatpush.msrb.mxu3 %v3756_v2 }
  0x84   : > { %3067 = vmatmul.msk.f32.gmra.mxu3 %vm1002_vm0, %v3646_v31 }
  0x8c   : > { %3074 = vmatmul.msk.f32.vlgmr.msra.gmra.mxu3 %vm1002_vm0, %v3702_v49 }
  0x94   : > { %3075 = vmatmul.msk.f32.gmra.mxu3 %vm1002_vm0, %v3715_v58 }
  0xe7   : > { %v1026_v9 = vpop.f32.mrf.mxu0  ;;  %v1029_v10 = vpop.f32.mrf.mxu1 }
  0xeb   : > { %v2525_v11 = vpop.permute.xlu0 %2524 }
  0xec   : > { %v2526_v12 = vsel %vm2523_vm1, %v2525_v11, %v3710_v57  ;;  %v2493_v11 = vmul.f32 0.114, %v3655_v33 }
  0xed   : > { %2533 = vrot.lane.b32.xlu1 %v2526_v12, %s3395_s28 }
  0xef   : > { %v1055_v13 = vpop.f32.mrf.mxu1  ;;  %v1107_v14 = vpop.f32.mrf.mxu3 }
  0xf0   : > { %v1056_v15 = vadd.f32 %v1055_v13, %v1026_v9  ;;  %v1130_v16 = vpop.f32.mrf.mxu0  ;;  %v3862_v9 = vld [vmem:[%s3623_s17 + $0x10] sm:$0xff] }
  0xf1   : > { %v1131_v17 = vadd.f32 %v1130_v16, %v1107_v14  ;;  %v3873_v14 = vld [vmem:[%s3631_s18 + $0x20] sm:$0xff] }
  0xf2   : > { %3058 = vmatmul.msk.f32.vlgmr.msra.gmra.mxu2 %vm988_vm2, %v1056_v15  ;;  %v2499_v33 = vmul.f32 0.299, %v3873_v14 }
  0xf3   : > { %3064 = vmatmul.msk.f32.vlgmr.msra.gmra.mxu1 %vm988_vm2, %v1131_v17  ;;  %v2528_v18 = vpop.permute.xlu0 %2527  ;;  %1316 = vmatpush.msra.mxu2 %v3732_v62  ;;  %v3876_v17 = vld [vmem:[%s3649_s11 + $0x18] sm:$0xff] }
  0xf4   : > { %v2529_v19 = vsel %vm2523_vm1, %v2528_v18, %v3723_v60  ;;  %1372 = vmatpush.msra.mxu1 %v1332_v42 }
  0xf5   : > { %2535 = vrot.lane.b32.xlu1 %v2529_v19, %s3395_s28  ;;  %1317 = vmatpush.msra.mxu2 %v3739_v0  ;;  %v3881_v19 = vld [vmem:[%s3649_s11 + $0x10] sm:$0xff] }
  0xf6   : > { %1373 = vmatpush.msra.mxu1 %v1331_v45 }
  0xf7   : > { %v1058_v20 = vpop.f32.mrf.mxu1  ;;  %v1110_v21 = vpop.f32.mrf.mxu3  ;;  %1318 = vmatpush.msra.mxu2 %v3750_v1 }
  0xf8   : > { %v1059_v22 = vadd.f32 %v1058_v20, %v1029_v10  ;;  %v1133_v23 = vpop.f32.mrf.mxu0  ;;  %v3865_v10 = vld [vmem:[%s3631_s18 + $0x10] sm:$0xff] }
  0xf9   : > { %v1134_v24 = vadd.f32 %v1133_v23, %v1110_v21  ;;  %1319 = vmatpush.msra.mxu2 %v3756_v2  ;;  %v2495_v12 = vmul.f32 0.587, %v3865_v10 }
  0xfa   : > { %3059 = vmatmul.msk.f32.gmra.mxu2 %vm988_vm2, %v1059_v22 }
  0xfb   : > { %3065 = vmatmul.msk.f32.gmra.mxu1 %vm988_vm2, %v1134_v24  ;;  %v2497_v20 = vadd.f32 %v2495_v12, %v2493_v11  ;;  %v2477_v12 = vld [vmem:[%s803_s19 + $0x10] sm:$0xff] }
  0xfd   : > { %v2501_v22 = vadd.f32 %v2499_v33, %v2497_v20 }
  0xff   : > { %v1186_v38 = vpop.f32.mrf.mxu3 }
 0x102   : > { %3068 = vmatmul.msk.f32.vlgmr.msrb.gmra.mxu2 %vm1002_vm0, %v3702_v49 }
 0x103   : > { %3072 = vmatmul.msk.f32.vlgmr.msrb.gmra.mxu1 %vm1002_vm0, %v3641_v30  ;;  %1515 = vmatpush.msrb.mxu2 %v3852_v5 }
 0x104   : > { %1565 = vmatpush.msrb.mxu1 %v3732_v62 }
 0x105   : > { %1516 = vmatpush.msrb.mxu2 %v3862_v9 }
 0x106   : > { %1566 = vmatpush.msrb.mxu1 %v3739_v0 }
 0x107   : > { %v1189_v47 = vpop.f32.mrf.mxu3 }
 0x108   : > { %1567 = vmatpush.msrb.mxu1 %v3750_v1 }
 0x10a   : > { %3069 = vmatmul.msk.f32.gmra.mxu2 %vm1002_vm0, %v3715_v58  ;;  %1568 = vmatpush.msrb.mxu1 %v3756_v2 }
 0x10b   : > { %3073 = vmatmul.msk.f32.gmra.mxu1 %vm1002_vm0, %v3646_v31 }
 0x10f   : > { %v1292_v54 = vpop.f32.mrf.mxu3 }
 0x113   : > { %3080 = vmatmul.msk.f32.vlgmr.msra.gmra.mxu1 %vm1002_vm0, %v3702_v49 }
 0x114   : > { %1669 = vmatpush.msra.mxu1 %v1654_v8 }
 0x117   : > { %v1295_v16 = vpop.f32.mrf.mxu3 }
 0x11b   : > { %3081 = vmatmul.msk.f32.gmra.mxu1 %vm1002_vm0, %v3715_v58 }
 0x15f   : > { %v2534_v25 = vpop.permute.xlu1 %2533 }
 0x160   : > { %v3811_v26 = vsel %vm2523_vm1, %v2534_v25, %v3710_v57  ;;  %v2506_v25 = vmax.f32 %v2501_v22, 0.0 }
 0x161   : > { %2547 = vrot.lane.b32.xlu2 %v3811_v26, %s3396_s0 }
 0x170   : > { %v1159_v43 = vpop.f32.mrf.mxu1 }
 0x171   : > { %v3825_v48 = vmul.f32 %v1159_v43, %v1159_v43 }
 0x175   : > { %v1084_v27 = vpop.f32.mrf.mxu2 }
 0x176   : > { %v1414_v29 = vmul.f32 2.0, %v1084_v27  ;;  %v3828_v50 = vmul.f32 %v1084_v27, %v1084_v27  ;;  %v3831_v28 = vmul.f32 %v1159_v43, %v1084_v27  ;;  %v3923_v27 = vld [vmem:[%s3631_s18 + $0x18] sm:$0xff] }
 0x177   : > { %1590 = vmatpush.msra.mxu3 %v3923_v27 }
 0x178   : > { %v3833_v51 = vmul.f32 %v1414_v29, %v1159_v43  ;;  %v1162_v52 = vpop.f32.mrf.mxu1  ;;  %v3837_v53 = vadd.f32 %v3825_v48, %v3828_v50  ;;  %v2536_v43 = vpop.permute.xlu1 %2535 }
 0x179   : > { %v3843_v55 = vmul.f32 %v1162_v52, %v1162_v52  ;;  %v2540_v44 = vsel %vm2523_vm1, %v2536_v43, %v3723_v60  ;;  %1591 = vmatpush.msra.mxu3 %v3865_v10 }
 0x17a   : > { %2549 = vrot.lane.b32.xlu2 %v2540_v44, %s3396_s0 }
 0x17d   : > { %v1087_v56 = vpop.f32.mrf.mxu2 }
 0x17e   : > { %v1415_v59 = vmul.f32 2.0, %v1087_v56  ;;  %v3845_v61 = vmul.f32 %v1087_v56, %v1087_v56  ;;  %v3847_v63 = vmul.f32 %v1162_v52, %v1087_v56  ;;  %v2476_v56 = vld [vmem:[%s803_s19 + $0x8] sm:$0xff] }
 0x17f   : > { %v2479_v8 = vmul.f32 0.587, %v2476_v56 }
 0x180   : > { %v3849_v3 = vmul.f32 %v1415_v59, %v1162_v52  ;;  %v1269_v4 = vpop.f32.mrf.mxu1  ;;  %v3856_v6 = vadd.f32 %v3843_v55, %v3845_v61 }
 0x181   : > { %v1293_v7 = vadd.f32 %v1292_v54, %v1269_v4  ;;  %v2475_v54 = vld [vmem:[%s803_s19] sm:$0xff]  ;;  %s3954_s19 = scalar_lea.vmem %s4585_s5, %s3040_s25 }
 0x183   : > { %3076 = vmatmul.msk.f32.vlgmr.msra.gmra.mxu2 %vm988_vm2, %v1293_v7  ;;  %v2478_v7 = vmul.f32 0.114, %v2475_v54  ;;  %v1651_v54 = vmul.f32 %v3881_v19, %v3881_v19 }
 0x184   : > { %1613 = vmatpush.msra.mxu2 %v3668_v36 }
 0x185   : > { %v1209_v13 = vpop.f32.mrf.mxu2 }
 0x186   : > { %v1210_v15 = vadd.f32 %v1209_v13, %v1186_v38  ;;  %1614 = vmatpush.msra.mxu2 %v3680_v40  ;;  %v2511_v38 = vmin.f32 %v2506_v25, 1.0 }
 0x188   : > { %v1272_v18 = vpop.f32.mrf.mxu1  ;;  %3070 = vmatmul.msk.f32.vlgmr.msra.gmra.mxu0 %vm988_vm2, %v1210_v15  ;;  %v2516_v39 = vmul.f32 255.0, %v2511_v38  ;;  %v2480_v15 = vadd.f32 %v2479_v8, %v2478_v7 }
 0x189   : > { %v1296_v21 = vadd.f32 %v1295_v16, %v1272_v18  ;;  %1538 = vmatpush.msra.mxu0 %v3876_v17  ;;  %v2481_v16 = vmul.f32 0.299, %v2477_v12  ;;  %v1428_v18 = vadd.f32 0.0001, %v3837_v53 }
 0x18a   : > { %v3899_v42 = vfloor.f32 %v2516_v39 }
 0x18b   : > { %3077 = vmatmul.msk.f32.gmra.mxu2 %vm988_vm2, %v1296_v21  ;;  %1539 = vmatpush.msra.mxu0 %v3881_v19 }
 0x18c   : > { %2530 = vrot.lane.b32.xlu0 %v3899_v42, %s3395_s28 }
 0x18d   : > { %v1212_v23 = vpop.f32.mrf.mxu2 }
 0x18e   : > { %v1213_v24 = vadd.f32 %v1212_v23, %v1189_v47  ;;  %v2482_v23 = vadd.f32 %v2481_v16, %v2480_v15  ;;  %v2575_v16 = vrot.slane %v3723_v60, 1 }
 0x190   : > { %3071 = vmatmul.msk.f32.gmra.mxu0 %vm988_vm2, %v1213_v24  ;;  %v1375_v53 = vpop.f32.mrf.mxu1  ;;  %v2503_v39 = vmax.f32 %v2482_v23, 0.0 }
 0x193   : > { %3084 = vmatmul.msk.f32.vlgmr.msrb.gmra.mxu2 %vm1002_vm0, %v3641_v30 }
 0x194   : > { %1719 = vmatpush.msrb.mxu2 %v3732_v62 }
 0x196   : > { %1720 = vmatpush.msrb.mxu2 %v3739_v0 }
 0x198   : > { %3078 = vmatmul.msk.f32.vlgmr.msrb.gmra.mxu0 %vm1002_vm0, %v3641_v30  ;;  %1721 = vmatpush.msrb.mxu2 %v3750_v1 }
 0x199   : > { %1640 = vmatpush.msrb.mxu0 %v3732_v62 }
 0x19a   : > { %1722 = vmatpush.msrb.mxu2 %v3756_v2 }
 0x19b   : > { %3085 = vmatmul.msk.f32.gmra.mxu2 %vm1002_vm0, %v3646_v31  ;;  %1641 = vmatpush.msrb.mxu0 %v3739_v0 }
 0x19d   : > { %1642 = vmatpush.msrb.mxu0 %v3750_v1 }
 0x19f   : > { %1643 = vmatpush.msrb.mxu0 %v3756_v2 }
 0x1a0   : > { %3079 = vmatmul.msk.f32.gmra.mxu0 %vm1002_vm0, %v3646_v31 }
 0x1a3   : > { %3092 = vmatmul.msk.f32.vlgmr.msra.gmra.mxu2 %vm1002_vm0, %v3702_v49 }
 0x1a8   : > { %3086 = vmatmul.msk.f32.vlgmr.msra.gmra.mxu0 %vm1002_vm0, %v3702_v49 }
 0x1ab   : > { %3093 = vmatmul.msk.f32.gmra.mxu2 %vm1002_vm0, %v3715_v58 }
 0x1b0   : > { %3087 = vmatmul.msk.f32.gmra.mxu0 %vm1002_vm0, %v3715_v58 }
 0x1bb   : > { %v2548_v45 = vpop.permute.xlu2 %2547 }
 0x1bc   : > { %v2556_v47 = vsub.f32 %v3811_v26, %v2548_v45 }
 0x1be   : > { %2562 = vrot.lane.b32.xlu1 %v2556_v47, %s3397_s23  ;;  %v2508_v47 = vmin.f32 %v2503_v39, 1.0 }
 0x1c0   : > { %v2513_v56 = vmul.f32 255.0, %v2508_v47 }
 0x1d4   : > { %v2550_v29 = vpop.permute.xlu2 %2549 }
 0x1d5   : > { %v2557_v52 = vsub.f32 %v2540_v44, %v2550_v29  ;;  %v953_v29 = vlaneseq }
 0x1d7   : > { %2564 = vrot.lane.b32.xlu2 %v2557_v52, %s3397_s23  ;;  %v1652_v52 = vmul.f32 %v3876_v17, %v3876_v17 }
 0x1fe   : > { %v2531_v24 = vpop.permute.xlu0 %2530 }
 0x1ff   : > { %v2532_v25 = vsel %vm2523_vm1, %v2531_v24, %v3899_v42 }
 0x200   : > { %2537 = vrot.lane.b32.xlu0 %v2532_v25, %s3395_s28  ;;  %v3990_v25 = vand.u32 127, %v953_v29 }
 0x202   : > { %vm973_vm8 = vcmp.le.s32.totalorder %v3990_v25, 30  ;;  %vm2542_vm9 = vcmp.ge.s32.totalorder %v3990_v25, 1 }
 0x203   : > { %vm4002_vm10 = vmand %vm2542_vm9, %vm973_vm8 }
 0x205   : > { %v1238_v26 = vpop.f32.mrf.mxu0 }
 0x206   : > { %v1246_v59 = vsub.f32 %v1238_v26, %v3828_v50  ;;  %v1321_v4 = vpop.f32.mrf.mxu2  ;;  %v1653_v26 = vmul.f32 %v3862_v9, %v3862_v9 }
 0x207   : > { %v1329_v11 = vsub.f32 %v1321_v4, %v3825_v48  ;;  %v3969_v4 = vshrl.u32 %v953_v29, 7 }
 0x208   : > { %1670 = vmatpush.msra.mxu1 %v1653_v26 }
 0x209   : > { %v1430_v13 = vadd.f32 %v1329_v11, %v1246_v59  ;;  %v1378_v59 = vpop.f32.mrf.mxu1  ;;  %v2518_v11 = vfloor.f32 %v2513_v56  ;;  %v3974_v12 = vadd.s32 8, %v3969_v4  ;;  %vm2578_vm3 = vcmp.lt.s32.totalorder %v3969_v4, 7 }
 0x20a   : > { %vm2586_vm4 = vcmp.lt.s32.totalorder %v3969_v4, 1 }
 0x20b   : > { %v1432_v20 = vadd.f32 0.0009, %v1430_v13  ;;  %v3977_v13 = vstv %s3144_s22 }
 0x20d   : > { %v3935_v33 = vmul.f32 %v1432_v20, %v1428_v18  ;;  %v1241_v50 = vpop.f32.mrf.mxu0  ;;  %v2582_v18 = vrot.slane %v2518_v11, 7  ;;  %v2574_v20 = vrot.slane %v3710_v57, 1  ;;  %v2584_v11 = vrot.slane %v3723_v60, 7 }
 0x20e   : > { %v1247_v21 = vsub.f32 %v1241_v50, %v3845_v61  ;;  %v1324_v22 = vpop.f32.mrf.mxu2  ;;  %v1429_v61 = vadd.f32 0.0001, %v3856_v6  ;;  %v3960_v6 = vld [vmem:[%s3954_s19 + $0x8] sm:$0xff]  ;;  %v2583_v50 = vrot.slane %v3710_v57, 7 }
 0x20f   : > { %v1330_v48 = vsub.f32 %v1324_v22, %v3843_v55  ;;  %2655 = vrot.lane.b32.xlu2 %v3960_v6, %s3395_s28  ;;  %3266 = vrcp.f32 %v3935_v33 }
 0x210   : > { %v2589_v24 = vsel %vm2586_vm4, %v2582_v18, %v2583_v50 }
 0x211   : > { %v1431_v38 = vadd.f32 %v1330_v48, %v1247_v21  ;;  %v2594_v21 = vadd.s32 %v3977_v13, %v3974_v12  ;;  %v2581_v48 = vsel %vm2578_vm3, %v2574_v20, %v2575_v16  ;;  %v2588_v20 = vsel %vm2586_vm4, %v2583_v50, %v2584_v11 }
 0x212   : > { %v2606_v57 = vsub.f32 %v2581_v48, %v2589_v24 }
 0x213   : > { %v1433_v43 = vadd.f32 0.0009, %v1431_v38  ;;  %vm2597_vm5 = vcmp.ge.s32.totalorder %v2594_v21, 1  ;;  %vm2600_vm6 = vcmp.le.s32.totalorder %v2594_v21, 30 }
 0x214   : > { %vm2603_vm7 = vmand %vm2597_vm5, %vm2600_vm6  ;;  %vm1441_vm6 = vweird.f32 %v3935_v33 }
 0x215   : > { %v3947_v44 = vmul.f32 %v1433_v43, %v1429_v61  ;;  %v1352_v45 = vpop.f32.mrf.mxu0 }
 0x216   : > { %v1376_v55 = vadd.f32 %v1375_v53, %v1352_v45  ;;  %v1518_v15 = vpop.f32.mrf.mxu2  ;;  %v2609_v53 = vsel %vm2603_vm7, %v2606_v57, 0.0 }
 0x217   : > { %3268 = vrcp.f32 %v3947_v44 }
 0x218   : > { %3082 = vmatmul.msk.f32.vlgmr.msrb.gmra.mxu3 %vm988_vm2, %v1376_v55  ;;  %v2615_v55 = vand.u32 2147483647, %v2609_v53 }
 0x219   : > { %1692 = vmatpush.msrb.mxu3 %v1652_v52 }
 0x21b   : > { %1693 = vmatpush.msrb.mxu3 %v1651_v54  ;;  %v3398_v54 = vmov 0.0  }
 0x21d   : > { %v1355_v7 = vpop.f32.mrf.mxu0 }
 0x21e   : > { %v1379_v8 = vadd.f32 %v1378_v59, %v1355_v7  ;;  %v1521_v38 = vpop.f32.mrf.mxu2  ;;  %v4026_v59 = vld [vmem:[%s3954_s19] sm:$0xff]  ;;  %v2591_v7 = vadd.s32 16, %v3969_v4 }
 0x21f   : > { %2652 = vrot.lane.b32.xlu1 %v4026_v59, %s3395_s28 }
 0x220   : > { %3083 = vmatmul.msk.f32.gmra.mxu3 %vm988_vm2, %v1379_v8  ;;  %v2576_v8 = vrot.slane %v3899_v42, 1 }
 0x222   : > { %v2580_v18 = vsel %vm2578_vm3, %v2575_v16, %v2576_v8 }
 0x223   : > { %v2607_v21 = vsub.f32 %v2580_v18, %v2588_v20  ;;  %v1734_v18 = vmul.f32 %v3680_v40, %v3680_v40 }
 0x225   : > { %v1541_v22 = vpop.f32.mrf.mxu0 }
 0x226   : > { %v1542_v23 = vadd.f32 %v1541_v22, %v1518_v15  ;;  %v2595_v15 = vadd.s32 %v3977_v13, %v2591_v7 }
 0x228   : > { %3090 = vmatmul.msk.f32.vlgmr.msra.gmra.mxu3 %vm1002_vm0, %v3641_v30  ;;  %3088 = vmatmul.msk.f32.vlgmr.msrb.gmra.mxu1 %vm988_vm2, %v1542_v23  ;;  %vm2598_vm12 = vcmp.ge.s32.totalorder %v2595_v15, 1  ;;  %vm2601_vm13 = vcmp.le.s32.totalorder %v2595_v15, 30  ;;  %v1736_v15 = vmul.f32 %v3865_v10, %v3865_v10 }
 0x229   : > { %1802 = vmatpush.msra.mxu3 %v3732_v62  ;;  %vm2604_vm14 = vmand %vm2598_vm12, %vm2601_vm13  ;;  %vm1456_vm12 = vweird.f32 %v3947_v44 }
 0x22a   : > { %v2610_v22 = vsel %vm2604_vm14, %v2607_v21, 0.0 }
 0x22b   : > { %1803 = vmatpush.msra.mxu3 %v3739_v0  ;;  %v2616_v48 = vand.u32 2147483647, %v2610_v22 }
 0x22d   : > { %v1544_v39 = vpop.f32.mrf.mxu0  ;;  %1804 = vmatpush.msra.mxu3 %v3750_v1 }
 0x22e   : > { %v1545_v43 = vadd.f32 %v1544_v39, %v1521_v38 }
 0x22f   : > { %1805 = vmatpush.msra.mxu3 %v3756_v2 }
 0x230   : > { %v2563_v45 = vpop.permute.xlu1 %2562  ;;  %3091 = vmatmul.msk.f32.gmra.mxu3 %vm1002_vm0, %v3646_v31  ;;  %3089 = vmatmul.msk.f32.gmra.mxu1 %vm988_vm2, %v1545_v43 }
 0x231   : > { %v2571_v47 = vsel %vm4002_vm10, %v2563_v45, 0.0  ;;  %v2565_v23 = vpop.permute.xlu2 %2564 }
 0x232   : > { %v2612_v29 = vand.u32 2147483647, %v2571_v47  ;;  %v2572_v24 = vsel %vm4002_vm10, %v2565_v23, 0.0  ;;  %v1737_v47 = vmul.f32 %v3923_v27, %v3923_v27 }
 0x233   : > { %v2613_v57 = vand.u32 2147483647, %v2572_v24 }
 0x234   : > { %v2618_v52 = vadd.f32 %v2615_v55, %v2612_v29  ;;  %v3267_v55 = vpop.eup %3266  ;;  %v1735_v29 = vmul.f32 %v3668_v36, %v3668_v36  ;;  %1752 = vmatpush.msra.mxu0 %v1737_v47 }
 0x235   : > { %v2619_v38 = vadd.f32 %v2616_v48, %v2613_v57  ;;  %v3269_v7 = vpop.eup %3268  ;;  %vm1442_vm5 = vweird.f32 %v3267_v55  ;;  %v1447_v57 = vand.u32 2147483648, %v3935_v33 }
 0x236   : > { %vm2621_vm11 = vcmp.gt.f32.partialorder %v2618_v52, 200.0  ;;  %v1437_v52 = vmul.f32 %v3267_v55, %v3935_v33  ;;  %1775 = vmatpush.msrb.mxu1 %v1735_v29  ;;  %v1452_v20 = vmul.f32 %v3269_v7, %v3947_v44  ;;  %1753 = vmatpush.msra.mxu0 %v1736_v15  ;;  %vm1443_vm7 = vmor %vm1441_vm6, %vm1442_vm5  ;;  %vm1468_vm6 = vcmask 179200  }
 0x237   : > { %v2624_v56 = vsel %vm2621_vm11, 255.0, %v3398_v54  ;;  %vm2622_vm15 = vcmp.gt.f32.partialorder %v2619_v38, 200.0  ;;  %v1448_v29 = vor.u32 1.1754944e-38, %v1447_v57  ;;  %vm1457_vm11 = vweird.f32 %v3269_v7 }
 0x238   : > { %v4013_v26 = vsub.f32 1.0, %v2624_v56  ;;  %3098 = vmatmul.msk.f32.vlgmr.msrb.gmra.mxu3 %vm1002_vm0, %v3702_v49  ;;  %3096 = vmatmul.msk.f32.vlgmr.msra.gmra.mxu1 %vm1002_vm0, %v3641_v30  ;;  %v2625_v16 = vsel %vm2622_vm15, 255.0, %v3398_v54  ;;  %v1438_v56 = vsub.f32 1.0, %v1437_v52  ;;  %v1453_v24 = vsub.f32 1.0, %v1452_v20  ;;  %vm1458_vm14 = vmor %vm1456_vm12, %vm1457_vm11 }
 0x239   : > { %v4045_v53 = vsub.f32 1.0, %v2625_v16  ;;  %1776 = vmatpush.msrb.mxu1 %v1734_v18  ;;  %v1445_v16 = vand.u32 2147483647, %v3935_v33  ;;  %v1819_v57 = vmul.f32 %v3865_v10, %v3862_v9 }
 0x23a   : > { %2635 = vrot.lane.b32.xlu0 %v4013_v26, %s3395_s28  ;;  %v1439_v21 = vmul.f32 %v3267_v55, %v1438_v56  ;;  %v1454_v47 = vmul.f32 %v3269_v7, %v1453_v24  ;;  %v1820_v24 = vmul.f32 %v3923_v27, %v3852_v5 }
 0x23b   : > { %2638 = vrot.lane.b32.xlu1 %v4045_v53, %s3395_s28  ;;  %1885 = vmatpush.msra.mxu1 %v3732_v62  ;;  %vm1446_vm9 = vcmp.eq.f32.partialorder %v1445_v16, 8.507059e+37 }
 0x23c   : > { %v1440_v48 = vadd.f32 %v3267_v55, %v1439_v21  ;;  %v1455_v20 = vadd.f32 %v3269_v7, %v1454_v47  ;;  %v1460_v21 = vand.u32 2147483647, %v3947_v44  ;;  %1835 = vmatpush.msra.mxu2 %v1820_v24 }
 0x23d   : > { %1886 = vmatpush.msra.mxu1 %v3739_v0 }
 0x23e   : > { %v1459_v16 = vsel %vm1458_vm14, %v3269_v7, %v1455_v20  ;;  %vm1461_vm5 = vcmp.eq.f32.partialorder %v1460_v21, 8.507059e+37  ;;  %1836 = vmatpush.msra.mxu2 %v1819_v57 }
 0x23f   : > { %1887 = vmatpush.msra.mxu1 %v3750_v1 }
 0x240   : > { %3099 = vmatmul.msk.f32.gmra.mxu3 %vm1002_vm0, %v3715_v58  ;;  %3097 = vmatmul.msk.f32.gmra.mxu1 %vm1002_vm0, %v3646_v31 }
 0x241   : > { %1888 = vmatpush.msra.mxu1 %v3756_v2 }
 0x248   : > { %3104 = vmatmul.msk.f32.vlgmr.msrb.gmra.mxu1 %vm1002_vm0, %v3702_v49 }
 0x250   : > { %3105 = vmatmul.msk.f32.gmra.mxu1 %vm1002_vm0, %v3715_v58 }
 0x269   : > { %v2656_v50 = vpop.permute.xlu2 %2655 }
 0x26a   : > { %v2657_v39 = vsel %vm2523_vm1, %v2656_v50, %v3960_v6  ;;  %v956_v50 = vstv %s3046_s24 }
 0x26b   : > { %2660 = vrot.lane.b32.xlu1 %v2657_v39, %s3395_s28  ;;  %v1418_v39 = vadd.f32 0.0001, %v3833_v51  ;;  %v4086_v33 = vadd.s32 %v956_v50, %v3969_v4 }
 0x26d   : > { %vm976_vm13 = vcmp.lt.s32.totalorder %v4086_v33, 22 }
 0x272   : > { %v2538_v43 = vpop.permute.xlu0 %2537 }
 0x273   : > { %v4054_v45 = vsel %vm2523_vm1, %v2538_v43, %v3899_v42  ;;  %v1444_v43 = vsel %vm1443_vm7, %v3267_v55, %v1440_v48  ;;  %v4090_v55 = vadd.s32 %v956_v50, %v3974_v12  ;;  %v1419_v12 = vadd.f32 0.0001, %v3849_v3 }
 0x274   : > { %2551 = vrot.lane.b32.xlu2 %v4054_v45, %s3396_s0  ;;  %v1449_v56 = vsel %vm1446_vm9, %v1448_v29, %v1444_v43  ;;  %v4105_v50 = vsel %vm976_vm13, 1.0, %v3398_v54  ;;  %v1818_v29 = vmul.f32 %v3668_v36, %v3876_v17  ;;  %vm959_vm7 = vcmp.lt.s32.totalorder %v4086_v33, 32  ;;  %s911_s0 = scalar_lea.vmem %s4587_s7, %s3040_s25  ;;  %s4618_s25 = sld [smem:[#allocation17_spill]] }
 0x275   : > { %vm977_vm15 = vcmp.lt.s32.totalorder %v4090_v55, 22  ;;  %vm960_vm9 = vcmp.lt.s32.totalorder %v4090_v55, 32 }
 0x276   : > { %v4108_v10 = vsel %vm977_vm15, 1.0, %v3398_v54 }
 0x291   : > { %v2653_v36 = vpop.permute.xlu1 %2652 }
 0x29b   : > { %v1404_v22 = vpop.f32.mrf.mxu3 }
 0x29c   : > { %v1412_v23 = vsub.f32 %v1404_v22, %v3831_v28  ;;  %v1462_v22 = vand.u32 2147483648, %v3947_v44 }
 0x29e   : > { %v1420_v38 = vmul.f32 2.0, %v1412_v23  ;;  %v1463_v44 = vor.u32 1.1754944e-38, %v1462_v22 }
 0x2a0   : > { %v1422_v28 = vadd.f32 0.0009, %v1420_v38  ;;  %v1464_v5 = vsel %vm1461_vm5, %v1463_v44, %v1459_v16 }
 0x2a2   : > { %v1424_v52 = vmul.f32 %v1422_v28, %v1418_v39 }
 0x2a3   : > { %v1407_v15 = vpop.f32.mrf.mxu3 }
 0x2a4   : > { %v1450_v18 = vmul.f32 %v1449_v56, %v1424_v52  ;;  %v1413_v51 = vsub.f32 %v1407_v15, %v3847_v63  ;;  %v1616_v63 = vpop.f32.mrf.mxu2  ;;  %v1817_v52 = vmul.f32 %v3680_v40, %v3881_v19  ;;  %v2654_v40 = vsel %vm2523_vm1, %v2653_v36, %v4026_v59 }
 0x2a5   : > { %v4095_v23 = vpop.f32.mrf.mxu1  ;;  %2658 = vrot.lane.b32.xlu0 %v2654_v40, %s3395_s28 }
 0x2a6   : > { %v1421_v48 = vmul.f32 2.0, %v1413_v51  ;;  %v1466_v7 = vmul.f32 %v4105_v50, %v1450_v18 }
 0x2a8   : > { %v1423_v38 = vadd.f32 0.0009, %v1421_v48  ;;  %v1469_v15 = vsel %vm1468_vm6, %v1466_v7, 0.0 }
 0x2aa   : > { %v1425_v39 = vmul.f32 %v1423_v38, %v1419_v12 }
 0x2ab   : > { %v1593_v9 = vpop.f32.mrf.mxu3 }
 0x2ac   : > { %v1465_v27 = vmul.f32 %v1464_v5, %v1425_v39  ;;  %v2636_v28 = vpop.permute.xlu0 %2635  ;;  %v1617_v3 = vadd.f32 %v1616_v63, %v1593_v9  ;;  %v1619_v51 = vpop.f32.mrf.mxu2 }
 0x2ad   : > { %v2637_v43 = vsel %vm2523_vm1, %v2636_v28, %v4013_v26  ;;  %v4113_v47 = vpop.f32.mrf.mxu1  ;;  %v2639_v16 = vpop.permute.xlu1 %2638  ;;  %v982_v28 = vsub.f32 %v3658_v34, %v3671_v37 }
 0x2ae   : > { %2641 = vrot.lane.b32.xlu2 %v2637_v43, %s3395_s28  ;;  %3094 = vmatmul.msk.f32.vlgmr.msrb.gmra.mxu0 %vm988_vm2, %v1617_v3  ;;  %v1467_v56 = vmul.f32 %v4108_v10, %v1465_v27  ;;  %v2640_v44 = vsel %vm2523_vm1, %v2639_v16, %v4045_v53  ;;  %v4166_v43 = vsel %vm959_vm7, 1.0, %v3398_v54 }
 0x2af   : > { %1858 = vmatpush.msrb.mxu0 %v1818_v29  ;;  %2643 = vrot.lane.b32.xlu0 %v2640_v44, %s3395_s28  ;;  %v984_v3 = vand.u32 2147483647, %v982_v28  ;;  %v4169_v29 = vsel %vm960_vm9, 1.0, %v3398_v54  ;;  %v4224_v44 = vld [vmem:[%s4589_s9] sm:$0xff]  ;;  %s4441_s28 = scalar_select %p913_p8, %s3510_s16, 1 }
 0x2b0   : > { %v1470_v18 = vsel %vm1468_vm6, %v1467_v56, 0.0  ;;  %v4176_v56 = vld [vmem:[%s3623_s17 + $0x28] sm:$0xff] }
 0x2b1   : > { %v4124_v20 = vadd.f32 %v1470_v18, %v1469_v15  ;;  %1859 = vmatpush.msrb.mxu0 %v1817_v52  ;;  %v986_v52 = vmul.f32 %v4166_v43, %v984_v3  ;;  %v4179_v15 = vld [vmem:[%s3649_s11 + $0x28] sm:$0xff]  ;;  %2000 = vmatpush.msrb.mxu3 %v4176_v56  ;;  %v2139_v18 = vmul.f32 %v4176_v56, %v4176_v56 }
 0x2b3   : > { %v1596_v21 = vpop.f32.mrf.mxu3 }
 0x2b4   : > { %v1620_v22 = vadd.f32 %v1619_v51, %v1596_v21  ;;  %v4186_v51 = vld [vmem:[%s3623_s17 + $0x20] sm:$0xff]  ;;  %s4619_s17 = sld [smem:[#allocation18_spill]] }
 0x2b5   : > { %v1672_v48 = vpop.f32.mrf.mxu1  ;;  %v4189_v21 = vld [vmem:[%s3649_s11 + $0x20] sm:$0xff]  ;;  %2001 = vmatpush.msrb.mxu3 %v4186_v51 }
 0x2b6   : > { %3095 = vmatmul.msk.f32.gmra.mxu0 %vm988_vm2, %v1620_v22 }
 0x2ba   : > { %s919_s11 = scalar_lea.vmem %s4619_s17, %s4441_s28 }
 0x2bb   : > { %v1695_v24 = vpop.f32.mrf.mxu3 }
 0x2bc   : > { %v1696_v57 = vadd.f32 %v1695_v24, %v1672_v48  ;;  %v4208_v24 = vld [vmem:[%s3631_s18 + $0x28] sm:$0xff] }
 0x2bd   : > { %v1675_v63 = vpop.f32.mrf.mxu1  ;;  %2075 = vmatpush.msrb.mxu1 %v4208_v24 }
 0x2be   : > { %3100 = vmatmul.msk.f32.vlgmr.msrb.gmra.mxu2 %vm988_vm2, %v1696_v57  ;;  %3102 = vmatmul.msk.f32.vlgmr.msra.gmra.mxu0 %vm1002_vm0, %v3641_v30 }
 0x2bf   : > { %2050 = vmatpush.msra.mxu0 %v3732_v62  ;;  %2023 = vmatpush.msrb.mxu2 %v4179_v15 }
 0x2c0   : > { %2076 = vmatpush.msrb.mxu1 %v3873_v14 }
 0x2c1   : > { %2051 = vmatpush.msra.mxu0 %v3739_v0  ;;  %2024 = vmatpush.msrb.mxu2 %v4189_v21 }
 0x2c3   : > { %v1698_v12 = vpop.f32.mrf.mxu3  ;;  %2052 = vmatpush.msra.mxu0 %v3750_v1 }
 0x2c4   : > { %v1699_v38 = vadd.f32 %v1698_v12, %v1675_v63 }
 0x2c5   : > { %2053 = vmatpush.msra.mxu0 %v3756_v2  ;;  %v1778_v36 = vpop.f32.mrf.mxu1 }
 0x2c6   : > { %3101 = vmatmul.msk.f32.gmra.mxu2 %vm988_vm2, %v1699_v38  ;;  %3103 = vmatmul.msk.f32.gmra.mxu0 %vm1002_vm0, %v3646_v31 }
 0x2cd   : > { %v1781_v63 = vpop.f32.mrf.mxu1 }
 0x2ce   : > { %3108 = vmatmul.msk.f32.vlgmr.msra.gmra.mxu2 %vm1002_vm0, %v3641_v30  ;;  %3110 = vmatmul.msk.f32.vlgmr.msrb.gmra.mxu0 %vm1002_vm0, %v3702_v49  ;;  %v2552_v39 = vpop.permute.xlu2 %2551 }
 0x2cf   : > { %v2558_v5 = vsub.f32 %v4054_v45, %v2552_v39  ;;  %v983_v45 = vsub.f32 %v3652_v32, %v3665_v35  ;;  %v989_v32 = vsel %vm988_vm2, %v986_v52, 0.0  ;;  %2154 = vmatpush.msrb.mxu0 %v2139_v18  ;;  %2125 = vmatpush.msra.mxu2 %v3732_v62 }
 0x2d1   : > { %2566 = vrot.lane.b32.xlu1 %v2558_v5, %s3397_s23  ;;  %v985_v7 = vand.u32 2147483647, %v983_v45  ;;  %2126 = vmatpush.msra.mxu2 %v3739_v0 }
 0x2d3   : > { %v987_v34 = vmul.f32 %v4169_v29, %v985_v7  ;;  %2127 = vmatpush.msra.mxu2 %v3750_v1 }
 0x2d5   : > { %v990_v35 = vsel %vm988_vm2, %v987_v34, 0.0  ;;  %2128 = vmatpush.msra.mxu2 %v3756_v2 }
 0x2d6   : > { %3109 = vmatmul.msk.f32.gmra.mxu2 %vm1002_vm0, %v3646_v31  ;;  %3111 = vmatmul.msk.f32.gmra.mxu0 %vm1002_vm0, %v3715_v58  ;;  %v991_v37 = vadd.f32 %v990_v35, %v989_v32 }
 0x2dd   : > { %v2661_v30 = vpop.permute.xlu1 %2660 }
 0x2de   : > { %v2663_v9 = vsel %vm2523_vm1, %v2661_v30, %v3960_v6  ;;  %3116 = vmatmul.msk.f32.vlgmr.msrb.gmra.mxu2 %vm1002_vm0, %v3702_v49 }
 0x2df   : > { %2668 = vrot.lane.b32.xlu0 %v2663_v9, %s3397_s23  ;;  %v4239_v9 = vld [vmem:[%s4589_s9 + $0x8] sm:$0xff] }
 0x2e6   : > { %3117 = vmatmul.msk.f32.gmra.mxu2 %vm1002_vm0, %v3715_v58 }
 0x308   : > { %v2642_v31 = vpop.permute.xlu2 %2641 }
 0x309   : > { %v2645_v27 = vsel %vm2523_vm1, %v2642_v31, %v4013_v26  ;;  %992 = vadd.xlane.f32.xlu0 %v991_v37  ;;  %v4248_v31 = vld [vmem:[%s4588_s8] sm:$0xff] }
 0x30a   : > { %2680 = vrot.lane.b32.xlu1 %v2645_v27, %s3397_s23 }
 0x317   : > { %v2659_v38 = vpop.permute.xlu0 %2658 }
 0x321   : > { %v2644_v5 = vpop.permute.xlu0 %2643 }
 0x322   : > { %v2646_v30 = vsel %vm2523_vm1, %v2644_v5, %v4045_v53 }
 0x32b   : > { %v4196_v22 = vpop.f32.mrf.mxu0 }
 0x333   : > { %v4203_v48 = vpop.f32.mrf.mxu0 }
 0x334   : > { %1472 = vadd.xlane.f32.xlu1 %v4124_v20 }
 0x33b   : > { %v1755_v40 = vpop.f32.mrf.mxu0 }
 0x33c   : > { %v1779_v49 = vadd.f32 %v1778_v36, %v1755_v40 }
 0x33e   : > { %3106 = vmatmul.msk.f32.vlgmr.msra.gmra.mxu3 %vm988_vm2, %v1779_v49 }
 0x33f   : > { %2098 = vmatpush.msra.mxu3 %v3694_v46  ;;  %v2662_v46 = vsel %vm2523_vm1, %v2659_v38, %v4026_v59  ;;  %v3286_v38 = vld [vmem:[%s3662_s20 + $0x10] sm:$0xff] }
 0x340   : > { %2666 = vrot.lane.b32.xlu2 %v2662_v46, %s3397_s23  ;;  %v3287_v46 = vld [vmem:[%s3662_s20 + $0x18] sm:$0xff] }
 0x341   : > { %v4212_v57 = vpop.f32.mrf.mxu2  ;;  %2099 = vmatpush.msra.mxu3 %v3683_v41 }
 0x343   : > { %v1758_v58 = vpop.f32.mrf.mxu0  ;;  %v4263_v35 = vpop.permute.xlu1 %2566 }
 0x344   : > { %v1782_v20 = vadd.f32 %v1781_v63, %v1758_v58  ;;  %v2573_v60 = vsel %vm4002_vm10, %v4263_v35, 0.0  ;;  %vm2752_vm10 = vcmask 1040384  }
 0x346   : > { %3107 = vmatmul.msk.f32.gmra.mxu3 %vm988_vm2, %v1782_v20 }
 0x348   : > { %2682 = vrot.lane.b32.xlu2 %v2646_v30, %s3397_s23 }
 0x349   : > { %v4217_v12 = vpop.f32.mrf.mxu2 }
 0x34b   : > { %v1861_v16 = vpop.f32.mrf.mxu0 }
 0x34e   : > { %3114 = vmatmul.msk.f32.vlgmr.msrb.gmra.mxu3 %vm1002_vm0, %v4224_v44 }
 0x34f   : > { %2204 = vmatpush.msrb.mxu3 %v3732_v62 }
 0x351   : > { %v1838_v41 = vpop.f32.mrf.mxu2  ;;  %2205 = vmatpush.msrb.mxu3 %v3739_v0  ;;  %v2669_v27 = vpop.permute.xlu0 %2668 }
 0x352   : > { %v1862_v39 = vadd.f32 %v1861_v16, %v1838_v41  ;;  %v1482_v16 = vsub.f32 %v3881_v19, %v3286_v38  ;;  %v1483_v41 = vsub.f32 %v3876_v17, %v3287_v46  ;;  %v2455_v17 = vld [vmem:[%s911_s0] sm:$0xff] }
 0x353   : > { %2206 = vmatpush.msrb.mxu3 %v3750_v1  ;;  %v1864_v62 = vpop.f32.mrf.mxu0 }
 0x354   : > { %3112 = vmatmul.msk.f32.vlgmr.msra.gmra.mxu1 %vm988_vm2, %v1862_v39  ;;  %v1484_v39 = vand.u32 2147483647, %v1482_v16  ;;  %v1485_v5 = vand.u32 2147483647, %v1483_v41  ;;  %v4293_v41 = vld [vmem:[%s3662_s20 + $0x20] sm:$0xff] }
 0x355   : > { %2207 = vmatpush.msrb.mxu3 %v3756_v2  ;;  %v4257_v2 = vld [vmem:[%s4588_s8 + $0x8] sm:$0xff] }
 0x356   : > { %3115 = vmatmul.msk.f32.gmra.mxu3 %vm1002_vm0, %v4239_v9  ;;  %v1486_v30 = vmul.f32 %v4166_v43, %v1484_v39 }
 0x359   : > { %v1841_v0 = vpop.f32.mrf.mxu2 }
 0x35a   : > { %v1865_v1 = vadd.f32 %v1864_v62, %v1841_v0  ;;  %v1487_v62 = vmul.f32 %v4169_v29, %v1485_v5  ;;  %v2137_v0 = vmul.f32 %v4179_v15, %v4179_v15  ;;  %v2136_v5 = vmul.f32 %v4189_v21, %v4189_v21 }
 0x35c   : > { %3113 = vmatmul.msk.f32.gmra.mxu1 %vm988_vm2, %v1865_v1  ;;  %v1488_v1 = vsel %vm988_vm2, %v1486_v30, 0.0  ;;  %v1489_v19 = vsel %vm988_vm2, %v1487_v62, 0.0 }
 0x35d   : > { %2177 = vmatpush.msra.mxu1 %v2137_v0 }
 0x35e   : > { %3122 = vmatmul.msk.f32.vlgmr.msra.gmra.mxu3 %vm1002_vm0, %v4248_v31 }
 0x35f   : > { %2178 = vmatpush.msra.mxu1 %v2136_v5 }
 0x364   : > { %3120 = vmatmul.msk.f32.vlgmr.msrb.gmra.mxu1 %vm1002_vm0, %v4224_v44 }
 0x366   : > { %3123 = vmatmul.msk.f32.gmra.mxu3 %vm1002_vm0, %v4257_v2 }
 0x36c   : > { %3121 = vmatmul.msk.f32.gmra.mxu1 %vm1002_vm0, %v4239_v9 }
 0x374   : > { %3128 = vmatmul.msk.f32.vlgmr.msra.gmra.mxu1 %vm1002_vm0, %v4248_v31 }
 0x37c   : > { %v993_v28 = vpop.xlane.xlu0 %992  ;;  %v4265_v37 = vpop.permute.xlu1 %2680  ;;  %3129 = vmatmul.msk.f32.gmra.mxu1 %vm1002_vm0, %v4257_v2 }
 0x37d   : > { %v994_v45 = vrot.slane %v993_v28, 4 }
 0x37f   : > { %v995_v3 = vadd.f32 %v994_v45, %v993_v28  ;;  %v1490_v28 = vadd.f32 %v1489_v19, %v1488_v1  ;;  %v2456_v45 = vld [vmem:[%s911_s0 + $0x8] sm:$0xff]  ;;  %s3045_s0 = sshll.u32 %s4441_s28, 2  ;;  %s3038_s28 = sshll.u32 %s3620_s21, 3 }
 0x380   : > { %s916_s24 = scalar_lea.vmem %s4618_s25, %s3045_s0 }
 0x381   : > { %v996_v7 = vrot.slane %v995_v3, 2  ;;  %1491 = vadd.xlane.f32.xlu2 %v1490_v28 }
 0x383   : > { %v997_v52 = vadd.f32 %v996_v7, %v995_v3  ;;  %v1813_v3 = vmul.f32 %v4196_v22, %v4196_v22  ;;  %v2457_v7 = vsub.f32 %v4026_v59, %v2455_v17 }
 0x385   : > { %v998_v34 = vrot.slane %v997_v52, 1 }
 0x387   : > { %v999_v32 = vadd.f32 %v998_v34, %v997_v52  ;;  %v2458_v52 = vsub.f32 %v3960_v6, %v2456_v45  ;;  %v2673_v34 = vsub.f32 %v3960_v6, %v2669_v27  ;;  %v1967_v6 = vsub.f32 %v4189_v21, %v4293_v41  ;;  %v4298_v27 = vld [vmem:[%s3662_s20 + $0x28] sm:$0xff]  ;;  %s4620_s20 = sld [smem:[#allocation16_spill]] }
 0x388   : > { %v1968_v39 = vsub.f32 %v4179_v15, %v4298_v27 }
 0x389   : > { %3169 = vpush %v999_v32  ;;  %v1730_v32 = vmul.f32 %v4095_v23, %v4095_v23  ;;  %v2675_v16 = vand.u32 2147483647, %v2673_v34  ;;  %v1969_v19 = vand.u32 2147483647, %v1967_v6 }
 0x38a   : > { %v1970_v28 = vand.u32 2147483647, %v1968_v39  ;;  %v4336_v39 = vld [vmem:[%s4590_s10 + $0x10] sm:$0xff] }
 0x38c   : > { %v1972_v34 = vmul.f32 %v4169_v29, %v1970_v28 }
 0x3a7   : > { %v1473_v18 = vpop.xlane.xlu1 %1472 }
 0x3a8   : > { %v1474_v36 = vrot.slane %v1473_v18, 4 }
 0x3aa   : > { %v1475_v40 = vadd.f32 %v1474_v36, %v1473_v18  ;;  %v2459_v18 = vand.u32 2147483647, %v2457_v7  ;;  %v2460_v36 = vand.u32 2147483647, %v2458_v52  ;;  %v1814_v52 = vmul.f32 %v4203_v48, %v4203_v48 }
 0x3ac   : > { %v1476_v49 = vrot.slane %v1475_v40, 2  ;;  %v2462_v38 = vmul.f32 %v4169_v29, %v2460_v36  ;;  %v2677_v36 = vmul.f32 %v2675_v16, %v4045_v53 }
 0x3ae   : > { %v1477_v63 = vadd.f32 %v1476_v49, %v1475_v40  ;;  %v1732_v40 = vsub.f32 %v4212_v57, %v1730_v32  ;;  %v2138_v57 = vmul.f32 %v4186_v51, %v4186_v51  ;;  %v2464_v1 = vsel %vm988_vm2, %v2462_v38, 0.0 }
 0x3b0   : > { %v1478_v58 = vrot.slane %v1477_v63, 1  ;;  %2155 = vmatpush.msrb.mxu0 %v2138_v57 }
 0x3b2   : > { %v1479_v20 = vadd.f32 %v1478_v58, %v1477_v63  ;;  %v1912_v63 = vadd.f32 %v1813_v3, %v1730_v32  ;;  %v2667_v58 = vpop.permute.xlu2 %2666  ;;  %v1731_v32 = vmul.f32 %v4113_v47, %v4113_v47 }
 0x3b3   : > { %v2672_v30 = vsub.f32 %v4026_v59, %v2667_v58  ;;  %v1971_v59 = vmul.f32 %v4166_v43, %v1969_v19  ;;  %v2026_v19 = vpop.f32.mrf.mxu2 }
 0x3b4   : > { %3171 = vpush %v1479_v20  ;;  %v2461_v20 = vmul.f32 %v4166_v43, %v2459_v18  ;;  %v1914_v17 = vadd.f32 0.0001, %v1912_v63  ;;  %v3051_v63 = vsel %vm973_vm8, 1.0, %v3398_v54  ;;  %v1733_v57 = vsub.f32 %v4217_v12, %v1731_v32 }
 0x3b5   : > { %v2674_v45 = vand.u32 2147483647, %v2672_v30  ;;  %v1973_v58 = vsel %vm988_vm2, %v1971_v59, 0.0  ;;  %v1913_v5 = vadd.f32 %v1814_v52, %v1731_v32  ;;  %v2221_v12 = vmul.f32 %v3873_v14, %v3873_v14 }
 0x3b6   : > { %v2463_v62 = vsel %vm988_vm2, %v2461_v20, 0.0  ;;  %v1974_v20 = vsel %vm988_vm2, %v1972_v34, 0.0  ;;  %v1900_v59 = vmul.f32 2.0, %v4095_v23 }
 0x3b7   : > { %v2676_v18 = vmul.f32 %v2674_v45, %v4013_v26  ;;  %v1975_v6 = vadd.f32 %v1974_v20, %v1973_v58  ;;  %v4355_v45 = vld [vmem:[%s4590_s10] sm:$0xff] }
 0x3b8   : > { %v1902_v20 = vmul.f32 %v1900_v59, %v4196_v22 }
 0x3b9   : > { %v2686_v16 = vmul.f32 %v4265_v37, %v2676_v18  ;;  %1976 = vadd.xlane.f32.xlu0 %v1975_v6  ;;  %v4344_v37 = vld [vmem:[%s4590_s10 + $0x8] sm:$0xff] }
 0x3bb   : > { %v2688_v30 = vmul.f32 %v3051_v63, %v2686_v16 }
 0x3c1   : > { %v1807_v49 = vpop.f32.mrf.mxu3 }
 0x3c2   : > { %v1815_v46 = vsub.f32 %v1807_v49, %v1813_v3  ;;  %v2465_v3 = vadd.f32 %v2464_v1, %v2463_v62  ;;  %v2222_v1 = vmul.f32 %v4208_v24, %v4208_v24 }
 0x3c4   : > { %v1916_v0 = vadd.f32 %v1815_v46, %v1732_v40  ;;  %2466 = vadd.xlane.f32.xlu2 %v2465_v3  ;;  %v4322_v40 = vld [vmem:[%s4590_s10 + $0x18] sm:$0xff]  ;;  %v2683_v46 = vpop.permute.xlu2 %2682  ;;  %v1915_v3 = vadd.f32 0.0001, %v1913_v5  ;;  %2237 = vmatpush.msrb.mxu2 %v2222_v1  ;;  %v2029_v1 = vpop.f32.mrf.mxu2 }
 0x3c5   : > { %2287 = vmatpush.msrb.mxu1 %v4322_v40  ;;  %v2687_v62 = vmul.f32 %v2683_v46, %v2677_v36 }
 0x3c6   : > { %v1918_v7 = vadd.f32 0.0009, %v1916_v0  ;;  %2238 = vmatpush.msrb.mxu2 %v2221_v12 }
 0x3c7   : > { %2288 = vmatpush.msrb.mxu1 %v4336_v39  ;;  %v2689_v28 = vmul.f32 %v3051_v63, %v2687_v62 }
 0x3c8   : > { %v4325_v49 = vmul.f32 %v1918_v7, %v1914_v17  ;;  %v2690_v17 = vmul.f32 %v4166_v43, %v2688_v30  ;;  %v1896_v43 = vmul.f32 %v4196_v22, %v4095_v23  ;;  %v2220_v23 = vmul.f32 %v4298_v27, %v4298_v27 }
 0x3c9   : > { %v1810_v38 = vpop.f32.mrf.mxu3  ;;  %2289 = vmatpush.msrb.mxu1 %v4344_v37  ;;  %v1904_v30 = vadd.f32 0.0001, %v1902_v20 }
 0x3ca   : > { %3270 = vrcp.f32 %v4325_v49  ;;  %v1816_v25 = vsub.f32 %v1810_v38, %v1814_v52  ;;  %v2691_v52 = vmul.f32 %v4169_v29, %v2689_v28  ;;  %v2692_v32 = vsel %vm988_vm2, %v2690_v17, 0.0 }
 0x3cb   : > { %2290 = vmatpush.msrb.mxu1 %v4355_v45  ;;  %v1931_v22 = vand.u32 2147483647, %v4325_v49  ;;  %vm1927_vm8 = vweird.f32 %v4325_v49 }
 0x3cc   : > { %v1917_v0 = vadd.f32 %v1816_v25, %v1733_v57  ;;  %v2693_v58 = vsel %vm988_vm2, %v2691_v52, 0.0  ;;  %v1933_v57 = vand.u32 2147483648, %v4325_v49  ;;  %v2219_v25 = vmul.f32 %v4293_v41, %v4293_v41 }
 0x3cd   : > { %v2694_v46 = vadd.f32 %v2693_v58, %v2692_v32  ;;  %vm1932_vm12 = vcmp.eq.f32.partialorder %v1931_v22, 8.507059e+37 }
 0x3ce   : > { %v1919_v7 = vadd.f32 0.0009, %v1917_v0  ;;  %v1934_v17 = vor.u32 1.1754944e-38, %v1933_v57 }
 0x3cf   : > { %2695 = vadd.xlane.f32.xlu0 %v2694_v46 }
 0x3d0   : > { %v3271_v14 = vpop.eup %3270  ;;  %v1921_v34 = vmul.f32 %v1919_v7, %v1915_v3  ;;  %v1897_v3 = vmul.f32 %v4203_v48, %v4113_v47 }
 0x3d1   : > { %v1923_v18 = vmul.f32 %v3271_v14, %v4325_v49  ;;  %v1890_v36 = vpop.f32.mrf.mxu1  ;;  %v2003_v63 = vpop.f32.mrf.mxu3  ;;  %vm1928_vm1 = vweird.f32 %v3271_v14 }
 0x3d2   : > { %3272 = vrcp.f32 %v1921_v34  ;;  %v1898_v29 = vsub.f32 %v1890_v36, %v1896_v43  ;;  %v2027_v38 = vadd.f32 %v2026_v19, %v2003_v63  ;;  %v1901_v19 = vmul.f32 2.0, %v4113_v47  ;;  %vm1929_vm11 = vmor %vm1927_vm8, %vm1928_vm1 }
 0x3d3   : > { %v1924_v16 = vsub.f32 1.0, %v1923_v18  ;;  %v1946_v47 = vand.u32 2147483647, %v1921_v34  ;;  %vm1942_vm14 = vweird.f32 %v1921_v34 }
 0x3d4   : > { %v1906_v6 = vmul.f32 2.0, %v1898_v29  ;;  %3118 = vmatmul.msk.f32.vlgmr.msra.gmra.mxu0 %vm988_vm2, %v2027_v38  ;;  %v1903_v32 = vmul.f32 %v1901_v19, %v4203_v48  ;;  %v1948_v29 = vand.u32 2147483648, %v1921_v34 }
 0x3d5   : > { %v1925_v5 = vmul.f32 %v3271_v14, %v1924_v16  ;;  %2260 = vmatpush.msra.mxu0 %v2220_v23  ;;  %vm1947_vm5 = vcmp.eq.f32.partialorder %v1946_v47, 8.507059e+37 }
 0x3d6   : > { %v1908_v62 = vadd.f32 0.0009, %v1906_v6  ;;  %v1905_v16 = vadd.f32 0.0001, %v1903_v32  ;;  %v1949_v57 = vor.u32 1.1754944e-38, %v1948_v29  ;;  %v3294_v32 = vld [vmem:[%s3631_s18 + $0x20] sm:$0xff] }
 0x3d7   : > { %v1926_v0 = vadd.f32 %v3271_v14, %v1925_v5  ;;  %2261 = vmatpush.msra.mxu0 %v2219_v25 }
 0x3d8   : > { %v3273_v12 = vpop.eup %3272  ;;  %v1910_v28 = vmul.f32 %v1908_v62, %v1904_v30 }
 0x3d9   : > { %v1938_v7 = vmul.f32 %v3273_v12, %v1921_v34  ;;  %v1930_v52 = vsel %vm1929_vm11, %v3271_v14, %v1926_v0  ;;  %v1893_v59 = vpop.f32.mrf.mxu1  ;;  %v2006_v43 = vpop.f32.mrf.mxu3  ;;  %vm1943_vm13 = vweird.f32 %v3273_v12 }
 0x3da   : > { %v1935_v18 = vsel %vm1932_vm12, %v1934_v17, %v1930_v52  ;;  %v1899_v49 = vsub.f32 %v1893_v59, %v1897_v3  ;;  %v2030_v36 = vadd.f32 %v2029_v1, %v2006_v43  ;;  %vm1944_vm15 = vmor %vm1942_vm14, %vm1943_vm13  ;;  %v2305_v3 = vmul.f32 %v4208_v24, %v4176_v56 }
 0x3db   : > { %v1936_v63 = vmul.f32 %v1935_v18, %v1910_v28  ;;  %v1939_v58 = vsub.f32 1.0, %v1938_v7  ;;  %v2303_v7 = vmul.f32 %v4298_v27, %v4179_v15  ;;  %v2304_v18 = vmul.f32 %v3294_v32, %v4186_v51 }
 0x3dc   : > { %v1907_v20 = vmul.f32 2.0, %v1899_v49  ;;  %3119 = vmatmul.msk.f32.gmra.mxu0 %vm988_vm2, %v2030_v36  ;;  %2320 = vmatpush.msra.mxu3 %v2305_v3  ;;  %v2302_v49 = vmul.f32 %v4293_v41, %v4189_v21 }
 0x3dd   : > { %v1940_v38 = vmul.f32 %v3273_v12, %v1939_v58  ;;  %v1952_v62 = vmul.f32 %v4105_v50, %v1936_v63 }
 0x3de   : > { %v1909_v46 = vadd.f32 0.0009, %v1907_v20  ;;  %2321 = vmatpush.msra.mxu3 %v2304_v18 }
 0x3df   : > { %v1941_v14 = vadd.f32 %v3273_v12, %v1940_v38  ;;  %v1954_v34 = vsel %vm1468_vm6, %v1952_v62, 0.0 }
 0x3e0   : > { %v1911_v6 = vmul.f32 %v1909_v46, %v1905_v16 }
 0x3e1   : > { %v1945_v48 = vsel %vm1944_vm15, %v3273_v12, %v1941_v14  ;;  %v2078_v23 = vpop.f32.mrf.mxu1  ;;  %v2101_v25 = vpop.f32.mrf.mxu3 }
 0x3e2   : > { %v1950_v5 = vsel %vm1947_vm5, %v1949_v57, %v1945_v48  ;;  %v2102_v22 = vadd.f32 %v2101_v25, %v2078_v23 }
 0x3e3   : > { %v1951_v30 = vmul.f32 %v1950_v5, %v1911_v6 }
 0x3e4   : > { %3124 = vmatmul.msk.f32.vlgmr.msra.gmra.mxu2 %vm988_vm2, %v2102_v22  ;;  %3126 = vmatmul.msk.f32.vlgmr.msrb.gmra.mxu0 %vm1002_vm0, %v4224_v44 }
 0x3e5   : > { %v1953_v0 = vmul.f32 %v4108_v10, %v1951_v30  ;;  %2370 = vmatpush.msrb.mxu0 %v4322_v40  ;;  %2343 = vmatpush.msra.mxu2 %v2303_v7 }
 0x3e7   : > { %v1955_v1 = vsel %vm1468_vm6, %v1953_v0, 0.0  ;;  %2371 = vmatpush.msrb.mxu0 %v4336_v39  ;;  %2344 = vmatpush.msra.mxu2 %v2302_v49 }
 0x3e8   : > { %v1956_v12 = vadd.f32 %v1955_v1, %v1954_v34 }
 0x3e9   : > { %v2081_v19 = vpop.f32.mrf.mxu1  ;;  %v2104_v28 = vpop.f32.mrf.mxu3  ;;  %2372 = vmatpush.msrb.mxu0 %v4344_v37 }
 0x3ea   : > { %v2105_v17 = vadd.f32 %v2104_v28, %v2081_v19  ;;  %1957 = vadd.xlane.f32.xlu2 %v1956_v12 }
 0x3eb   : > { %2373 = vmatpush.msrb.mxu0 %v4355_v45 }
 0x3ec   : > { %3125 = vmatmul.msk.f32.gmra.mxu2 %vm988_vm2, %v2105_v17  ;;  %3127 = vmatmul.msk.f32.gmra.mxu0 %vm1002_vm0, %v4239_v9 }
 0x3f1   : > { %v2180_v63 = vpop.f32.mrf.mxu1 }
 0x3f4   : > { %3132 = vmatmul.msk.f32.vlgmr.msrb.gmra.mxu2 %vm1002_vm0, %v4224_v44  ;;  %3134 = vmatmul.msk.f32.vlgmr.msra.gmra.mxu0 %vm1002_vm0, %v4248_v31  ;;  %v1492_v40 = vpop.xlane.xlu2 %1491 }
 0x3f5   : > { %v1493_v39 = vrot.slane %v1492_v40, 4 }
 0x3f7   : > { %v1494_v37 = vadd.f32 %v1493_v39, %v1492_v40 }
 0x3f9   : > { %v1495_v45 = vrot.slane %v1494_v37, 2  ;;  %v2183_v16 = vpop.f32.mrf.mxu1 }
 0x3fb   : > { %v1496_v52 = vadd.f32 %v1495_v45, %v1494_v37 }
 0x3fc   : > { %3133 = vmatmul.msk.f32.gmra.mxu2 %vm1002_vm0, %v4239_v9  ;;  %3135 = vmatmul.msk.f32.gmra.mxu0 %vm1002_vm0, %v4257_v2 }
 0x3fd   : > { %v1497_v59 = vrot.slane %v1496_v52, 1 }
 0x3ff   : > { %v1498_v43 = vadd.f32 %v1497_v59, %v1496_v52 }
 0x401   : > { %3173 = vpush %v1498_v43 }
 0x404   : > { %3140 = vmatmul.msk.f32.vlgmr.msra.gmra.mxu2 %vm1002_vm0, %v4248_v31 }
 0x40c   : > { %3141 = vmatmul.msk.f32.gmra.mxu2 %vm1002_vm0, %v4257_v2 }
 0x437   : > { %v4413_v36 = vpop.xlane.xlu2 %2466 }
 0x451   : > { %v2055_v56 = vpop.f32.mrf.mxu0 }
 0x452   : > { %v2385_v38 = vmul.f32 2.0, %v2055_v56  ;;  %v2215_v46 = vmul.f32 %v2055_v56, %v2055_v56 }
 0x459   : > { %v2058_v15 = vpop.f32.mrf.mxu0 }
 0x45a   : > { %v2386_v5 = vmul.f32 2.0, %v2058_v15  ;;  %v2216_v62 = vmul.f32 %v2058_v15, %v2058_v15 }
 0x45d   : > { %v1958_v27 = vpop.xlane.xlu2 %1957 }
 0x45e   : > { %v1959_v58 = vrot.slane %v1958_v27, 4 }
 0x460   : > { %v1960_v51 = vadd.f32 %v1959_v58, %v1958_v27 }
 0x461   : > { %v2157_v20 = vpop.f32.mrf.mxu0 }
 0x462   : > { %v1961_v29 = vrot.slane %v1960_v51, 2  ;;  %v2181_v21 = vadd.f32 %v2180_v63, %v2157_v20 }
 0x464   : > { %3130 = vmatmul.msk.f32.vlgmr.msrb.gmra.mxu3 %vm988_vm2, %v2181_v21  ;;  %v1962_v41 = vadd.f32 %v1961_v29, %v1960_v51 }
 0x466   : > { %v1963_v47 = vrot.slane %v1962_v41, 1 }
 0x467   : > { %v2130_v31 = vpop.f32.mrf.mxu2 }
 0x468   : > { %v4418_v14 = vmul.f32 %v2385_v38, %v2130_v31  ;;  %v1964_v6 = vadd.f32 %v1963_v47, %v1962_v41  ;;  %v2298_v2 = vmul.f32 %v2130_v31, %v2130_v31  ;;  %v4420_v57 = vmul.f32 %v2130_v31, %v2055_v56  ;;  %v3295_v38 = vld [vmem:[%s3631_s18 + $0x8] sm:$0xff]  ;;  %v3296_v31 = vld [vmem:[%s3631_s18 + $0x18] sm:$0xff]  ;;  %s3158_s18 = sadd.s32 2, %s3931_s26 }
 0x469   : > { %v2160_v48 = vpop.f32.mrf.mxu0  ;;  %v2494_v47 = vmul.f32 0.114, %v3295_v38  ;;  %p901_p9 = scmp.lt.s32.totalorder %s3158_s18, 5 }
 0x46a   : > { %v2184_v23 = vadd.f32 %v2183_v16, %v2160_v48  ;;  %3175 = vpush %v1964_v6  ;;  %v2397_v25 = vadd.f32 %v2298_v2, %v2215_v46  ;;  %v2496_v16 = vmul.f32 0.587, %v3296_v31  ;;  %v2500_v48 = vmul.f32 0.299, %v4208_v24 }
 0x46b   : > { %s4640_s18 = smov (!%p901_p9, %s3158_s18), 5 }
 0x46c   : > { %3131 = vmatmul.msk.f32.gmra.mxu3 %vm988_vm2, %v2184_v23  ;;  %s3042_s23 = sshll.u32 %s4640_s18, 3 }
 0x46d   : > { %s904_s13 = scalar_lea.vmem %s4620_s20, %s3042_s23 }
 0x46f   : > { %v2133_v22 = vpop.f32.mrf.mxu2 }
 0x470   : > { %v4423_v30 = vmul.f32 %v2386_v5, %v2133_v22  ;;  %v2299_v0 = vmul.f32 %v2133_v22, %v2133_v22  ;;  %v4425_v34 = vmul.f32 %v2133_v22, %v2058_v15 }
 0x471   : > { %v2263_v12 = vpop.f32.mrf.mxu0 }
 0x472   : > { %v2398_v1 = vadd.f32 %v2299_v0, %v2216_v62 }
 0x474   : > { %3138 = vmatmul.msk.f32.vlgmr.msra.gmra.mxu3 %vm1002_vm0, %v4224_v44  ;;  %v2400_v29 = vadd.f32 0.0001, %v2398_v1 }
 0x477   : > { %v2240_v19 = vpop.f32.mrf.mxu2 }
 0x478   : > { %v2264_v28 = vadd.f32 %v2263_v12, %v2240_v19 }
 0x479   : > { %v2266_v17 = vpop.f32.mrf.mxu0 }
 0x47a   : > { %3136 = vmatmul.msk.f32.vlgmr.msrb.gmra.mxu1 %vm988_vm2, %v2264_v28 }
 0x47c   : > { %3139 = vmatmul.msk.f32.gmra.mxu3 %vm1002_vm0, %v4239_v9  ;;  %v2399_v9 = vadd.f32 0.0001, %v2397_v25  ;;  %vm2731_vm0 = vcmask 1042432  }
 0x47f   : > { %v2243_v40 = vpop.f32.mrf.mxu2 }
 0x480   : > { %v2267_v39 = vadd.f32 %v2266_v17, %v2243_v40 }
 0x482   : > { %3137 = vmatmul.msk.f32.gmra.mxu1 %vm988_vm2, %v2267_v39 }
 0x487   : > { %v2346_v52 = vpop.f32.mrf.mxu2 }
 0x48f   : > { %v2349_v56 = vpop.f32.mrf.mxu2 }
 0x4e7   : > { %v2209_v37 = vpop.f32.mrf.mxu3 }
 0x4e8   : > { %v2217_v45 = vsub.f32 %v2209_v37, %v2215_v46  ;;  %v2726_v46 = vld [vmem:[%s916_s24] sm:$0x7] }
 0x4e9   : > { %v2728_v6 = vmul.f32 1.442695, %v2726_v46 }
 0x4eb   : > { %3274 = vpow2.f32 %v2728_v6 }
 0x4ef   : > { %v2212_v3 = vpop.f32.mrf.mxu3 }
 0x4f0   : > { %v2218_v7 = vsub.f32 %v2212_v3, %v2216_v62  ;;  %v2585_v3 = vrot.slane %v3899_v42, 7 }
 0x4f1   : > { %v3275_v25 = vpop.eup %3274 }
 0x4f2   : > { %v2730_v5 = vmul.f32 %v3275_v25, %v3275_v25 }
 0x4f4   : > { %v2732_v62 = vsel %vm2731_vm0, %v2730_v5, 0.0  ;;  %v3297_v5 = vld [vmem:[%s3954_s19] sm:$0xff] }
 0x4f7   : > { %v2292_v59 = vpop.f32.mrf.mxu1  ;;  %v2323_v43 = vpop.f32.mrf.mxu3 }
 0x4f8   : > { %v2300_v44 = vsub.f32 %v2292_v59, %v2298_v2  ;;  %v2347_v32 = vadd.f32 %v2346_v52, %v2323_v43  ;;  %v2498_v2 = vadd.f32 %v2496_v16, %v2494_v47  ;;  %v2587_v43 = vsel %vm2586_vm4, %v2584_v11, %v2585_v3 }
 0x4fa   : > { %v2401_v18 = vadd.f32 %v2300_v44, %v2217_v45  ;;  %3142 = vmatmul.msk.f32.vlgmr.msrb.gmra.mxu0 %vm988_vm2, %v2347_v32  ;;  %v2502_v23 = vadd.f32 %v2500_v48, %v2498_v2  ;;  %v2592_v45 = vadd.s32 24, %v3969_v4 }
 0x4fc   : > { %v2403_v49 = vadd.f32 0.0009, %v2401_v18  ;;  %v2507_v22 = vmax.f32 %v2502_v23, 0.0  ;;  %v2454_v23 = vld [vmem:[%s904_s13] sm:$0xff]  ;;  %s3146_s13 = sshll.u32 %s3510_s16, 3 }
 0x4fe   : > { %v4434_v15 = vmul.f32 %v2403_v49, %v2399_v9  ;;  %v2512_v1 = vmin.f32 %v2507_v22, 1.0  ;;  %v1977_v9 = vpop.xlane.xlu0 %1976  ;;  %v2647_v22 = vrot.slane %v3297_v5, 1 }
 0x4ff   : > { %v2295_v27 = vpop.f32.mrf.mxu1  ;;  %v2326_v63 = vpop.f32.mrf.mxu3  ;;  %v1978_v49 = vrot.slane %v1977_v9, 4 }
 0x500   : > { %v2301_v58 = vsub.f32 %v2295_v27, %v2299_v0  ;;  %v2350_v51 = vadd.f32 %v2349_v56, %v2326_v63  ;;  %v2733_v0 = vrot.slane %v2732_v62, 4  ;;  %v2517_v28 = vmul.f32 255.0, %v2512_v1 }
 0x501   : > { %vm2412_vm13 = vweird.f32 %v4434_v15 }
 0x502   : > { %v2402_v20 = vadd.f32 %v2301_v58, %v2218_v7  ;;  %3143 = vmatmul.msk.f32.gmra.mxu0 %vm988_vm2, %v2350_v51  ;;  %v2734_v12 = vadd.f32 %v2733_v0, %v2732_v62  ;;  %v2522_v39 = vfloor.f32 %v2517_v28  ;;  %v2596_v7 = vadd.s32 %v3977_v13, %v2592_v45  ;;  %v3298_v62 = vld [vmem:[%s3954_s19 + $0x8] sm:$0xff]  ;;  %s3170_s19 = spop %3169 }
 0x503   : > { %v2614_v58 = vand.u32 2147483647, %v2573_v60  ;;  %v1979_v51 = vadd.f32 %v1978_v49, %v1977_v9  ;;  %v2648_v0 = vrot.slane %v3298_v62, 1  ;;  %s3172_s25 = spop %3171 }
 0x504   : > { %v2404_v21 = vadd.f32 0.0009, %v2402_v20  ;;  %v2735_v19 = vrot.slane %v2734_v12, 2  ;;  %v2577_v24 = vrot.slane %v2522_v39, 1  ;;  %vm2599_vm7 = vcmp.ge.s32.totalorder %v2596_v7, 1  ;;  %s3174_s24 = spop %3173 }
 0x505   : > { %vm2602_vm9 = vcmp.le.s32.totalorder %v2596_v7, 30  ;;  %v1980_v46 = vrot.slane %v1979_v51, 2  ;;  %v2418_v39 = vand.u32 2147483648, %v4434_v15  ;;  %v2651_v3 = vsel %vm2578_vm3, %v2647_v22, %v2648_v0  ;;  %s1500_s18 = sadd.f32 %s3174_s24, %s3170_s19  ;;  %s3176_s26 = spop %3175 }
 0x506   : > { %v4437_v41 = vmul.f32 %v2404_v21, %v2400_v29  ;;  %v2736_v17 = vadd.f32 %v2735_v19, %v2734_v12  ;;  %v2579_v59 = vsel %vm2578_vm3, %v2576_v8, %v2577_v24  ;;  %vm2605_vm1 = vmand %vm2599_vm7, %vm2602_vm9  ;;  %v2727_v29 = vld [vmem:[%s919_s11] sm:$0x1]  ;;  %v2649_v12 = vrot.slane %v2454_v23, 1  ;;  %s1966_s11 = sadd.f32 %s3176_s26, %s3172_s25 }
 0x507   : > { %v2608_v13 = vsub.f32 %v2579_v59, %v2587_v43  ;;  %v2763_v47 = vsel %vm2752_vm10, %v2727_v29, 0.0  ;;  %v1981_v19 = vadd.f32 %v1980_v46, %v1979_v51  ;;  %v2416_v24 = vand.u32 2147483647, %v4434_v15  ;;  %s4621_s25 = sld [smem:[#allocation19_spill]] }
 0x508   : > { %v2737_v40 = vrot.slane %v2736_v17, 1  ;;  %2764 = vadd.xlane.f32.xlu0 %v2763_v47  ;;  %v2389_v59 = vadd.f32 0.0001, %v4418_v14  ;;  %v2704_v9 = vsub.f32 %v3297_v5, %v2651_v3  ;;  %v2433_v14 = vand.u32 2147483648, %v4437_v41 }
 0x509   : > { %v2611_v8 = vsel %vm2605_vm1, %v2608_v13, 0.0  ;;  %vm2417_vm15 = vcmp.eq.f32.partialorder %v2416_v24, 8.507059e+37  ;;  %vm2427_vm0 = vweird.f32 %v4437_v41  ;;  %vm965_vm1 = vcmp.le.s32.totalorder %v4086_v33, 30 }
 0x50a   : > { %v2738_v37 = vadd.f32 %v2737_v40, %v2736_v17  ;;  %v2617_v63 = vand.u32 2147483647, %v2611_v8  ;;  %v2434_v47 = vor.u32 1.1754944e-38, %v2433_v14 }
 0x50c   : > { %3276 = vrsqrt.f32 %v2738_v37  ;;  %vm2746_vm4 = vcmp.eq.f32.partialorder %v2738_v37, inf  ;;  %vm2748_vm8 = vcmp.eq.f32.partialorder %v2738_v37, 0.0  ;;  %v2749_v61 = vand.u32 2147483648, %v2738_v37 }
 0x50d   : > { %3278 = vrcp.f32 %v4434_v15  ;;  %v2620_v16 = vadd.f32 %v2617_v63, %v2614_v58  ;;  %v2431_v58 = vand.u32 2147483647, %v4437_v41  ;;  %s2806_s26 = scalar_lea.hbm %s4621_s25, %s3146_s13 }
 0x50e   : > { %3280 = vrcp.f32 %v4437_v41 }
 0x50f   : > { %vm2623_vm11 = vcmp.gt.f32.partialorder %v2620_v16, 200.0  ;;  %vm2432_vm9 = vcmp.eq.f32.partialorder %v2431_v58, 8.507059e+37 }
 0x510   : > { %v2626_v7 = vsel %vm2623_vm11, 255.0, %v3398_v54  ;;  %vm2788_vm11 = vcmp.eq.s32.totalorder %v3969_v4, 5 }
 0x511   : > { %v2629_v49 = vsub.f32 1.0, %v2626_v7 }
 0x512   : > { %v3277_v52 = vpop.eup %3276 }
 0x513   : > { %v2740_v44 = vmul.f32 %v3277_v52, %v2738_v37  ;;  %v4463_v18 = vpop.eup %3278 }
 0x514   : > { %v2408_v56 = vmul.f32 %v4463_v18, %v4434_v15  ;;  %v4475_v21 = vpop.eup %3280  ;;  %vm2413_vm12 = vweird.f32 %v4463_v18 }
 0x515   : > { %v2741_v32 = vmul.f32 %v3277_v52, %v2740_v44  ;;  %v2423_v2 = vmul.f32 %v4475_v21, %v4437_v41  ;;  %vm2414_vm14 = vmor %vm2412_vm13, %vm2413_vm12  ;;  %vm2428_vm5 = vweird.f32 %v4475_v21  ;;  %vm2791_vm12 = vcmp.eq.s32.totalorder %v3969_v4, 6 }
 0x516   : > { %v2409_v35 = vsub.f32 1.0, %v2408_v56  ;;  %vm2429_vm7 = vmor %vm2427_vm0, %vm2428_vm5 }
 0x517   : > { %v2742_v42 = vmul.f32 0.5, %v2741_v32  ;;  %v2424_v40 = vsub.f32 1.0, %v2423_v2  ;;  %v2419_v32 = vor.u32 1.1754944e-38, %v2418_v39 }
 0x518   : > { %v2410_v48 = vmul.f32 %v4463_v18, %v2409_v35  ;;  %v2631_v35 = vrot.slane %v4045_v53, 1 }
 0x519   : > { %v2743_v11 = vsub.f32 1.5, %v2742_v42  ;;  %v2425_v13 = vmul.f32 %v4475_v21, %v2424_v40 }
 0x51a   : > { %v2411_v17 = vadd.f32 %v4463_v18, %v2410_v48 }
 0x51b   : > { %v2744_v27 = vmul.f32 %v3277_v52, %v2743_v11 }
 0x51c   : > { %v2415_v44 = vsel %vm2414_vm14, %v4463_v18, %v2411_v17  ;;  %v2706_v18 = vand.u32 2147483647, %v2704_v9 }
 0x51d   : > { %v2745_v20 = vmul.f32 %v2744_v27, %v2738_v37  ;;  %v2420_v8 = vsel %vm2417_vm15, %v2419_v32, %v2415_v44  ;;  %v2426_v27 = vadd.f32 %v4475_v21, %v2425_v13 }
 0x51e   : > { %v2708_v16 = vmul.f32 %v2706_v18, %v4013_v26 }
 0x51f   : > { %v2747_v38 = vsel %vm2746_vm4, %v2738_v37, %v2745_v20  ;;  %v1982_v37 = vrot.slane %v1981_v19, 1  ;;  %v2632_v20 = vrot.slane %v2629_v49, 1  ;;  %vm966_vm4 = vcmp.le.s32.totalorder %v4090_v55, 30 }
 0x520   : > { %v2750_v31 = vsel %vm2748_vm8, %v2749_v61, %v2747_v38  ;;  %v2630_v61 = vrot.slane %v4013_v26, 1  ;;  %v2430_v38 = vsel %vm2429_vm7, %v4475_v21, %v2426_v27  ;;  %vm2782_vm8 = vcmp.eq.s32.totalorder %v3969_v4, 3 }
 0x521   : > { %v2751_v6 = vmul.f32 %v2750_v31, %v2727_v29  ;;  %v1983_v52 = vadd.f32 %v1982_v37, %v1981_v19  ;;  %v2435_v41 = vsel %vm2432_vm9, %v2434_v47, %v2430_v38 }
 0x522   : > { %v2634_v2 = vsel %vm2578_vm3, %v2630_v61, %v2631_v35 }
 0x523   : > { %v2753_v25 = vsel %vm2752_vm10, %v2751_v6, 0.0  ;;  %3177 = vpush %v1983_v52  ;;  %v2633_v6 = vsel %vm2578_vm3, %v2631_v35, %v2632_v20  ;;  %v2710_v23 = vmul.f32 %v2708_v16, %v2634_v2  ;;  %vm2785_vm10 = vcmp.eq.s32.totalorder %v3969_v4, 4 }
 0x524   : > { %2754 = vadd.xlane.f32.xlu2 %v2753_v25  ;;  %v3050_v25 = vsel %vm966_vm4, 1.0, %v3398_v54 }
 0x554   : > { %s3178_s22 = spop %3177 }
 0x555   : > { %s1985_s17 = sadd.f32 %s3178_s22, %s1500_s18  ;;  %s4622_s22 = smov %s4621_s25 }
 0x557   : > { %v2774_v47 = vstv %s1985_s17  ;;  %s882_s17 = scalar_lea.vmem [#allocation7], %s3038_s28  ;;  %s2796_s28 = scalar_lea.sflag [#allocation8], %s3620_s21 }
 0x577   : > { %v2375_v1 = vpop.f32.mrf.mxu0 }
 0x578   : > { %v2383_v28 = vsub.f32 %v2375_v1, %v4420_v57  ;;  %v2650_v57 = vsel %vm2578_vm3, %v2648_v0, %v2649_v12  ;;  %v2468_v12 = vrot.slane %v4413_v36, 4  ;;  %vm2776_vm3 = vcmp.eq.s32.totalorder %v3969_v4, 1 }
 0x579   : > { %v2705_v42 = vsub.f32 %v3298_v62, %v2650_v57 }
 0x57a   : > { %v2391_v45 = vmul.f32 2.0, %v2383_v28 }
 0x57b   : > { %v2707_v51 = vand.u32 2147483647, %v2705_v42 }
 0x57c   : > { %v2393_v43 = vadd.f32 0.0009, %v2391_v45 }
 0x57d   : > { %v2709_v46 = vmul.f32 %v2707_v51, %v4045_v53  ;;  %v3049_v53 = vsel %vm965_vm1, 1.0, %v3398_v54  ;;  %v2469_v54 = vadd.f32 %v2468_v12, %v4413_v36 }
 0x57e   : > { %v2395_v15 = vmul.f32 %v2393_v43, %v2389_v59  ;;  %v2712_v0 = vmul.f32 %v3049_v53, %v2710_v23 }
 0x57f   : > { %v2378_v60 = vpop.f32.mrf.mxu0  ;;  %v2711_v26 = vmul.f32 %v2709_v46, %v2633_v6  ;;  %v2470_v39 = vrot.slane %v2469_v54, 2 }
 0x580   : > { %v2421_v11 = vmul.f32 %v2420_v8, %v2395_v15  ;;  %v2384_v56 = vsub.f32 %v2378_v60, %v4425_v34  ;;  %v2390_v34 = vadd.f32 0.0001, %v4423_v30  ;;  %v2714_v33 = vsel %vm988_vm2, %v2712_v0, 0.0 }
 0x581   : > { %v2713_v1 = vmul.f32 %v3050_v25, %v2711_v26  ;;  %v2471_v59 = vadd.f32 %v2470_v39, %v2469_v54 }
 0x582   : > { %v2392_v63 = vmul.f32 2.0, %v2384_v56  ;;  %v2437_v30 = vmul.f32 %v4105_v50, %v2421_v11 }
 0x583   : > { %v2715_v55 = vsel %vm988_vm2, %v2713_v1, 0.0  ;;  %v2472_v42 = vrot.slane %v2471_v59, 1  ;;  %vm2773_vm2 = vcmp.eq.s32.totalorder %v3969_v4, 0 }
 0x584   : > { %v2394_v29 = vadd.f32 0.0009, %v2392_v63  ;;  %v2439_v5 = vsel %vm1468_vm6, %v2437_v30, 0.0  ;;  %v2716_v50 = vadd.f32 %v2715_v55, %v2714_v33 }
 0x585   : > { %v2473_v14 = vadd.f32 %v2472_v42, %v2471_v59 }
 0x586   : > { %v2396_v31 = vmul.f32 %v2394_v29, %v2390_v34 }
 0x588   : > { %v2436_v48 = vmul.f32 %v2435_v41, %v2396_v31  ;;  %v2775_v31 = vsel %vm2773_vm2, %v2774_v47, 0.0 }
 0x58a   : > { %v2438_v21 = vmul.f32 %v4108_v10, %v2436_v48  ;;  %v2696_v10 = vpop.xlane.xlu0 %2695 }
 0x58b   : > { %v2697_v19 = vrot.slane %v2696_v10, 4 }
 0x58c   : > { %v2440_v22 = vsel %vm1468_vm6, %v2438_v21, 0.0  ;;  %vm2779_vm6 = vcmp.eq.s32.totalorder %v3969_v4, 2 }
 0x58d   : > { %v2441_v62 = vadd.f32 %v2440_v22, %v2439_v5  ;;  %v2698_v28 = vadd.f32 %v2697_v19, %v2696_v10 }
 0x58f   : > { %2442 = vadd.xlane.f32.xlu1 %v2441_v62  ;;  %v2699_v24 = vrot.slane %v2698_v28, 2 }
 0x591   : > { %v2700_v13 = vadd.f32 %v2699_v24, %v2698_v28 }
 0x592   : > { %v2765_v40 = vpop.xlane.xlu0 %2764 }
 0x593   : > { %v2766_v7 = vrot.slane %v2765_v40, 4  ;;  %v2701_v60 = vrot.slane %v2700_v13, 1 }
 0x595   : > { %v2767_v44 = vadd.f32 %v2766_v7, %v2765_v40  ;;  %v2702_v58 = vadd.f32 %v2701_v60, %v2700_v13 }
 0x597   : > { %2717 = vadd.xlane.f32.xlu1 %v2716_v50  ;;  %v2755_v17 = vpop.xlane.xlu2 %2754  ;;  %v2768_v36 = vrot.slane %v2767_v44, 2 }
 0x598   : > { %v2756_v45 = vrot.slane %v2755_v17, 4 }
 0x599   : > { %v2769_v18 = vadd.f32 %v2768_v36, %v2767_v44 }
 0x59a   : > { %v2757_v52 = vadd.f32 %v2756_v45, %v2755_v17 }
 0x59b   : > { %v2770_v35 = vrot.slane %v2769_v18, 1 }
 0x59c   : > { %v2758_v9 = vrot.slane %v2757_v52, 2 }
 0x59d   : > { %v2771_v38 = vadd.f32 %v2770_v35, %v2769_v18 }
 0x59e   : > { %v2759_v27 = vadd.f32 %v2758_v9, %v2757_v52 }
 0x5a0   : > { %v2760_v20 = vrot.slane %v2759_v27, 1 }
 0x5a2   : > { %v2761_v29 = vadd.f32 %v2760_v20, %v2759_v27 }
 0x602   : > { %v2443_v37 = vpop.xlane.xlu1 %2442 }
 0x603   : > { %v2444_v3 = vrot.slane %v2443_v37, 4 }
 0x605   : > { %v2445_v57 = vadd.f32 %v2444_v3, %v2443_v37 }
 0x607   : > { %v2446_v43 = vrot.slane %v2445_v57, 2 }
 0x609   : > { %v2447_v32 = vadd.f32 %v2446_v43, %v2445_v57 }
 0x60a   : > { %v2718_v15 = vpop.xlane.xlu1 %2717 }
 0x60b   : > { %v2719_v49 = vrot.slane %v2718_v15, 4  ;;  %v2448_v8 = vrot.slane %v2447_v32, 1 }
 0x60d   : > { %v2720_v11 = vadd.f32 %v2719_v49, %v2718_v15  ;;  %v2449_v56 = vadd.f32 %v2448_v8, %v2447_v32 }
 0x60f   : > { %v2721_v63 = vrot.slane %v2720_v11, 2  ;;  %3179 = vpush %v2449_v56 }
 0x610   : > { %3181 = vpush %v2473_v14 }
 0x611   : > { %v2722_v51 = vadd.f32 %v2721_v63, %v2720_v11  ;;  %3183 = vpush %v2702_v58 }
 0x613   : > { %v2723_v61 = vrot.slane %v2722_v51, 1 }
 0x615   : > { %v2724_v34 = vadd.f32 %v2723_v61, %v2722_v51 }
 0x617   : > { %3185 = vpush %v2724_v34 }
 0x618   : > { %3187 = vpush %v2761_v29 }
 0x619   : > { %3189 = vpush %v2771_v38 }
 0x640   : > { %s3180_s23 = spop %3179 }
 0x641   : > { %s2451_s0 = sadd.f32 %s3180_s23, %s1966_s11  ;;  %s3182_s20 = spop %3181 }
 0x642   : > { %v2780_v41 = vstv %s3182_s20  ;;  %s3184_s19 = spop %3183  ;;  %s2808_s11 = sshll.u32 %s882_s17, 4  ;;  %s2809_s11 = int_to_ptr.vmem [resolvable:$true] %s2808_s11 }
 0x643   : > { %v2777_v16 = vstv %s2451_s0  ;;  %v2783_v2 = vstv %s3184_s19  ;;  %s2810_s23 = sshll.u32 %s2806_s26, 4  ;;  %s3319_s26 = scalar_lea.hbm %s4622_s22, 16  ;;  %s2811_s23 = int_to_ptr.hbm [resolvable:$true] %s2810_s23 }
 0x644   : > { %v2778_v46 = vsel %vm2776_vm3, %v2777_v16, %v2775_v31  ;;  %s3313_s19 = sshra.s32 %s2811_s23, 4  ;;  %s3314_s19 = int_to_ptr.hbm [resolvable:$true] %s3313_s19 }
 0x645   : > { %v2781_v6 = vsel %vm2779_vm6, %v2780_v41, %v2778_v46  ;;  %s3315_s24 = scalar_lea.hbm %s3314_s19, 8  ;;  %p3320_p1 = scmp.lt.s32.totalorder %s3314_s19, %s4622_s22 }
 0x646   : > { %v2784_v48 = vsel %vm2782_vm8, %v2783_v2, %v2781_v6  ;;  %p3316_p10 = scmp.ne.s32.totalorder %s3314_s19, %s3315_s24  ;;  %p3321_p4 = scmp.lt.s32.totalorder %s3319_s26, %s3315_s24 }
 0x648   : > { %s3186_s16 = spop %3185  ;;  %p3317_p11 = pnand %p3316_p10, %p3565_p13 }
 0x649   : > { %v2786_v30 = vstv %s3186_s16  ;;  %s3188_s0 = spop %3187  ;;  %p3322_p0 = por %p3321_p4, %p3320_p1 }
 0x64a   : > { %v2787_v21 = vsel %vm2785_vm10, %v2786_v30, %v2784_v48  ;;  %v2789_v23 = vstv %s3188_s0  ;;  %s3190_s13 = spop %3189  ;;  %p3318_p12 = pneg %p3317_p11 }
 0x64b   : > { %v2790_v26 = vsel %vm2788_vm11, %v2789_v23, %v2787_v21  ;;  %v2792_v53 = vstv %s3190_s13 }
 0x64c   : > { %v2793_v25 = vsel %vm2791_vm12, %v2792_v53, %v2790_v26  ;;  %p3323_p3 = pnand %p3322_p0, %p3318_p12 }
 0x64d   : > { %2794 = vst [vmem:[%s882_s17] sm:$0xff] %v2793_v25 }
 0x64e   : > { %3326 = shalt.err (!%p3323_p3)
}
 0x64f   : > { %3191 = dma.vmem_to_hbm [thread:$0]  (%p3565_p13), %s2809_s11, 128, %s2811_s23, %s2796_s28  }
 0x650 PF: > { %s4624_s21 = sld [smem:[#allocation10_spill]]  ;;  %p3194_p6 = pnand %p3015_p2, %p3571_p5 }
 0x652   : > { %p3195_p7 = pneg %p3194_p6 }
 0x656   : > { %s2822_s17 = sand.u32 1, %s4624_s21  }
 0x657   : > { %s2823_s13 = scalar_lea.sflag [#allocation8], %s2822_s17 }
 0x658   : > { %3360 = dma.done.wait (%p3195_p7), %s2823_s13, 128  }
 0x659   : > { %3362 = vsyncadd (%p3195_p7), %s2823_s13, 4294967168  ;;  %s4625_s15 = sld [smem:[#allocation11_spill]]  ;;  %s4628_s25 = smov %s3385_s30 }
 0x65a   : > { %s4626_s19 = sld [smem:[#allocation13_spill]]  ;;  %s4629_s26 = smov %s3373_s27 }
 0x65b   : > { %s4627_s11 = sld [smem:[#allocation12_spill]]  ;;  %s4630_s27 = smov %s3576_s12 }
 0x65c   : > { %s4631_s28 = smov %s3381_s29  ;;  %s4633_s30 = smov %s3389_s14 }
 0x65f   : > { %p23_p13 = scmp.ge.s32.totalorder %s4625_s15, 4  }
 0x660   : > { %s4632_s29 = smov %s4626_s19 }
 0x661   : > { %s4634_s14 = smov %s4627_s11  ;;  %25 = sbr.rel (!%p23_p13) target bundleno = 11 (0xb), region = 349 }
 0x666   :  { %2829 = vsyncpa [#allocation8], 1 }
 0x667   :  { %2831 = vsyncpa [#allocation8 + $0x1], 1 }

</bundles_post_ra>
